<compile_context>
chip_gen: v7x
topology: tpu7x:2x2x1
jax: 0.10.0
libtpu: 0.0.40
codegen_flags: <defaults>
</compile_context>

<pallas_src>
import functools

import jax
import jax.numpy as jnp
from jax import lax
from jax.experimental import pallas as pl
from jax.experimental.pallas import tpu as pltpu

_SUBLANE = 8
_LANE = 128


def _round_up(x, m):
    return ((x + m - 1) // m) * m


# ----------------------------------------------------------------------------
# Fused kernel: all LSTM layers (time loop inside) + final Linear
# ----------------------------------------------------------------------------
def _fused_rnn_kernel(*refs, seq_len, batch, hidden, num_layers):
    """Ref layout (inputs, then output, then scratch):

      x_ref                  (T*Bp, F_in)   time-major, batch padded to Bp
      [w_ih, w_hh, b] * L    (F, 4H), (H, 4H), (1, 4H)   per layer
      w_out, b_out           (H, OUTp), (1, OUTp)
      o_ref                  (Bp, OUTp)
      xproj_sc               (T*Bp, 4H)     scratch: hoisted layer-0 projection
    """
    n = num_layers
    x_ref = refs[0]
    wih_refs = [refs[1 + 3 * l] for l in range(n)]
    whh_refs = [refs[2 + 3 * l] for l in range(n)]
    b_refs = [refs[3 + 3 * l] for l in range(n)]
    wout_ref = refs[1 + 3 * n]
    bout_ref = refs[2 + 3 * n]
    o_ref = refs[3 + 3 * n]
    xproj_sc = refs[4 + 3 * n]

    g4 = 4 * hidden

    # ---- hoisted out of the recurrence -------------------------------------
    # Layer-0 input projection for ALL timesteps as one tall matmul (T*Bp rows
    # on the MXU instead of Bp rows per step), with the bias folded in.
    xproj_sc[...] = (
        jnp.dot(x_ref[...], wih_refs[0][...],
                preferred_element_type=jnp.float32)
        + b_refs[0][...]
    )

    # Load weights once; hoist bias broadcasts out of the time loop
    # (JAX does not CSE broadcast_in_dim inside the loop body).
    whh = [r[...] for r in whh_refs]
    wih_hi = [wih_refs[l][...] for l in range(1, n)]
    bias_hi = [jnp.broadcast_to(b_refs[l][...], (batch, g4))
               for l in range(1, n)]

    def lstm_cell(gates, c_prev):
        i = jax.nn.sigmoid(gates[:, 0 * hidden:1 * hidden])
        f = jax.nn.sigmoid(gates[:, 1 * hidden:2 * hidden])
        g = jnp.tanh(gates[:, 2 * hidden:3 * hidden])
        o = jax.nn.sigmoid(gates[:, 3 * hidden:4 * hidden])
        c_new = f * c_prev + i * g
        h_new = o * jnp.tanh(c_new)
        return h_new, c_new

    def step(t, carry):
        row = t * batch                      # Bp-aligned row offset into xproj
        new_carry = []
        h_below = None
        for l in range(n):
            h_prev, c_prev = carry[l]
            if l == 0:
                gates = (xproj_sc[pl.ds(row, batch), :]
                         + jnp.dot(h_prev, whh[0],
                                   preferred_element_type=jnp.float32))
            else:
                gates = (jnp.dot(h_below, wih_hi[l - 1],
                                 preferred_element_type=jnp.float32)
                         + jnp.dot(h_prev, whh[l],
                                   preferred_element_type=jnp.float32)
                         + bias_hi[l - 1])
            h_new, c_new = lstm_cell(gates, c_prev)
            new_carry.append((h_new, c_new))
            h_below = h_new
        return tuple(new_carry)

    zeros = jnp.zeros((batch, hidden), jnp.float32)
    init = tuple((zeros, zeros) for _ in range(n))
    final = lax.fori_loop(0, seq_len, step, init, unroll=True)

    # Only the last timestep of the top layer is live: fuse the Linear here
    # and do a single lane-dense store.
    h_last = final[n - 1][0]
    o_ref[...] = (jnp.dot(h_last, wout_ref[...],
                          preferred_element_type=jnp.float32)
                  + bout_ref[...]).astype(o_ref.dtype)


# ----------------------------------------------------------------------------
# Full module forward
# ----------------------------------------------------------------------------
@jax.jit
def rnn_forward(x_btf, params):
    """x_btf: (B, T, INPUT_SIZE)  ->  (B, 13).  Same semantics as Rnn.forward."""
    B, T, F = x_btf.shape
    lstm = params["lstm"]
    num_layers = len(lstm)
    H = lstm[0][1].shape[0]

    # Pad batch to a sublane multiple so the (B, ...) tiles are not 2/8 full;
    # fold (T, Bp) into rows so the hoisted input projection has a tall LHS.
    Bp = _round_up(max(B, _SUBLANE), _SUBLANE)
    x = jnp.transpose(x_btf, (1, 0, 2))                    # (T, B, F) time-major
    x = jnp.pad(x, ((0, 0), (0, Bp - B), (0, 0)))          # (T, Bp, F)
    x2 = x.reshape(T * Bp, F)                              # (T*Bp, F)

    # Pad the Linear output to a full lane width -> unmasked stores.
    out_w = params["out_w"]                                # (H, 13)
    out_b = params["out_b"]                                # (1, 13)
    OUT = out_w.shape[1]
    OUTp = _round_up(max(OUT, _LANE), _LANE)
    w_out_p = jnp.pad(out_w, ((0, 0), (0, OUTp - OUT)))
    b_out_p = jnp.pad(out_b, ((0, 0), (0, OUTp - OUT)))

    inputs = [x2]
    in_specs = [pl.BlockSpec((T * Bp, F), lambda: (0, 0))]
    for (w_ih, w_hh, b) in lstm:
        inputs += [w_ih, w_hh, b]
        in_specs += [
            pl.BlockSpec(w_ih.shape, lambda: (0, 0)),
            pl.BlockSpec(w_hh.shape, lambda: (0, 0)),
            pl.BlockSpec(b.shape, lambda: (0, 0)),
        ]
    inputs += [w_out_p, b_out_p]
    in_specs += [
        pl.BlockSpec(w_out_p.shape, lambda: (0, 0)),
        pl.BlockSpec(b_out_p.shape, lambda: (0, 0)),
    ]

    kernel = functools.partial(_fused_rnn_kernel, seq_len=T, batch=Bp,
                               hidden=H, num_layers=num_layers)

    out_p = pl.pallas_call(
        kernel,
        out_shape=jax.ShapeDtypeStruct((Bp, OUTp), jnp.float32),
        in_specs=in_specs,
        out_specs=pl.BlockSpec((Bp, OUTp), lambda: (0, 0)),
        scratch_shapes=[pltpu.VMEM((T * Bp, 4 * H), jnp.float32)],
    )(*inputs)

    return out_p[:B, :OUT]


def init_params(key, input_size, hidden_size, num_layers):
    """Deterministic synthetic parameters matching nn.LSTM / nn.Linear shapes."""
    params = {"lstm": []}
    f_in = input_size
    for _ in range(num_layers):
        key, k1, k2, k3, k4 = jax.random.split(key, 5)
        scale = 1.0 / jnp.sqrt(hidden_size)
        # PyTorch stores (4H, F); we keep the transposed (F, 4H) for the kernel.
        w_ih = jax.random.uniform(k1, (f_in, 4 * hidden_size),
                                  minval=-scale, maxval=scale, dtype=jnp.float32)
        w_hh = jax.random.uniform(k2, (hidden_size, 4 * hidden_size),
                                  minval=-scale, maxval=scale, dtype=jnp.float32)
        b_ih = jax.random.uniform(k3, (4 * hidden_size,),
                                  minval=-scale, maxval=scale, dtype=jnp.float32)
        b_hh = jax.random.uniform(k4, (4 * hidden_size,),
                                  minval=-scale, maxval=scale, dtype=jnp.float32)
        params["lstm"].append((w_ih, w_hh, (b_ih + b_hh)[None, :]))
        f_in = hidden_size

    key, k5, k6 = jax.random.split(key, 3)
    # nn.Linear(128, 13): weight (13, 128), bias (13,); stored transposed.
    lin_scale = 1.0 / jnp.sqrt(128.0)
    params["out_w"] = jax.random.uniform(k5, (128, 13), minval=-lin_scale,
                                         maxval=lin_scale, dtype=jnp.float32)
    params["out_b"] = jax.random.uniform(k6, (1, 13), minval=-lin_scale,
                                         maxval=lin_scale, dtype=jnp.float32)
    return params


if __name__ == "__main__":
    # HIDDEN_SIZE must be 128 for the hardcoded Linear(128, 13), as in PyTorch.
    INPUT_SIZE, HIDDEN_SIZE, NUM_LAYERS = 32, 128, 2
    B, T = 2, 8

    key = jax.random.PRNGKey(0)
    key, kx = jax.random.split(key)
    x = jax.random.normal(kx, (B, T, INPUT_SIZE), dtype=jnp.float32)

    params = init_params(key, INPUT_SIZE, HIDDEN_SIZE, NUM_LAYERS)

    out = rnn_forward(x, params)
    jax.block_until_ready(out)
    assert out.shape == (B, 13), out.shape
    print("KERNEL_OK")
</pallas_src>

<mosaic_0001>
module attributes {stable_mosaic.version = 11 : i64} {
  func.func @_fused_rnn_kernel(%arg0: memref<64x32xf32, #tpu.memory_space<vmem>>, %arg1: memref<32x512xf32, #tpu.memory_space<vmem>>, %arg2: memref<128x512xf32, #tpu.memory_space<vmem>>, %arg3: memref<1x512xf32, #tpu.memory_space<vmem>>, %arg4: memref<128x512xf32, #tpu.memory_space<vmem>>, %arg5: memref<128x512xf32, #tpu.memory_space<vmem>>, %arg6: memref<1x512xf32, #tpu.memory_space<vmem>>, %arg7: memref<128x128xf32, #tpu.memory_space<vmem>>, %arg8: memref<1x128xf32, #tpu.memory_space<vmem>>, %arg9: memref<8x128xf32, #tpu.memory_space<vmem>>, %arg10: memref<64x512xf32, #tpu.memory_space<vmem>>) attributes {dimension_semantics = [], scalar_prefetch = 0 : i64, scratch_operands = 1 : i64, tpu.core_type = #tpu.core_type<tc>} {
    %c0 = arith.constant 0 : index
    %c0_0 = arith.constant 0 : index
    %0 = vector.load %arg0[%c0, %c0_0] : memref<64x32xf32, #tpu.memory_space<vmem>>, vector<64x32xf32>
    %c0_1 = arith.constant 0 : index
    %c0_2 = arith.constant 0 : index
    %1 = vector.load %arg1[%c0_1, %c0_2] : memref<32x512xf32, #tpu.memory_space<vmem>>, vector<32x512xf32>
    %cst = arith.constant dense<0.000000e+00> : vector<64x512xf32>
    %2 = tpu.matmul %0, %1, %cst {dimension_numbers = #tpu.dot_dimension_numbers<[1], [0], [0], [1], [0, 0, 1, 1], [], []>} : vector<64x32xf32>, vector<32x512xf32>, vector<64x512xf32> -> vector<64x512xf32>
    %c0_3 = arith.constant 0 : index
    %c0_4 = arith.constant 0 : index
    %3 = vector.load %arg3[%c0_3, %c0_4] : memref<1x512xf32, #tpu.memory_space<vmem>>, vector<1x512xf32>
    %4 = vector.broadcast %3 : vector<1x512xf32> to vector<64x512xf32>
    %5 = arith.addf %2, %4 : vector<64x512xf32>
    %c0_5 = arith.constant 0 : index
    %c0_6 = arith.constant 0 : index
    %6 = vector.load %arg10[%c0_5, %c0_6] : memref<64x512xf32, #tpu.memory_space<vmem>>, vector<64x512xf32>
    tpu.vector_store %arg10[%c0_5, %c0_6], %5 {strides = array<i32>} : memref<64x512xf32, #tpu.memory_space<vmem>>, vector<64x512xf32>,
    %c0_7 = arith.constant 0 : index
    %c0_8 = arith.constant 0 : index
    %7 = vector.load %arg2[%c0_7, %c0_8] : memref<128x512xf32, #tpu.memory_space<vmem>>, vector<128x512xf32>
    %c0_9 = arith.constant 0 : index
    %c0_10 = arith.constant 0 : index
    %8 = vector.load %arg5[%c0_9, %c0_10] : memref<128x512xf32, #tpu.memory_space<vmem>>, vector<128x512xf32>
    %c0_11 = arith.constant 0 : index
    %c0_12 = arith.constant 0 : index
    %9 = vector.load %arg4[%c0_11, %c0_12] : memref<128x512xf32, #tpu.memory_space<vmem>>, vector<128x512xf32>
    %c0_13 = arith.constant 0 : index
    %c0_14 = arith.constant 0 : index
    %10 = vector.load %arg6[%c0_13, %c0_14] : memref<1x512xf32, #tpu.memory_space<vmem>>, vector<1x512xf32>
    %11 = vector.shape_cast %10 : vector<1x512xf32> to vector<1x512xf32>
    %12 = vector.broadcast %11 : vector<1x512xf32> to vector<8x512xf32>
    %cst_15 = arith.constant 0.000000e+00 : f32
    %13 = vector.broadcast %cst_15 : f32 to vector<8x128xf32>
    %c0_i32 = arith.constant 0 : i32
    %c8_i32 = arith.constant 8 : i32
    %14 = arith.muli %c0_i32, %c8_i32 : i32
    %15 = arith.index_cast %14 : i32 to index
    %c0_16 = arith.constant 0 : index
    %16 = vector.load %arg10[%15, %c0_16] : memref<64x512xf32, #tpu.memory_space<vmem>>, vector<8x512xf32>
    %cst_17 = arith.constant dense<0.000000e+00> : vector<8x512xf32>
    %17 = tpu.matmul %13, %7, %cst_17 {dimension_numbers = #tpu.dot_dimension_numbers<[1], [0], [0], [1], [0, 0, 1, 1], [], []>} : vector<8x128xf32>, vector<128x512xf32>, vector<8x512xf32> -> vector<8x512xf32>
    %18 = arith.addf %16, %17 : vector<8x512xf32>
    %19 = vector.extract_strided_slice %18 {offsets = [0, 0], sizes = [8, 128], strides = [1, 1]} : vector<8x512xf32> to vector<8x128xf32>
    %20 = arith.negf %19 : vector<8x128xf32>
    %21 = math.exp %20 : vector<8x128xf32>
    %cst_18 = arith.constant 1.000000e+00 : f32
    %22 = vector.broadcast %cst_18 : f32 to vector<8x128xf32>
    %23 = arith.addf %22, %21 : vector<8x128xf32>
    %24 = arith.divf %22, %23 : vector<8x128xf32>
    %25 = vector.extract_strided_slice %18 {offsets = [0, 128], sizes = [8, 128], strides = [1, 1]} : vector<8x512xf32> to vector<8x128xf32>
    %26 = arith.negf %25 : vector<8x128xf32>
    %27 = math.exp %26 : vector<8x128xf32>
    %cst_19 = arith.constant 1.000000e+00 : f32
    %28 = vector.broadcast %cst_19 : f32 to vector<8x128xf32>
    %29 = arith.addf %28, %27 : vector<8x128xf32>
    %30 = arith.divf %28, %29 : vector<8x128xf32>
    %31 = vector.extract_strided_slice %18 {offsets = [0, 256], sizes = [8, 128], strides = [1, 1]} : vector<8x512xf32> to vector<8x128xf32>
    %32 = math.tanh %31 : vector<8x128xf32>
    %33 = vector.extract_strided_slice %18 {offsets = [0, 384], sizes = [8, 128], strides = [1, 1]} : vector<8x512xf32> to vector<8x128xf32>
    %34 = arith.negf %33 : vector<8x128xf32>
    %35 = math.exp %34 : vector<8x128xf32>
    %cst_20 = arith.constant 1.000000e+00 : f32
    %36 = vector.broadcast %cst_20 : f32 to vector<8x128xf32>
    %37 = arith.addf %36, %35 : vector<8x128xf32>
    %38 = arith.divf %36, %37 : vector<8x128xf32>
    %39 = arith.mulf %30, %13 : vector<8x128xf32>
    %40 = arith.mulf %24, %32 : vector<8x128xf32>
    %41 = arith.addf %39, %40 : vector<8x128xf32>
    %42 = math.tanh %41 : vector<8x128xf32>
    %43 = arith.mulf %38, %42 : vector<8x128xf32>
    %cst_21 = arith.constant dense<0.000000e+00> : vector<8x512xf32>
    %44 = tpu.matmul %43, %9, %cst_21 {dimension_numbers = #tpu.dot_dimension_numbers<[1], [0], [0], [1], [0, 0, 1, 1], [], []>} : vector<8x128xf32>, vector<128x512xf32>, vector<8x512xf32> -> vector<8x512xf32>
    %cst_22 = arith.constant dense<0.000000e+00> : vector<8x512xf32>
    %45 = tpu.matmul %13, %8, %cst_22 {dimension_numbers = #tpu.dot_dimension_numbers<[1], [0], [0], [1], [0, 0, 1, 1], [], []>} : vector<8x128xf32>, vector<128x512xf32>, vector<8x512xf32> -> vector<8x512xf32>
    %46 = arith.addf %44, %45 : vector<8x512xf32>
    %47 = arith.addf %46, %12 : vector<8x512xf32>
    %48 = vector.extract_strided_slice %47 {offsets = [0, 0], sizes = [8, 128], strides = [1, 1]} : vector<8x512xf32> to vector<8x128xf32>
    %49 = arith.negf %48 : vector<8x128xf32>
    %50 = math.exp %49 : vector<8x128xf32>
    %cst_23 = arith.constant 1.000000e+00 : f32
    %51 = vector.broadcast %cst_23 : f32 to vector<8x128xf32>
    %52 = arith.addf %51, %50 : vector<8x128xf32>
    %53 = arith.divf %51, %52 : vector<8x128xf32>
    %54 = vector.extract_strided_slice %47 {offsets = [0, 128], sizes = [8, 128], strides = [1, 1]} : vector<8x512xf32> to vector<8x128xf32>
    %55 = arith.negf %54 : vector<8x128xf32>
    %56 = math.exp %55 : vector<8x128xf32>
    %cst_24 = arith.constant 1.000000e+00 : f32
    %57 = vector.broadcast %cst_24 : f32 to vector<8x128xf32>
    %58 = arith.addf %57, %56 : vector<8x128xf32>
    %59 = arith.divf %57, %58 : vector<8x128xf32>
    %60 = vector.extract_strided_slice %47 {offsets = [0, 256], sizes = [8, 128], strides = [1, 1]} : vector<8x512xf32> to vector<8x128xf32>
    %61 = math.tanh %60 : vector<8x128xf32>
    %62 = vector.extract_strided_slice %47 {offsets = [0, 384], sizes = [8, 128], strides = [1, 1]} : vector<8x512xf32> to vector<8x128xf32>
    %63 = arith.negf %62 : vector<8x128xf32>
    %64 = math.exp %63 : vector<8x128xf32>
    %cst_25 = arith.constant 1.000000e+00 : f32
    %65 = vector.broadcast %cst_25 : f32 to vector<8x128xf32>
    %66 = arith.addf %65, %64 : vector<8x128xf32>
    %67 = arith.divf %65, %66 : vector<8x128xf32>
    %68 = arith.mulf %59, %13 : vector<8x128xf32>
    %69 = arith.mulf %53, %61 : vector<8x128xf32>
    %70 = arith.addf %68, %69 : vector<8x128xf32>
    %71 = math.tanh %70 : vector<8x128xf32>
    %72 = arith.mulf %67, %71 : vector<8x128xf32>
    %c1_i32 = arith.constant 1 : i32
    %c8_i32_26 = arith.constant 8 : i32
    %73 = arith.muli %c1_i32, %c8_i32_26 : i32
    %74 = arith.index_cast %73 : i32 to index
    %c0_27 = arith.constant 0 : index
    %75 = vector.load %arg10[%74, %c0_27] : memref<64x512xf32, #tpu.memory_space<vmem>>, vector<8x512xf32>
    %cst_28 = arith.constant dense<0.000000e+00> : vector<8x512xf32>
    %76 = tpu.matmul %43, %7, %cst_28 {dimension_numbers = #tpu.dot_dimension_numbers<[1], [0], [0], [1], [0, 0, 1, 1], [], []>} : vector<8x128xf32>, vector<128x512xf32>, vector<8x512xf32> -> vector<8x512xf32>
    %77 = arith.addf %75, %76 : vector<8x512xf32>
    %78 = vector.extract_strided_slice %77 {offsets = [0, 0], sizes = [8, 128], strides = [1, 1]} : vector<8x512xf32> to vector<8x128xf32>
    %79 = arith.negf %78 : vector<8x128xf32>
    %80 = math.exp %79 : vector<8x128xf32>
    %cst_29 = arith.constant 1.000000e+00 : f32
    %81 = vector.broadcast %cst_29 : f32 to vector<8x128xf32>
    %82 = arith.addf %81, %80 : vector<8x128xf32>
    %83 = arith.divf %81, %82 : vector<8x128xf32>
    %84 = vector.extract_strided_slice %77 {offsets = [0, 128], sizes = [8, 128], strides = [1, 1]} : vector<8x512xf32> to vector<8x128xf32>
    %85 = arith.negf %84 : vector<8x128xf32>
    %86 = math.exp %85 : vector<8x128xf32>
    %cst_30 = arith.constant 1.000000e+00 : f32
    %87 = vector.broadcast %cst_30 : f32 to vector<8x128xf32>
    %88 = arith.addf %87, %86 : vector<8x128xf32>
    %89 = arith.divf %87, %88 : vector<8x128xf32>
    %90 = vector.extract_strided_slice %77 {offsets = [0, 256], sizes = [8, 128], strides = [1, 1]} : vector<8x512xf32> to vector<8x128xf32>
    %91 = math.tanh %90 : vector<8x128xf32>
    %92 = vector.extract_strided_slice %77 {offsets = [0, 384], sizes = [8, 128], strides = [1, 1]} : vector<8x512xf32> to vector<8x128xf32>
    %93 = arith.negf %92 : vector<8x128xf32>
    %94 = math.exp %93 : vector<8x128xf32>
    %cst_31 = arith.constant 1.000000e+00 : f32
    %95 = vector.broadcast %cst_31 : f32 to vector<8x128xf32>
    %96 = arith.addf %95, %94 : vector<8x128xf32>
    %97 = arith.divf %95, %96 : vector<8x128xf32>
    %98 = arith.mulf %89, %41 : vector<8x128xf32>
    %99 = arith.mulf %83, %91 : vector<8x128xf32>
    %100 = arith.addf %98, %99 : vector<8x128xf32>
    %101 = math.tanh %100 : vector<8x128xf32>
    %102 = arith.mulf %97, %101 : vector<8x128xf32>
    %cst_32 = arith.constant dense<0.000000e+00> : vector<8x512xf32>
    %103 = tpu.matmul %102, %9, %cst_32 {dimension_numbers = #tpu.dot_dimension_numbers<[1], [0], [0], [1], [0, 0, 1, 1], [], []>} : vector<8x128xf32>, vector<128x512xf32>, vector<8x512xf32> -> vector<8x512xf32>
    %cst_33 = arith.constant dense<0.000000e+00> : vector<8x512xf32>
    %104 = tpu.matmul %72, %8, %cst_33 {dimension_numbers = #tpu.dot_dimension_numbers<[1], [0], [0], [1], [0, 0, 1, 1], [], []>} : vector<8x128xf32>, vector<128x512xf32>, vector<8x512xf32> -> vector<8x512xf32>
    %105 = arith.addf %103, %104 : vector<8x512xf32>
    %106 = arith.addf %105, %12 : vector<8x512xf32>
    %107 = vector.extract_strided_slice %106 {offsets = [0, 0], sizes = [8, 128], strides = [1, 1]} : vector<8x512xf32> to vector<8x128xf32>
    %108 = arith.negf %107 : vector<8x128xf32>
    %109 = math.exp %108 : vector<8x128xf32>
    %cst_34 = arith.constant 1.000000e+00 : f32
    %110 = vector.broadcast %cst_34 : f32 to vector<8x128xf32>
    %111 = arith.addf %110, %109 : vector<8x128xf32>
    %112 = arith.divf %110, %111 : vector<8x128xf32>
    %113 = vector.extract_strided_slice %106 {offsets = [0, 128], sizes = [8, 128], strides = [1, 1]} : vector<8x512xf32> to vector<8x128xf32>
    %114 = arith.negf %113 : vector<8x128xf32>
    %115 = math.exp %114 : vector<8x128xf32>
    %cst_35 = arith.constant 1.000000e+00 : f32
    %116 = vector.broadcast %cst_35 : f32 to vector<8x128xf32>
    %117 = arith.addf %116, %115 : vector<8x128xf32>
    %118 = arith.divf %116, %117 : vector<8x128xf32>
    %119 = vector.extract_strided_slice %106 {offsets = [0, 256], sizes = [8, 128], strides = [1, 1]} : vector<8x512xf32> to vector<8x128xf32>
    %120 = math.tanh %119 : vector<8x128xf32>
    %121 = vector.extract_strided_slice %106 {offsets = [0, 384], sizes = [8, 128], strides = [1, 1]} : vector<8x512xf32> to vector<8x128xf32>
    %122 = arith.negf %121 : vector<8x128xf32>
    %123 = math.exp %122 : vector<8x128xf32>
    %cst_36 = arith.constant 1.000000e+00 : f32
    %124 = vector.broadcast %cst_36 : f32 to vector<8x128xf32>
    %125 = arith.addf %124, %123 : vector<8x128xf32>
    %126 = arith.divf %124, %125 : vector<8x128xf32>
    %127 = arith.mulf %118, %70 : vector<8x128xf32>
    %128 = arith.mulf %112, %120 : vector<8x128xf32>
    %129 = arith.addf %127, %128 : vector<8x128xf32>
    %130 = math.tanh %129 : vector<8x128xf32>
    %131 = arith.mulf %126, %130 : vector<8x128xf32>
    %c2_i32 = arith.constant 2 : i32
    %c8_i32_37 = arith.constant 8 : i32
    %132 = arith.muli %c2_i32, %c8_i32_37 : i32
    %133 = arith.index_cast %132 : i32 to index
    %c0_38 = arith.constant 0 : index
    %134 = vector.load %arg10[%133, %c0_38] : memref<64x512xf32, #tpu.memory_space<vmem>>, vector<8x512xf32>
    %cst_39 = arith.constant dense<0.000000e+00> : vector<8x512xf32>
    %135 = tpu.matmul %102, %7, %cst_39 {dimension_numbers = #tpu.dot_dimension_numbers<[1], [0], [0], [1], [0, 0, 1, 1], [], []>} : vector<8x128xf32>, vector<128x512xf32>, vector<8x512xf32> -> vector<8x512xf32>
    %136 = arith.addf %134, %135 : vector<8x512xf32>
    %137 = vector.extract_strided_slice %136 {offsets = [0, 0], sizes = [8, 128], strides = [1, 1]} : vector<8x512xf32> to vector<8x128xf32>
    %138 = arith.negf %137 : vector<8x128xf32>
    %139 = math.exp %138 : vector<8x128xf32>
    %cst_40 = arith.constant 1.000000e+00 : f32
    %140 = vector.broadcast %cst_40 : f32 to vector<8x128xf32>
    %141 = arith.addf %140, %139 : vector<8x128xf32>
    %142 = arith.divf %140, %141 : vector<8x128xf32>
    %143 = vector.extract_strided_slice %136 {offsets = [0, 128], sizes = [8, 128], strides = [1, 1]} : vector<8x512xf32> to vector<8x128xf32>
    %144 = arith.negf %143 : vector<8x128xf32>
    %145 = math.exp %144 : vector<8x128xf32>
    %cst_41 = arith.constant 1.000000e+00 : f32
    %146 = vector.broadcast %cst_41 : f32 to vector<8x128xf32>
    %147 = arith.addf %146, %145 : vector<8x128xf32>
    %148 = arith.divf %146, %147 : vector<8x128xf32>
    %149 = vector.extract_strided_slice %136 {offsets = [0, 256], sizes = [8, 128], strides = [1, 1]} : vector<8x512xf32> to vector<8x128xf32>
    %150 = math.tanh %149 : vector<8x128xf32>
    %151 = vector.extract_strided_slice %136 {offsets = [0, 384], sizes = [8, 128], strides = [1, 1]} : vector<8x512xf32> to vector<8x128xf32>
    %152 = arith.negf %151 : vector<8x128xf32>
    %153 = math.exp %152 : vector<8x128xf32>
    %cst_42 = arith.constant 1.000000e+00 : f32
    %154 = vector.broadcast %cst_42 : f32 to vector<8x128xf32>
    %155 = arith.addf %154, %153 : vector<8x128xf32>
    %156 = arith.divf %154, %155 : vector<8x128xf32>
    %157 = arith.mulf %148, %100 : vector<8x128xf32>
    %158 = arith.mulf %142, %150 : vector<8x128xf32>
    %159 = arith.addf %157, %158 : vector<8x128xf32>
    %160 = math.tanh %159 : vector<8x128xf32>
    %161 = arith.mulf %156, %160 : vector<8x128xf32>
    %cst_43 = arith.constant dense<0.000000e+00> : vector<8x512xf32>
    %162 = tpu.matmul %161, %9, %cst_43 {dimension_numbers = #tpu.dot_dimension_numbers<[1], [0], [0], [1], [0, 0, 1, 1], [], []>} : vector<8x128xf32>, vector<128x512xf32>, vector<8x512xf32> -> vector<8x512xf32>
    %cst_44 = arith.constant dense<0.000000e+00> : vector<8x512xf32>
    %163 = tpu.matmul %131, %8, %cst_44 {dimension_numbers = #tpu.dot_dimension_numbers<[1], [0], [0], [1], [0, 0, 1, 1], [], []>} : vector<8x128xf32>, vector<128x512xf32>, vector<8x512xf32> -> vector<8x512xf32>
    %164 = arith.addf %162, %163 : vector<8x512xf32>
    %165 = arith.addf %164, %12 : vector<8x512xf32>
    %166 = vector.extract_strided_slice %165 {offsets = [0, 0], sizes = [8, 128], strides = [1, 1]} : vector<8x512xf32> to vector<8x128xf32>
    %167 = arith.negf %166 : vector<8x128xf32>
    %168 = math.exp %167 : vector<8x128xf32>
    %cst_45 = arith.constant 1.000000e+00 : f32
    %169 = vector.broadcast %cst_45 : f32 to vector<8x128xf32>
    %170 = arith.addf %169, %168 : vector<8x128xf32>
    %171 = arith.divf %169, %170 : vector<8x128xf32>
    %172 = vector.extract_strided_slice %165 {offsets = [0, 128], sizes = [8, 128], strides = [1, 1]} : vector<8x512xf32> to vector<8x128xf32>
    %173 = arith.negf %172 : vector<8x128xf32>
    %174 = math.exp %173 : vector<8x128xf32>
    %cst_46 = arith.constant 1.000000e+00 : f32
    %175 = vector.broadcast %cst_46 : f32 to vector<8x128xf32>
    %176 = arith.addf %175, %174 : vector<8x128xf32>
    %177 = arith.divf %175, %176 : vector<8x128xf32>
    %178 = vector.extract_strided_slice %165 {offsets = [0, 256], sizes = [8, 128], strides = [1, 1]} : vector<8x512xf32> to vector<8x128xf32>
    %179 = math.tanh %178 : vector<8x128xf32>
    %180 = vector.extract_strided_slice %165 {offsets = [0, 384], sizes = [8, 128], strides = [1, 1]} : vector<8x512xf32> to vector<8x128xf32>
    %181 = arith.negf %180 : vector<8x128xf32>
    %182 = math.exp %181 : vector<8x128xf32>
    %cst_47 = arith.constant 1.000000e+00 : f32
    %183 = vector.broadcast %cst_47 : f32 to vector<8x128xf32>
    %184 = arith.addf %183, %182 : vector<8x128xf32>
    %185 = arith.divf %183, %184 : vector<8x128xf32>
    %186 = arith.mulf %177, %129 : vector<8x128xf32>
    %187 = arith.mulf %171, %179 : vector<8x128xf32>
    %188 = arith.addf %186, %187 : vector<8x128xf32>
    %189 = math.tanh %188 : vector<8x128xf32>
    %190 = arith.mulf %185, %189 : vector<8x128xf32>
    %c3_i32 = arith.constant 3 : i32
    %c8_i32_48 = arith.constant 8 : i32
    %191 = arith.muli %c3_i32, %c8_i32_48 : i32
    %192 = arith.index_cast %191 : i32 to index
    %c0_49 = arith.constant 0 : index
    %193 = vector.load %arg10[%192, %c0_49] : memref<64x512xf32, #tpu.memory_space<vmem>>, vector<8x512xf32>
    %cst_50 = arith.constant dense<0.000000e+00> : vector<8x512xf32>
    %194 = tpu.matmul %161, %7, %cst_50 {dimension_numbers = #tpu.dot_dimension_numbers<[1], [0], [0], [1], [0, 0, 1, 1], [], []>} : vector<8x128xf32>, vector<128x512xf32>, vector<8x512xf32> -> vector<8x512xf32>
    %195 = arith.addf %193, %194 : vector<8x512xf32>
    %196 = vector.extract_strided_slice %195 {offsets = [0, 0], sizes = [8, 128], strides = [1, 1]} : vector<8x512xf32> to vector<8x128xf32>
    %197 = arith.negf %196 : vector<8x128xf32>
    %198 = math.exp %197 : vector<8x128xf32>
    %cst_51 = arith.constant 1.000000e+00 : f32
    %199 = vector.broadcast %cst_51 : f32 to vector<8x128xf32>
    %200 = arith.addf %199, %198 : vector<8x128xf32>
    %201 = arith.divf %199, %200 : vector<8x128xf32>
    %202 = vector.extract_strided_slice %195 {offsets = [0, 128], sizes = [8, 128], strides = [1, 1]} : vector<8x512xf32> to vector<8x128xf32>
    %203 = arith.negf %202 : vector<8x128xf32>
    %204 = math.exp %203 : vector<8x128xf32>
    %cst_52 = arith.constant 1.000000e+00 : f32
    %205 = vector.broadcast %cst_52 : f32 to vector<8x128xf32>
    %206 = arith.addf %205, %204 : vector<8x128xf32>
    %207 = arith.divf %205, %206 : vector<8x128xf32>
    %208 = vector.extract_strided_slice %195 {offsets = [0, 256], sizes = [8, 128], strides = [1, 1]} : vector<8x512xf32> to vector<8x128xf32>
    %209 = math.tanh %208 : vector<8x128xf32>
    %210 = vector.extract_strided_slice %195 {offsets = [0, 384], sizes = [8, 128], strides = [1, 1]} : vector<8x512xf32> to vector<8x128xf32>
    %211 = arith.negf %210 : vector<8x128xf32>
    %212 = math.exp %211 : vector<8x128xf32>
    %cst_53 = arith.constant 1.000000e+00 : f32
    %213 = vector.broadcast %cst_53 : f32 to vector<8x128xf32>
    %214 = arith.addf %213, %212 : vector<8x128xf32>
    %215 = arith.divf %213, %214 : vector<8x128xf32>
    %216 = arith.mulf %207, %159 : vector<8x128xf32>
    %217 = arith.mulf %201, %209 : vector<8x128xf32>
    %218 = arith.addf %216, %217 : vector<8x128xf32>
    %219 = math.tanh %218 : vector<8x128xf32>
    %220 = arith.mulf %215, %219 : vector<8x128xf32>
    %cst_54 = arith.constant dense<0.000000e+00> : vector<8x512xf32>
    %221 = tpu.matmul %220, %9, %cst_54 {dimension_numbers = #tpu.dot_dimension_numbers<[1], [0], [0], [1], [0, 0, 1, 1], [], []>} : vector<8x128xf32>, vector<128x512xf32>, vector<8x512xf32> -> vector<8x512xf32>
    %cst_55 = arith.constant dense<0.000000e+00> : vector<8x512xf32>
    %222 = tpu.matmul %190, %8, %cst_55 {dimension_numbers = #tpu.dot_dimension_numbers<[1], [0], [0], [1], [0, 0, 1, 1], [], []>} : vector<8x128xf32>, vector<128x512xf32>, vector<8x512xf32> -> vector<8x512xf32>
    %223 = arith.addf %221, %222 : vector<8x512xf32>
    %224 = arith.addf %223, %12 : vector<8x512xf32>
    %225 = vector.extract_strided_slice %224 {offsets = [0, 0], sizes = [8, 128], strides = [1, 1]} : vector<8x512xf32> to vector<8x128xf32>
    %226 = arith.negf %225 : vector<8x128xf32>
    %227 = math.exp %226 : vector<8x128xf32>
    %cst_56 = arith.constant 1.000000e+00 : f32
    %228 = vector.broadcast %cst_56 : f32 to vector<8x128xf32>
    %229 = arith.addf %228, %227 : vector<8x128xf32>
    %230 = arith.divf %228, %229 : vector<8x128xf32>
    %231 = vector.extract_strided_slice %224 {offsets = [0, 128], sizes = [8, 128], strides = [1, 1]} : vector<8x512xf32> to vector<8x128xf32>
    %232 = arith.negf %231 : vector<8x128xf32>
    %233 = math.exp %232 : vector<8x128xf32>
    %cst_57 = arith.constant 1.000000e+00 : f32
    %234 = vector.broadcast %cst_57 : f32 to vector<8x128xf32>
    %235 = arith.addf %234, %233 : vector<8x128xf32>
    %236 = arith.divf %234, %235 : vector<8x128xf32>
    %237 = vector.extract_strided_slice %224 {offsets = [0, 256], sizes = [8, 128], strides = [1, 1]} : vector<8x512xf32> to vector<8x128xf32>
    %238 = math.tanh %237 : vector<8x128xf32>
    %239 = vector.extract_strided_slice %224 {offsets = [0, 384], sizes = [8, 128], strides = [1, 1]} : vector<8x512xf32> to vector<8x128xf32>
    %240 = arith.negf %239 : vector<8x128xf32>
    %241 = math.exp %240 : vector<8x128xf32>
    %cst_58 = arith.constant 1.000000e+00 : f32
    %242 = vector.broadcast %cst_58 : f32 to vector<8x128xf32>
    %243 = arith.addf %242, %241 : vector<8x128xf32>
    %244 = arith.divf %242, %243 : vector<8x128xf32>
    %245 = arith.mulf %236, %188 : vector<8x128xf32>
    %246 = arith.mulf %230, %238 : vector<8x128xf32>
    %247 = arith.addf %245, %246 : vector<8x128xf32>
    %248 = math.tanh %247 : vector<8x128xf32>
    %249 = arith.mulf %244, %248 : vector<8x128xf32>
    %c4_i32 = arith.constant 4 : i32
    %c8_i32_59 = arith.constant 8 : i32
    %250 = arith.muli %c4_i32, %c8_i32_59 : i32
    %251 = arith.index_cast %250 : i32 to index
    %c0_60 = arith.constant 0 : index
    %252 = vector.load %arg10[%251, %c0_60] : memref<64x512xf32, #tpu.memory_space<vmem>>, vector<8x512xf32>
    %cst_61 = arith.constant dense<0.000000e+00> : vector<8x512xf32>
    %253 = tpu.matmul %220, %7, %cst_61 {dimension_numbers = #tpu.dot_dimension_numbers<[1], [0], [0], [1], [0, 0, 1, 1], [], []>} : vector<8x128xf32>, vector<128x512xf32>, vector<8x512xf32> -> vector<8x512xf32>
    %254 = arith.addf %252, %253 : vector<8x512xf32>
    %255 = vector.extract_strided_slice %254 {offsets = [0, 0], sizes = [8, 128], strides = [1, 1]} : vector<8x512xf32> to vector<8x128xf32>
    %256 = arith.negf %255 : vector<8x128xf32>
    %257 = math.exp %256 : vector<8x128xf32>
    %cst_62 = arith.constant 1.000000e+00 : f32
    %258 = vector.broadcast %cst_62 : f32 to vector<8x128xf32>
    %259 = arith.addf %258, %257 : vector<8x128xf32>
    %260 = arith.divf %258, %259 : vector<8x128xf32>
    %261 = vector.extract_strided_slice %254 {offsets = [0, 128], sizes = [8, 128], strides = [1, 1]} : vector<8x512xf32> to vector<8x128xf32>
    %262 = arith.negf %261 : vector<8x128xf32>
    %263 = math.exp %262 : vector<8x128xf32>
    %cst_63 = arith.constant 1.000000e+00 : f32
    %264 = vector.broadcast %cst_63 : f32 to vector<8x128xf32>
    %265 = arith.addf %264, %263 : vector<8x128xf32>
    %266 = arith.divf %264, %265 : vector<8x128xf32>
    %267 = vector.extract_strided_slice %254 {offsets = [0, 256], sizes = [8, 128], strides = [1, 1]} : vector<8x512xf32> to vector<8x128xf32>
    %268 = math.tanh %267 : vector<8x128xf32>
    %269 = vector.extract_strided_slice %254 {offsets = [0, 384], sizes = [8, 128], strides = [1, 1]} : vector<8x512xf32> to vector<8x128xf32>
    %270 = arith.negf %269 : vector<8x128xf32>
    %271 = math.exp %270 : vector<8x128xf32>
    %cst_64 = arith.constant 1.000000e+00 : f32
    %272 = vector.broadcast %cst_64 : f32 to vector<8x128xf32>
    %273 = arith.addf %272, %271 : vector<8x128xf32>
    %274 = arith.divf %272, %273 : vector<8x128xf32>
    %275 = arith.mulf %266, %218 : vector<8x128xf32>
    %276 = arith.mulf %260, %268 : vector<8x128xf32>
    %277 = arith.addf %275, %276 : vector<8x128xf32>
    %278 = math.tanh %277 : vector<8x128xf32>
    %279 = arith.mulf %274, %278 : vector<8x128xf32>
    %cst_65 = arith.constant dense<0.000000e+00> : vector<8x512xf32>
    %280 = tpu.matmul %279, %9, %cst_65 {dimension_numbers = #tpu.dot_dimension_numbers<[1], [0], [0], [1], [0, 0, 1, 1], [], []>} : vector<8x128xf32>, vector<128x512xf32>, vector<8x512xf32> -> vector<8x512xf32>
    %cst_66 = arith.constant dense<0.000000e+00> : vector<8x512xf32>
    %281 = tpu.matmul %249, %8, %cst_66 {dimension_numbers = #tpu.dot_dimension_numbers<[1], [0], [0], [1], [0, 0, 1, 1], [], []>} : vector<8x128xf32>, vector<128x512xf32>, vector<8x512xf32> -> vector<8x512xf32>
    %282 = arith.addf %280, %281 : vector<8x512xf32>
    %283 = arith.addf %282, %12 : vector<8x512xf32>
    %284 = vector.extract_strided_slice %283 {offsets = [0, 0], sizes = [8, 128], strides = [1, 1]} : vector<8x512xf32> to vector<8x128xf32>
    %285 = arith.negf %284 : vector<8x128xf32>
    %286 = math.exp %285 : vector<8x128xf32>
    %cst_67 = arith.constant 1.000000e+00 : f32
    %287 = vector.broadcast %cst_67 : f32 to vector<8x128xf32>
    %288 = arith.addf %287, %286 : vector<8x128xf32>
    %289 = arith.divf %287, %288 : vector<8x128xf32>
    %290 = vector.extract_strided_slice %283 {offsets = [0, 128], sizes = [8, 128], strides = [1, 1]} : vector<8x512xf32> to vector<8x128xf32>
    %291 = arith.negf %290 : vector<8x128xf32>
    %292 = math.exp %291 : vector<8x128xf32>
    %cst_68 = arith.constant 1.000000e+00 : f32
    %293 = vector.broadcast %cst_68 : f32 to vector<8x128xf32>
    %294 = arith.addf %293, %292 : vector<8x128xf32>
    %295 = arith.divf %293, %294 : vector<8x128xf32>
    %296 = vector.extract_strided_slice %283 {offsets = [0, 256], sizes = [8, 128], strides = [1, 1]} : vector<8x512xf32> to vector<8x128xf32>
    %297 = math.tanh %296 : vector<8x128xf32>
    %298 = vector.extract_strided_slice %283 {offsets = [0, 384], sizes = [8, 128], strides = [1, 1]} : vector<8x512xf32> to vector<8x128xf32>
    %299 = arith.negf %298 : vector<8x128xf32>
    %300 = math.exp %299 : vector<8x128xf32>
    %cst_69 = arith.constant 1.000000e+00 : f32
    %301 = vector.broadcast %cst_69 : f32 to vector<8x128xf32>
    %302 = arith.addf %301, %300 : vector<8x128xf32>
    %303 = arith.divf %301, %302 : vector<8x128xf32>
    %304 = arith.mulf %295, %247 : vector<8x128xf32>
    %305 = arith.mulf %289, %297 : vector<8x128xf32>
    %306 = arith.addf %304, %305 : vector<8x128xf32>
    %307 = math.tanh %306 : vector<8x128xf32>
    %308 = arith.mulf %303, %307 : vector<8x128xf32>
    %c5_i32 = arith.constant 5 : i32
    %c8_i32_70 = arith.constant 8 : i32
    %309 = arith.muli %c5_i32, %c8_i32_70 : i32
    %310 = arith.index_cast %309 : i32 to index
    %c0_71 = arith.constant 0 : index
    %311 = vector.load %arg10[%310, %c0_71] : memref<64x512xf32, #tpu.memory_space<vmem>>, vector<8x512xf32>
    %cst_72 = arith.constant dense<0.000000e+00> : vector<8x512xf32>
    %312 = tpu.matmul %279, %7, %cst_72 {dimension_numbers = #tpu.dot_dimension_numbers<[1], [0], [0], [1], [0, 0, 1, 1], [], []>} : vector<8x128xf32>, vector<128x512xf32>, vector<8x512xf32> -> vector<8x512xf32>
    %313 = arith.addf %311, %312 : vector<8x512xf32>
    %314 = vector.extract_strided_slice %313 {offsets = [0, 0], sizes = [8, 128], strides = [1, 1]} : vector<8x512xf32> to vector<8x128xf32>
    %315 = arith.negf %314 : vector<8x128xf32>
    %316 = math.exp %315 : vector<8x128xf32>
    %cst_73 = arith.constant 1.000000e+00 : f32
    %317 = vector.broadcast %cst_73 : f32 to vector<8x128xf32>
    %318 = arith.addf %317, %316 : vector<8x128xf32>
    %319 = arith.divf %317, %318 : vector<8x128xf32>
    %320 = vector.extract_strided_slice %313 {offsets = [0, 128], sizes = [8, 128], strides = [1, 1]} : vector<8x512xf32> to vector<8x128xf32>
    %321 = arith.negf %320 : vector<8x128xf32>
    %322 = math.exp %321 : vector<8x128xf32>
    %cst_74 = arith.constant 1.000000e+00 : f32
    %323 = vector.broadcast %cst_74 : f32 to vector<8x128xf32>
    %324 = arith.addf %323, %322 : vector<8x128xf32>
    %325 = arith.divf %323, %324 : vector<8x128xf32>
    %326 = vector.extract_strided_slice %313 {offsets = [0, 256], sizes = [8, 128], strides = [1, 1]} : vector<8x512xf32> to vector<8x128xf32>
    %327 = math.tanh %326 : vector<8x128xf32>
    %328 = vector.extract_strided_slice %313 {offsets = [0, 384], sizes = [8, 128], strides = [1, 1]} : vector<8x512xf32> to vector<8x128xf32>
    %329 = arith.negf %328 : vector<8x128xf32>
    %330 = math.exp %329 : vector<8x128xf32>
    %cst_75 = arith.constant 1.000000e+00 : f32
    %331 = vector.broadcast %cst_75 : f32 to vector<8x128xf32>
    %332 = arith.addf %331, %330 : vector<8x128xf32>
    %333 = arith.divf %331, %332 : vector<8x128xf32>
    %334 = arith.mulf %325, %277 : vector<8x128xf32>
    %335 = arith.mulf %319, %327 : vector<8x128xf32>
    %336 = arith.addf %334, %335 : vector<8x128xf32>
    %337 = math.tanh %336 : vector<8x128xf32>
    %338 = arith.mulf %333, %337 : vector<8x128xf32>
    %cst_76 = arith.constant dense<0.000000e+00> : vector<8x512xf32>
    %339 = tpu.matmul %338, %9, %cst_76 {dimension_numbers = #tpu.dot_dimension_numbers<[1], [0], [0], [1], [0, 0, 1, 1], [], []>} : vector<8x128xf32>, vector<128x512xf32>, vector<8x512xf32> -> vector<8x512xf32>
    %cst_77 = arith.constant dense<0.000000e+00> : vector<8x512xf32>
    %340 = tpu.matmul %308, %8, %cst_77 {dimension_numbers = #tpu.dot_dimension_numbers<[1], [0], [0], [1], [0, 0, 1, 1], [], []>} : vector<8x128xf32>, vector<128x512xf32>, vector<8x512xf32> -> vector<8x512xf32>
    %341 = arith.addf %339, %340 : vector<8x512xf32>
    %342 = arith.addf %341, %12 : vector<8x512xf32>
    %343 = vector.extract_strided_slice %342 {offsets = [0, 0], sizes = [8, 128], strides = [1, 1]} : vector<8x512xf32> to vector<8x128xf32>
    %344 = arith.negf %343 : vector<8x128xf32>
    %345 = math.exp %344 : vector<8x128xf32>
    %cst_78 = arith.constant 1.000000e+00 : f32
    %346 = vector.broadcast %cst_78 : f32 to vector<8x128xf32>
    %347 = arith.addf %346, %345 : vector<8x128xf32>
    %348 = arith.divf %346, %347 : vector<8x128xf32>
    %349 = vector.extract_strided_slice %342 {offsets = [0, 128], sizes = [8, 128], strides = [1, 1]} : vector<8x512xf32> to vector<8x128xf32>
    %350 = arith.negf %349 : vector<8x128xf32>
    %351 = math.exp %350 : vector<8x128xf32>
    %cst_79 = arith.constant 1.000000e+00 : f32
    %352 = vector.broadcast %cst_79 : f32 to vector<8x128xf32>
    %353 = arith.addf %352, %351 : vector<8x128xf32>
    %354 = arith.divf %352, %353 : vector<8x128xf32>
    %355 = vector.extract_strided_slice %342 {offsets = [0, 256], sizes = [8, 128], strides = [1, 1]} : vector<8x512xf32> to vector<8x128xf32>
    %356 = math.tanh %355 : vector<8x128xf32>
    %357 = vector.extract_strided_slice %342 {offsets = [0, 384], sizes = [8, 128], strides = [1, 1]} : vector<8x512xf32> to vector<8x128xf32>
    %358 = arith.negf %357 : vector<8x128xf32>
    %359 = math.exp %358 : vector<8x128xf32>
    %cst_80 = arith.constant 1.000000e+00 : f32
    %360 = vector.broadcast %cst_80 : f32 to vector<8x128xf32>
    %361 = arith.addf %360, %359 : vector<8x128xf32>
    %362 = arith.divf %360, %361 : vector<8x128xf32>
    %363 = arith.mulf %354, %306 : vector<8x128xf32>
    %364 = arith.mulf %348, %356 : vector<8x128xf32>
    %365 = arith.addf %363, %364 : vector<8x128xf32>
    %366 = math.tanh %365 : vector<8x128xf32>
    %367 = arith.mulf %362, %366 : vector<8x128xf32>
    %c6_i32 = arith.constant 6 : i32
    %c8_i32_81 = arith.constant 8 : i32
    %368 = arith.muli %c6_i32, %c8_i32_81 : i32
    %369 = arith.index_cast %368 : i32 to index
    %c0_82 = arith.constant 0 : index
    %370 = vector.load %arg10[%369, %c0_82] : memref<64x512xf32, #tpu.memory_space<vmem>>, vector<8x512xf32>
    %cst_83 = arith.constant dense<0.000000e+00> : vector<8x512xf32>
    %371 = tpu.matmul %338, %7, %cst_83 {dimension_numbers = #tpu.dot_dimension_numbers<[1], [0], [0], [1], [0, 0, 1, 1], [], []>} : vector<8x128xf32>, vector<128x512xf32>, vector<8x512xf32> -> vector<8x512xf32>
    %372 = arith.addf %370, %371 : vector<8x512xf32>
    %373 = vector.extract_strided_slice %372 {offsets = [0, 0], sizes = [8, 128], strides = [1, 1]} : vector<8x512xf32> to vector<8x128xf32>
    %374 = arith.negf %373 : vector<8x128xf32>
    %375 = math.exp %374 : vector<8x128xf32>
    %cst_84 = arith.constant 1.000000e+00 : f32
    %376 = vector.broadcast %cst_84 : f32 to vector<8x128xf32>
    %377 = arith.addf %376, %375 : vector<8x128xf32>
    %378 = arith.divf %376, %377 : vector<8x128xf32>
    %379 = vector.extract_strided_slice %372 {offsets = [0, 128], sizes = [8, 128], strides = [1, 1]} : vector<8x512xf32> to vector<8x128xf32>
    %380 = arith.negf %379 : vector<8x128xf32>
    %381 = math.exp %380 : vector<8x128xf32>
    %cst_85 = arith.constant 1.000000e+00 : f32
    %382 = vector.broadcast %cst_85 : f32 to vector<8x128xf32>
    %383 = arith.addf %382, %381 : vector<8x128xf32>
    %384 = arith.divf %382, %383 : vector<8x128xf32>
    %385 = vector.extract_strided_slice %372 {offsets = [0, 256], sizes = [8, 128], strides = [1, 1]} : vector<8x512xf32> to vector<8x128xf32>
    %386 = math.tanh %385 : vector<8x128xf32>
    %387 = vector.extract_strided_slice %372 {offsets = [0, 384], sizes = [8, 128], strides = [1, 1]} : vector<8x512xf32> to vector<8x128xf32>
    %388 = arith.negf %387 : vector<8x128xf32>
    %389 = math.exp %388 : vector<8x128xf32>
    %cst_86 = arith.constant 1.000000e+00 : f32
    %390 = vector.broadcast %cst_86 : f32 to vector<8x128xf32>
    %391 = arith.addf %390, %389 : vector<8x128xf32>
    %392 = arith.divf %390, %391 : vector<8x128xf32>
    %393 = arith.mulf %384, %336 : vector<8x128xf32>
    %394 = arith.mulf %378, %386 : vector<8x128xf32>
    %395 = arith.addf %393, %394 : vector<8x128xf32>
    %396 = math.tanh %395 : vector<8x128xf32>
    %397 = arith.mulf %392, %396 : vector<8x128xf32>
    %cst_87 = arith.constant dense<0.000000e+00> : vector<8x512xf32>
    %398 = tpu.matmul %397, %9, %cst_87 {dimension_numbers = #tpu.dot_dimension_numbers<[1], [0], [0], [1], [0, 0, 1, 1], [], []>} : vector<8x128xf32>, vector<128x512xf32>, vector<8x512xf32> -> vector<8x512xf32>
    %cst_88 = arith.constant dense<0.000000e+00> : vector<8x512xf32>
    %399 = tpu.matmul %367, %8, %cst_88 {dimension_numbers = #tpu.dot_dimension_numbers<[1], [0], [0], [1], [0, 0, 1, 1], [], []>} : vector<8x128xf32>, vector<128x512xf32>, vector<8x512xf32> -> vector<8x512xf32>
    %400 = arith.addf %398, %399 : vector<8x512xf32>
    %401 = arith.addf %400, %12 : vector<8x512xf32>
    %402 = vector.extract_strided_slice %401 {offsets = [0, 0], sizes = [8, 128], strides = [1, 1]} : vector<8x512xf32> to vector<8x128xf32>
    %403 = arith.negf %402 : vector<8x128xf32>
    %404 = math.exp %403 : vector<8x128xf32>
    %cst_89 = arith.constant 1.000000e+00 : f32
    %405 = vector.broadcast %cst_89 : f32 to vector<8x128xf32>
    %406 = arith.addf %405, %404 : vector<8x128xf32>
    %407 = arith.divf %405, %406 : vector<8x128xf32>
    %408 = vector.extract_strided_slice %401 {offsets = [0, 128], sizes = [8, 128], strides = [1, 1]} : vector<8x512xf32> to vector<8x128xf32>
    %409 = arith.negf %408 : vector<8x128xf32>
    %410 = math.exp %409 : vector<8x128xf32>
    %cst_90 = arith.constant 1.000000e+00 : f32
    %411 = vector.broadcast %cst_90 : f32 to vector<8x128xf32>
    %412 = arith.addf %411, %410 : vector<8x128xf32>
    %413 = arith.divf %411, %412 : vector<8x128xf32>
    %414 = vector.extract_strided_slice %401 {offsets = [0, 256], sizes = [8, 128], strides = [1, 1]} : vector<8x512xf32> to vector<8x128xf32>
    %415 = math.tanh %414 : vector<8x128xf32>
    %416 = vector.extract_strided_slice %401 {offsets = [0, 384], sizes = [8, 128], strides = [1, 1]} : vector<8x512xf32> to vector<8x128xf32>
    %417 = arith.negf %416 : vector<8x128xf32>
    %418 = math.exp %417 : vector<8x128xf32>
    %cst_91 = arith.constant 1.000000e+00 : f32
    %419 = vector.broadcast %cst_91 : f32 to vector<8x128xf32>
    %420 = arith.addf %419, %418 : vector<8x128xf32>
    %421 = arith.divf %419, %420 : vector<8x128xf32>
    %422 = arith.mulf %413, %365 : vector<8x128xf32>
    %423 = arith.mulf %407, %415 : vector<8x128xf32>
    %424 = arith.addf %422, %423 : vector<8x128xf32>
    %425 = math.tanh %424 : vector<8x128xf32>
    %426 = arith.mulf %421, %425 : vector<8x128xf32>
    %c7_i32 = arith.constant 7 : i32
    %c8_i32_92 = arith.constant 8 : i32
    %427 = arith.muli %c7_i32, %c8_i32_92 : i32
    %428 = arith.index_cast %427 : i32 to index
    %c0_93 = arith.constant 0 : index
    %429 = vector.load %arg10[%428, %c0_93] : memref<64x512xf32, #tpu.memory_space<vmem>>, vector<8x512xf32>
    %cst_94 = arith.constant dense<0.000000e+00> : vector<8x512xf32>
    %430 = tpu.matmul %397, %7, %cst_94 {dimension_numbers = #tpu.dot_dimension_numbers<[1], [0], [0], [1], [0, 0, 1, 1], [], []>} : vector<8x128xf32>, vector<128x512xf32>, vector<8x512xf32> -> vector<8x512xf32>
    %431 = arith.addf %429, %430 : vector<8x512xf32>
    %432 = vector.extract_strided_slice %431 {offsets = [0, 0], sizes = [8, 128], strides = [1, 1]} : vector<8x512xf32> to vector<8x128xf32>
    %433 = arith.negf %432 : vector<8x128xf32>
    %434 = math.exp %433 : vector<8x128xf32>
    %cst_95 = arith.constant 1.000000e+00 : f32
    %435 = vector.broadcast %cst_95 : f32 to vector<8x128xf32>
    %436 = arith.addf %435, %434 : vector<8x128xf32>
    %437 = arith.divf %435, %436 : vector<8x128xf32>
    %438 = vector.extract_strided_slice %431 {offsets = [0, 128], sizes = [8, 128], strides = [1, 1]} : vector<8x512xf32> to vector<8x128xf32>
    %439 = arith.negf %438 : vector<8x128xf32>
    %440 = math.exp %439 : vector<8x128xf32>
    %cst_96 = arith.constant 1.000000e+00 : f32
    %441 = vector.broadcast %cst_96 : f32 to vector<8x128xf32>
    %442 = arith.addf %441, %440 : vector<8x128xf32>
    %443 = arith.divf %441, %442 : vector<8x128xf32>
    %444 = vector.extract_strided_slice %431 {offsets = [0, 256], sizes = [8, 128], strides = [1, 1]} : vector<8x512xf32> to vector<8x128xf32>
    %445 = math.tanh %444 : vector<8x128xf32>
    %446 = vector.extract_strided_slice %431 {offsets = [0, 384], sizes = [8, 128], strides = [1, 1]} : vector<8x512xf32> to vector<8x128xf32>
    %447 = arith.negf %446 : vector<8x128xf32>
    %448 = math.exp %447 : vector<8x128xf32>
    %cst_97 = arith.constant 1.000000e+00 : f32
    %449 = vector.broadcast %cst_97 : f32 to vector<8x128xf32>
    %450 = arith.addf %449, %448 : vector<8x128xf32>
    %451 = arith.divf %449, %450 : vector<8x128xf32>
    %452 = arith.mulf %443, %395 : vector<8x128xf32>
    %453 = arith.mulf %437, %445 : vector<8x128xf32>
    %454 = arith.addf %452, %453 : vector<8x128xf32>
    %455 = math.tanh %454 : vector<8x128xf32>
    %456 = arith.mulf %451, %455 : vector<8x128xf32>
    %cst_98 = arith.constant dense<0.000000e+00> : vector<8x512xf32>
    %457 = tpu.matmul %456, %9, %cst_98 {dimension_numbers = #tpu.dot_dimension_numbers<[1], [0], [0], [1], [0, 0, 1, 1], [], []>} : vector<8x128xf32>, vector<128x512xf32>, vector<8x512xf32> -> vector<8x512xf32>
    %cst_99 = arith.constant dense<0.000000e+00> : vector<8x512xf32>
    %458 = tpu.matmul %426, %8, %cst_99 {dimension_numbers = #tpu.dot_dimension_numbers<[1], [0], [0], [1], [0, 0, 1, 1], [], []>} : vector<8x128xf32>, vector<128x512xf32>, vector<8x512xf32> -> vector<8x512xf32>
    %459 = arith.addf %457, %458 : vector<8x512xf32>
    %460 = arith.addf %459, %12 : vector<8x512xf32>
    %461 = vector.extract_strided_slice %460 {offsets = [0, 0], sizes = [8, 128], strides = [1, 1]} : vector<8x512xf32> to vector<8x128xf32>
    %462 = arith.negf %461 : vector<8x128xf32>
    %463 = math.exp %462 : vector<8x128xf32>
    %cst_100 = arith.constant 1.000000e+00 : f32
    %464 = vector.broadcast %cst_100 : f32 to vector<8x128xf32>
    %465 = arith.addf %464, %463 : vector<8x128xf32>
    %466 = arith.divf %464, %465 : vector<8x128xf32>
    %467 = vector.extract_strided_slice %460 {offsets = [0, 128], sizes = [8, 128], strides = [1, 1]} : vector<8x512xf32> to vector<8x128xf32>
    %468 = arith.negf %467 : vector<8x128xf32>
    %469 = math.exp %468 : vector<8x128xf32>
    %cst_101 = arith.constant 1.000000e+00 : f32
    %470 = vector.broadcast %cst_101 : f32 to vector<8x128xf32>
    %471 = arith.addf %470, %469 : vector<8x128xf32>
    %472 = arith.divf %470, %471 : vector<8x128xf32>
    %473 = vector.extract_strided_slice %460 {offsets = [0, 256], sizes = [8, 128], strides = [1, 1]} : vector<8x512xf32> to vector<8x128xf32>
    %474 = math.tanh %473 : vector<8x128xf32>
    %475 = vector.extract_strided_slice %460 {offsets = [0, 384], sizes = [8, 128], strides = [1, 1]} : vector<8x512xf32> to vector<8x128xf32>
    %476 = arith.negf %475 : vector<8x128xf32>
    %477 = math.exp %476 : vector<8x128xf32>
    %cst_102 = arith.constant 1.000000e+00 : f32
    %478 = vector.broadcast %cst_102 : f32 to vector<8x128xf32>
    %479 = arith.addf %478, %477 : vector<8x128xf32>
    %480 = arith.divf %478, %479 : vector<8x128xf32>
    %481 = arith.mulf %472, %424 : vector<8x128xf32>
    %482 = arith.mulf %466, %474 : vector<8x128xf32>
    %483 = arith.addf %481, %482 : vector<8x128xf32>
    %484 = math.tanh %483 : vector<8x128xf32>
    %485 = arith.mulf %480, %484 : vector<8x128xf32>
    %c8_i32_103 = arith.constant 8 : i32
    %c0_104 = arith.constant 0 : index
    %c0_105 = arith.constant 0 : index
    %486 = vector.load %arg7[%c0_104, %c0_105] : memref<128x128xf32, #tpu.memory_space<vmem>>, vector<128x128xf32>
    %cst_106 = arith.constant dense<0.000000e+00> : vector<8x128xf32>
    %487 = tpu.matmul %485, %486, %cst_106 {dimension_numbers = #tpu.dot_dimension_numbers<[1], [0], [0], [1], [0, 0, 1, 1], [], []>} : vector<8x128xf32>, vector<128x128xf32>, vector<8x128xf32> -> vector<8x128xf32>
    %c0_107 = arith.constant 0 : index
    %c0_108 = arith.constant 0 : index
    %488 = vector.load %arg8[%c0_107, %c0_108] : memref<1x128xf32, #tpu.memory_space<vmem>>, vector<1x128xf32>
    %489 = vector.broadcast %488 : vector<1x128xf32> to vector<8x128xf32>
    %490 = arith.addf %487, %489 : vector<8x128xf32>
    %c0_109 = arith.constant 0 : index
    %c0_110 = arith.constant 0 : index
    %491 = vector.load %arg9[%c0_109, %c0_110] : memref<8x128xf32, #tpu.memory_space<vmem>>, vector<8x128xf32>
    tpu.vector_store %arg9[%c0_109, %c0_110], %490 {strides = array<i32>} : memref<8x128xf32, #tpu.memory_space<vmem>>, vector<8x128xf32>,
    return
  }
}

</mosaic_0001>

<bundles_post_ra>
// kernel: rnn_forward.1
= control target key start
LH: loop header
LB: loop body
LE: loop exit
PB: predicated region body
PF: predicated region fallthrough
CT: control target
= control target key end

     0   :  { %14 = vsyncpa [#allocation4], 0  ;;  %s8364_s0 = inlined_call_operand.vmem [shape: f32[64,32], index: 0, kind: input, shape index: {}]   ;;  %s8365_s1 = inlined_call_operand.hbm [shape: f32[32,512], index: 1, kind: input, shape index: {}]   ;;  %s8366_s2 = inlined_call_operand.vmem [shape: f32[128,512], index: 2, kind: input, shape index: {}]   ;;  %s8367_s3 = inlined_call_operand.vmem [shape: f32[1,512], index: 3, kind: input, shape index: {}]   ;;  %s8368_s4 = inlined_call_operand.hbm [shape: f32[128,512], index: 4, kind: input, shape index: {}]   ;;  %s8369_s5 = inlined_call_operand.hbm [shape: f32[128,512], index: 5, kind: input, shape index: {}]   ;;  %s8370_s6 = inlined_call_operand.hbm [shape: f32[1,512], index: 6, kind: input, shape index: {}]   ;;  %s8371_s7 = inlined_call_operand.vmem [shape: f32[128,128], index: 7, kind: input, shape index: {}]   ;;  %s8372_s8 = inlined_call_operand.vmem [shape: f32[1,128], index: 8, kind: input, shape index: {}]   ;;  %s8373_s9 = inlined_call_operand.vmem [shape: f32[8,128], index: 9, kind: output, shape index: {}]  }
   0x1   :  { %15 = vsyncpa [#allocation6], 0 }
   0x2   :  { %16 = vsyncpa [#allocation9], 0  ;;  %s6765_s30 = smov [#allocation5]   ;;  %s6766_s11 = smov [#allocation3]  }
   0x3   :  { %s40_s10 = sshll.u32 %s6765_s30, 4  ;;  %s24_s12 = sshll.u32 %s6766_s11, 4  ;;  %s41_s10 = int_to_ptr.vmem [resolvable:$true] %s40_s10  ;;  %s6824_s12 = int_to_ptr.vmem [resolvable:$true] %s24_s12 }
   0x4   :  { %s6671_s15 = scalar_lea.hbm %s8368_s4, 8192 }
   0x5   :  { %p6672_p0 = scmp.ne.s32.totalorder %s8368_s4, %s6671_s15  ;;  %p6675_p1 = scmp.lt.u32.totalorder %s6671_s15, %s8368_s4 }
   0x7   :  { %p6677_p2 = pnand %p6675_p1, %p6672_p0 }
   0x9   :  { %6680 = shalt.err (!%p6677_p2)
}
   0xa   :  { %s6681_s20 = scalar_lea.vmem %s41_s10, 8192  ;;  %p6686_p4 = scmp.lt.s32.totalorder %s41_s10, %s41_s10 }
   0xb   :  { %p6682_p3 = scmp.ne.s32.totalorder %s41_s10, %s6681_s20  ;;  %p6687_p5 = scmp.lt.s32.totalorder %s6681_s20, %s6681_s20 }
   0xd   :  { %p6688_p6 = por %p6687_p5, %p6686_p4 }
   0xf   :  { %p6689_p7 = pnand %p6688_p6, %p6682_p3 }
  0x11   :  { %6692 = shalt.err (!%p6689_p7)
}
  0x12   :  { %s6767_s21 = smov 512   ;;  %s6768_s22 = smov 32  }
  0x13   :  { %46 = dma.hbm_to_vmem [thread:$0]  %s8368_s4, 8192, %s41_s10, [#allocation6], %s6767_s21, %s6767_s21, %s6768_s22  }
  0x14   :  { %s6693_s27 = scalar_lea.hbm %s8365_s1, 2048 }
  0x15   :  { %p6694_p8 = scmp.ne.s32.totalorder %s8365_s1, %s6693_s27  ;;  %p6697_p9 = scmp.lt.u32.totalorder %s6693_s27, %s8365_s1 }
  0x17   :  { %p6699_p10 = pnand %p6697_p9, %p6694_p8 }
  0x19   :  { %6702 = shalt.err (!%p6699_p10)
}
  0x1a   :  { %s6703_s13 = scalar_lea.vmem %s6824_s12, 2048  ;;  %p6708_p12 = scmp.lt.s32.totalorder %s6824_s12, %s6824_s12 }
  0x1b   :  { %p6704_p11 = scmp.ne.s32.totalorder %s6824_s12, %s6703_s13  ;;  %p6709_p13 = scmp.lt.s32.totalorder %s6703_s13, %s6703_s13 }
  0x1d   :  { %p6710_p0 = por %p6709_p13, %p6708_p12 }
  0x1f   :  { %p6711_p1 = pnand %p6710_p0, %p6704_p11 }
  0x21   :  { %6714 = shalt.err (!%p6711_p1)
}
  0x22   :  { %30 = dma.hbm_to_vmem [thread:$0]  %s8365_s1, 2048, %s6824_s12, [#allocation4], %s6767_s21, %s6767_s21, %s6768_s22  }
  0x23   :  { %s6769_s14 = smov [#allocation7]   ;;  %s6770_s16 = smov [#allocation8]  }
  0x24   :  { %s52_s15 = sshll.u32 %s6769_s14, 4  ;;  %s65_s17 = sshll.u32 %s6770_s16, 4  ;;  %s53_s15 = int_to_ptr.vmem [resolvable:$true] %s52_s15  ;;  %s66_s17 = int_to_ptr.vmem [resolvable:$true] %s65_s17 }
  0x25   :  { %s6715_s20 = scalar_lea.hbm %s8369_s5, 8192 }
  0x26   :  { %p6716_p2 = scmp.ne.s32.totalorder %s8369_s5, %s6715_s20  ;;  %p6719_p3 = scmp.lt.u32.totalorder %s6715_s20, %s8369_s5 }
  0x28   :  { %p6721_p4 = pnand %p6719_p3, %p6716_p2 }
  0x2a   :  { %6724 = shalt.err (!%p6721_p4)
}
  0x2b   :  { %s6725_s1 = scalar_lea.vmem %s53_s15, 8192  ;;  %p6730_p6 = scmp.lt.s32.totalorder %s53_s15, %s53_s15 }
  0x2c   :  { %p6726_p5 = scmp.ne.s32.totalorder %s53_s15, %s6725_s1  ;;  %p6731_p7 = scmp.lt.s32.totalorder %s6725_s1, %s6725_s1 }
  0x2e   :  { %p6732_p8 = por %p6731_p7, %p6730_p6 }
  0x30   :  { %p6733_p9 = pnand %p6732_p8, %p6726_p5 }
  0x32   :  { %6736 = shalt.err (!%p6733_p9)
}
  0x33   :  { %58 = dma.hbm_to_vmem [thread:$0]  %s8369_s5, 8192, %s53_s15, [#allocation6], %s6767_s21, %s6767_s21, %s6768_s22  }
  0x34   :  { %s6737_s30 = scalar_lea.hbm %s8370_s6, 64 }
  0x35   :  { %p6738_p10 = scmp.ne.s32.totalorder %s8370_s6, %s6737_s30  ;;  %p6741_p11 = scmp.lt.u32.totalorder %s6737_s30, %s8370_s6 }
  0x37   :  { %p6743_p12 = pnand %p6741_p11, %p6738_p10 }
  0x39   :  { %6746 = shalt.err (!%p6743_p12)
}
  0x3a   :  { %s6747_s14 = scalar_lea.vmem %s66_s17, 64  ;;  %p6752_p0 = scmp.lt.s32.totalorder %s66_s17, %s66_s17 }
  0x3b   :  { %p6748_p13 = scmp.ne.s32.totalorder %s66_s17, %s6747_s14  ;;  %p6753_p1 = scmp.lt.s32.totalorder %s6747_s14, %s6747_s14 }
  0x3d   :  { %p6754_p2 = por %p6753_p1, %p6752_p0 }
  0x3f   :  { %p6755_p3 = pnand %p6754_p2, %p6748_p13 }
  0x41   :  { %6758 = shalt.err (!%p6755_p3)
}
  0x42   :  { %68 = dma.hbm_to_vmem [thread:$0]  %s8370_s6, 64, %s66_s17, [#allocation9]  }
  0x43   :  { %6759 = dma.done.wait [#allocation4], 2048  }
  0x44   :  { %6760 = vsyncadd [#allocation4], 4294965248 }
  0x45   :  { %6761 = dma.done.wait [#allocation6], 16384  }
  0x46   :  { %6762 = vsyncadd [#allocation6], 4294950912 }
  0x47   :  { %6763 = dma.done.wait [#allocation9], 64  }
  0x48   :  { %6764 = vsyncadd [#allocation9], 4294967232  ;;  %v8374_v0 = vmov 0.0   ;;  %v94_v1 = vld [vmem:[#allocation3 + $0x8] sm:$0xff]  ;;  %v96_v3 = vld [vmem:[#allocation3 + $0x18] sm:$0xff]  ;;  %vm131_vm0 = vcmask 261120  }
  0x49   :  { %220 = vmatprep.mubr.f32.mxu0 %v8374_v0  ;;  %333 = vmatprep.mubr.f32.mxu1 %v8374_v0  ;;  %v98_v2 = vld [vmem:[#allocation3 + $0x28] sm:$0xff]  ;;  %v100_v5 = vld [vmem:[#allocation3 + $0x38] sm:$0xff]  ;;  %v93_v6 = vld [vmem:[#allocation3] sm:$0xff]  ;;  %vm6773_vm1 = vmmov 0  }
  0x4a   :  { %v4734_v4 = vpack.c.bf16 %v98_v2, %v94_v1  ;;  %v97_v7 = vld [vmem:[#allocation3 + $0x20] sm:$0xff]  ;;  %v4742_v8 = vpack.c.bf16 %v100_v5, %v96_v3  ;;  %v95_v10 = vld [vmem:[#allocation3 + $0x10] sm:$0xff]  ;;  %v102_v12 = vld [vmem:[#allocation3 + $0x48] sm:$0xff] }
  0x4b   :  { %v4736_v9 = vpack.c.bf16 %v97_v7, %v93_v6  ;;  %v99_v11 = vld [vmem:[#allocation3 + $0x30] sm:$0xff]  ;;  %v106_v14 = vld [vmem:[#allocation3 + $0x68] sm:$0xff]  ;;  %v104_v15 = vld [vmem:[#allocation3 + $0x58] sm:$0xff] }
  0x4c   :  { %4735 = vmatprep.subr.bf16.mxu0 %v4734_v4  ;;  %v4744_v13 = vpack.c.bf16 %v99_v11, %v95_v10  ;;  %v108_v16 = vld [vmem:[#allocation3 + $0x78] sm:$0xff]  ;;  %4743 = vmatprep.subr.bf16.mxu1 %v4742_v8  ;;  %v4738_v17 = vpack.c.bf16 %v106_v14, %v102_v12  ;;  %v101_v19 = vld [vmem:[#allocation3 + $0x40] sm:$0xff]  ;;  %v103_v21 = vld [vmem:[#allocation3 + $0x50] sm:$0xff] }
  0x4d   :  { %4737 = vmatpush1.bf16.msra.mxu0 %v4736_v9  ;;  %v4746_v18 = vpack.c.bf16 %v108_v16, %v104_v15  ;;  %v105_v20 = vld [vmem:[#allocation3 + $0x60] sm:$0xff]  ;;  %v107_v23 = vld [vmem:[#allocation3 + $0x70] sm:$0xff]  ;;  %v415_v24 = vld [vmem:[%s8366_s2 + $0x8] sm:$0xff] }
  0x4e   :  { %4745 = vmatpush1.bf16.msra.mxu1 %v4744_v13  ;;  %v4740_v22 = vpack.c.bf16 %v105_v20, %v101_v19  ;;  %4739 = vmatprep.subr.bf16.mxu0 %v4738_v17  ;;  %v4748_v25 = vpack.c.bf16 %v107_v23, %v103_v21  ;;  %v419_v26 = vld [vmem:[%s8366_s2 + $0x28] sm:$0xff]  ;;  %v417_v27 = vld [vmem:[%s8366_s2 + $0x18] sm:$0xff]  ;;  %v414_v31 = vld [vmem:[%s8366_s2] sm:$0xff] }
  0x4f   :  { %4747 = vmatprep.subr.bf16.mxu1 %v4746_v18  ;;  %v421_v28 = vld [vmem:[%s8366_s2 + $0x38] sm:$0xff]  ;;  %v6902_v29 = vpack.c.bf16 %v419_v26, %v415_v24  ;;  %v418_v32 = vld [vmem:[%s8366_s2 + $0x20] sm:$0xff]  ;;  %v416_v33 = vld [vmem:[%s8366_s2 + $0x10] sm:$0xff] }
  0x50   :  { %v6904_v30 = vpack.c.bf16 %v421_v28, %v417_v27  ;;  %v85_v34 = vld [vmem:[%s8364_s0] sm:$0xff]  ;;  %v6918_v35 = vpack.c.bf16 %v418_v32, %v414_v31  ;;  %v420_v36 = vld [vmem:[%s8366_s2 + $0x30] sm:$0xff]  ;;  %v423_v37 = vld [vmem:[%s8366_s2 + $0x48] sm:$0xff] }
  0x51   :  { %8575 = vst [vmem:[#allocation13_spill] sm:$0xff] %v6902_v29  ;;  %4741 = vmatpush1.bf16.msra.mxu0 %v4740_v22  ;;  %v6927_v38 = vpack.c.bf16 %v420_v36, %v416_v33  ;;  %v427_v39 = vld [vmem:[%s8366_s2 + $0x68] sm:$0xff]  ;;  %v425_v40 = vld [vmem:[%s8366_s2 + $0x58] sm:$0xff]  ;;  %v422_v43 = vld [vmem:[%s8366_s2 + $0x40] sm:$0xff] }
  0x52   :  { %8576 = vst [vmem:[#allocation14_spill] sm:$0xff] %v6904_v30  ;;  %4749 = vmatpush1.bf16.msra.mxu1 %v4748_v25  ;;  %4751 = vmatprep.subr.bf16.mxu0 %v6902_v29  ;;  %v429_v41 = vld [vmem:[%s8366_s2 + $0x78] sm:$0xff]  ;;  %v6939_v42 = vpack.c.bf16 %v427_v39, %v423_v37  ;;  %v426_v44 = vld [vmem:[%s8366_s2 + $0x60] sm:$0xff]  ;;  %v424_v45 = vld [vmem:[%s8366_s2 + $0x50] sm:$0xff] }
  0x53   :  { %4783 = vmatprep.subr.bf16.mxu1 %v6904_v30  ;;  %v86_v46 = vld [vmem:[%s8364_s0 + $0x8] sm:$0xff]  ;;  %v6954_v47 = vpack.c.bf16 %v429_v41, %v425_v40  ;;  %v428_v48 = vld [vmem:[%s8366_s2 + $0x70] sm:$0xff]  ;;  %v6964_v50 = vpack.c.bf16 %v426_v44, %v422_v43  ;;  %v433_v52 = vld [vmem:[%s8366_s2 + $0x98] sm:$0xff] }
  0x54   :  { %4617 = vmatmul.mubr.msk.f32.vlgmr.msra.gmra.mrb[0].mxu0 %vm131_vm0, %v85_v34  ;;  %v431_v49 = vld [vmem:[%s8366_s2 + $0x88] sm:$0xff]  ;;  %v437_v53 = vld [vmem:[%s8366_s2 + $0xb8] sm:$0xff]  ;;  %v6977_v54 = vpack.c.bf16 %v428_v48, %v424_v45  ;;  %v430_v55 = vld [vmem:[%s8366_s2 + $0x80] sm:$0xff] }
  0x55   :  { %4625 = vmatmul.mubr.msk.f32.vlgmr.msra.gmra.mrb[0].mxu1 %vm131_vm0, %v85_v34  ;;  %4753 = vmatpush1.bf16.msra.mxu0 %v6918_v35  ;;  %v435_v51 = vld [vmem:[%s8366_s2 + $0xa8] sm:$0xff]  ;;  %v434_v56 = vld [vmem:[%s8366_s2 + $0xa0] sm:$0xff]  ;;  %v432_v58 = vld [vmem:[%s8366_s2 + $0x90] sm:$0xff]  ;;  %v6997_v60 = vpack.c.bf16 %v437_v53, %v433_v52 }
  0x56   :  { %4785 = vmatpush1.bf16.msra.mxu1 %v6927_v38  ;;  %226 = vmatprep.mubr.f32.mxu0 %v8374_v0  ;;  %v6987_v57 = vpack.c.bf16 %v435_v51, %v431_v49  ;;  %v436_v59 = vld [vmem:[%s8366_s2 + $0xb0] sm:$0xff]  ;;  %v439_v61 = vld [vmem:[%s8366_s2 + $0xc8] sm:$0xff]  ;;  %v7010_v1 = vpack.c.bf16 %v434_v56, %v430_v55  ;;  %v441_v2 = vld [vmem:[%s8366_s2 + $0xd8] sm:$0xff] }
  0x57   :  { %339 = vmatprep.mubr.f32.mxu1 %v8374_v0  ;;  %4755 = vmatprep.subr.bf16.mxu0 %v6939_v42  ;;  %8578 = vst [vmem:[#allocation16_spill] sm:$0xff] %v6997_v60  ;;  %v443_v62 = vld [vmem:[%s8366_s2 + $0xe8] sm:$0xff]  ;;  %v87_v63 = vld [vmem:[%s8364_s0 + $0x10] sm:$0xff]  ;;  %v445_v3 = vld [vmem:[%s8366_s2 + $0xf8] sm:$0xff]  ;;  %v7020_v4 = vpack.c.bf16 %v436_v59, %v432_v58 }
  0x58   :  { %8577 = vst [vmem:[#allocation15_spill] sm:$0xff] %v6987_v57  ;;  %4618 = vmatmul.mubr.msk.f32.gmra.mrb[2].mxu0 %vm131_vm0, %v86_v46  ;;  %4787 = vmatprep.subr.bf16.mxu1 %v6954_v47  ;;  %8579 = vst [vmem:[#allocation17_spill] sm:$0xff] %v7010_v1  ;;  %v438_v5 = vld [vmem:[%s8366_s2 + $0xc0] sm:$0xff]  ;;  %v7030_v7 = vpack.c.bf16 %v443_v62, %v439_v61  ;;  %v440_v8 = vld [vmem:[%s8366_s2 + $0xd0] sm:$0xff]  ;;  %v7040_v10 = vpack.c.bf16 %v445_v3, %v441_v2 }
  0x59   :  { %4626 = vmatmul.mubr.msk.f32.gmra.mrb[2].mxu1 %vm131_vm0, %v86_v46  ;;  %4757 = vmatpush1.bf16.msra.mxu0 %v6964_v50  ;;  %8580 = vst [vmem:[#allocation18_spill] sm:$0xff] %v7020_v4  ;;  %v442_v6 = vld [vmem:[%s8366_s2 + $0xe0] sm:$0xff]  ;;  %v444_v9 = vld [vmem:[%s8366_s2 + $0xf0] sm:$0xff]  ;;  %v447_v11 = vld [vmem:[%s8366_s2 + $0x108] sm:$0xff] }
  0x5a   :  { %4789 = vmatpush1.bf16.msra.mxu1 %v6977_v54  ;;  %232 = vmatprep.mubr.f32.mxu0 %v8374_v0  ;;  %8581 = vst [vmem:[#allocation19_spill] sm:$0xff] %v7030_v7  ;;  %8582 = vst [vmem:[#allocation20_spill] sm:$0xff] %v7040_v10  ;;  %v451_v12 = vld [vmem:[%s8366_s2 + $0x128] sm:$0xff]  ;;  %v88_v13 = vld [vmem:[%s8364_s0 + $0x18] sm:$0xff]  ;;  %v7053_v14 = vpack.c.bf16 %v442_v6, %v438_v5  ;;  %v7063_v17 = vpack.c.bf16 %v444_v9, %v440_v8 }
  0x5b   :  { %345 = vmatprep.mubr.f32.mxu1 %v8374_v0  ;;  %4759 = vmatprep.subr.bf16.mxu0 %v6987_v57  ;;  %v449_v15 = vld [vmem:[%s8366_s2 + $0x118] sm:$0xff]  ;;  %v446_v18 = vld [vmem:[%s8366_s2 + $0x100] sm:$0xff]  ;;  %v7073_v20 = vpack.c.bf16 %v451_v12, %v447_v11  ;;  %v448_v21 = vld [vmem:[%s8366_s2 + $0x110] sm:$0xff] }
  0x5c   :  { %4619 = vmatmul.mubr.msk.f32.gmra.mrb[4].mxu0 %vm131_vm0, %v87_v63  ;;  %4791 = vmatprep.subr.bf16.mxu1 %v6997_v60  ;;  %8583 = vst [vmem:[#allocation21_spill] sm:$0xff] %v7053_v14  ;;  %v453_v16 = vld [vmem:[%s8366_s2 + $0x138] sm:$0xff]  ;;  %8584 = vst [vmem:[#allocation22_spill] sm:$0xff] %v7063_v17  ;;  %v450_v19 = vld [vmem:[%s8366_s2 + $0x120] sm:$0xff] }
  0x5d   :  { %4627 = vmatmul.mubr.msk.f32.gmra.mrb[4].mxu1 %vm131_vm0, %v87_v63  ;;  %4761 = vmatpush1.bf16.msra.mxu0 %v7010_v1  ;;  %8585 = vst [vmem:[#allocation23_spill] sm:$0xff] %v7073_v20  ;;  %v452_v22 = vld [vmem:[%s8366_s2 + $0x130] sm:$0xff]  ;;  %v7083_v23 = vpack.c.bf16 %v453_v16, %v449_v15  ;;  %v455_v24 = vld [vmem:[%s8366_s2 + $0x148] sm:$0xff]  ;;  %v89_v26 = vld [vmem:[%s8364_s0 + $0x20] sm:$0xff]  ;;  %v7096_v27 = vpack.c.bf16 %v450_v19, %v446_v18 }
  0x5e   :  { %4793 = vmatpush1.bf16.msra.mxu1 %v7020_v4  ;;  %238 = vmatprep.mubr.f32.mxu0 %v8374_v0  ;;  %v459_v25 = vld [vmem:[%s8366_s2 + $0x168] sm:$0xff]  ;;  %v457_v28 = vld [vmem:[%s8366_s2 + $0x158] sm:$0xff]  ;;  %v7106_v32 = vpack.c.bf16 %v452_v22, %v448_v21  ;;  %v454_v33 = vld [vmem:[%s8366_s2 + $0x140] sm:$0xff] }
  0x5f   :  { %351 = vmatprep.mubr.f32.mxu1 %v8374_v0  ;;  %4763 = vmatprep.subr.bf16.mxu0 %v7030_v7  ;;  %8586 = vst [vmem:[#allocation24_spill] sm:$0xff] %v7083_v23  ;;  %8587 = vst [vmem:[#allocation25_spill] sm:$0xff] %v7096_v27  ;;  %v461_v31 = vld [vmem:[%s8366_s2 + $0x178] sm:$0xff]  ;;  %v458_v34 = vld [vmem:[%s8366_s2 + $0x160] sm:$0xff]  ;;  %v7116_v36 = vpack.c.bf16 %v459_v25, %v455_v24 }
  0x60   :  { %4620 = vmatmul.mubr.msk.f32.gmra.mrb[6].mxu0 %vm131_vm0, %v88_v13  ;;  %4795 = vmatprep.subr.bf16.mxu1 %v7040_v10  ;;  %8588 = vst [vmem:[#allocation26_spill] sm:$0xff] %v7106_v32  ;;  %v456_v37 = vld [vmem:[%s8366_s2 + $0x150] sm:$0xff]  ;;  %v7126_v40 = vpack.c.bf16 %v461_v31, %v457_v28  ;;  %v463_v41 = vld [vmem:[%s8366_s2 + $0x188] sm:$0xff]  ;;  %v7139_v45 = vpack.c.bf16 %v458_v34, %v454_v33  ;;  %v465_v46 = vld [vmem:[%s8366_s2 + $0x198] sm:$0xff] }
  0x61   :  { %4628 = vmatmul.mubr.msk.f32.gmra.mrb[6].mxu1 %vm131_vm0, %v88_v13  ;;  %4765 = vmatpush1.bf16.msra.mxu0 %v7053_v14  ;;  %8589 = vst [vmem:[#allocation27_spill] sm:$0xff] %v7116_v36  ;;  %v460_v39 = vld [vmem:[%s8366_s2 + $0x170] sm:$0xff]  ;;  %v467_v43 = vld [vmem:[%s8366_s2 + $0x1a8] sm:$0xff]  ;;  %v469_v48 = vld [vmem:[%s8366_s2 + $0x1b8] sm:$0xff] }
  0x62   :  { %4797 = vmatpush1.bf16.msra.mxu1 %v7063_v17  ;;  %244 = vmatprep.mubr.f32.mxu0 %v8374_v0  ;;  %8590 = vst [vmem:[#allocation28_spill] sm:$0xff] %v7126_v40  ;;  %v90_v44 = vld [vmem:[%s8364_s0 + $0x28] sm:$0xff]  ;;  %8591 = vst [vmem:[#allocation29_spill] sm:$0xff] %v7139_v45  ;;  %v7149_v49 = vpack.c.bf16 %v460_v39, %v456_v37  ;;  %v462_v51 = vld [vmem:[%s8366_s2 + $0x180] sm:$0xff]  ;;  %v7159_v53 = vpack.c.bf16 %v467_v43, %v463_v41 }
  0x63   :  { %357 = vmatprep.mubr.f32.mxu1 %v8374_v0  ;;  %4767 = vmatprep.subr.bf16.mxu0 %v7073_v20  ;;  %v466_v52 = vld [vmem:[%s8366_s2 + $0x1a0] sm:$0xff]  ;;  %v464_v55 = vld [vmem:[%s8366_s2 + $0x190] sm:$0xff]  ;;  %v7169_v58 = vpack.c.bf16 %v469_v48, %v465_v46  ;;  %v471_v59 = vld [vmem:[%s8366_s2 + $0x1c8] sm:$0xff] }
  0x64   :  { %4621 = vmatmul.mubr.msk.f32.gmra.mrb[8].mxu0 %vm131_vm0, %v89_v26  ;;  %4799 = vmatprep.subr.bf16.mxu1 %v7083_v23  ;;  %8592 = vst [vmem:[#allocation30_spill] sm:$0xff] %v7149_v49  ;;  %8593 = vst [vmem:[#allocation31_spill] sm:$0xff] %v7159_v53  ;;  %v468_v56 = vld [vmem:[%s8366_s2 + $0x1b0] sm:$0xff]  ;;  %v475_v61 = vld [vmem:[%s8366_s2 + $0x1e8] sm:$0xff]  ;;  %v7182_v63 = vpack.c.bf16 %v466_v52, %v462_v51 }
  0x65   :  { %4629 = vmatmul.mubr.msk.f32.gmra.mrb[8].mxu1 %vm131_vm0, %v89_v26  ;;  %4769 = vmatpush1.bf16.msra.mxu0 %v7096_v27  ;;  %8594 = vst [vmem:[#allocation32_spill] sm:$0xff] %v7169_v58  ;;  %v91_v62 = vld [vmem:[%s8364_s0 + $0x30] sm:$0xff]  ;;  %v473_v2 = vld [vmem:[%s8366_s2 + $0x1d8] sm:$0xff]  ;;  %v7192_v5 = vpack.c.bf16 %v468_v56, %v464_v55  ;;  %v470_v6 = vld [vmem:[%s8366_s2 + $0x1c0] sm:$0xff]  ;;  %v7202_v9 = vpack.c.bf16 %v475_v61, %v471_v59 }
  0x66   :  { %4801 = vmatpush1.bf16.msra.mxu1 %v7106_v32  ;;  %250 = vmatprep.mubr.f32.mxu0 %v8374_v0  ;;  %8595 = vst [vmem:[#allocation33_spill] sm:$0xff] %v7182_v63  ;;  %v477_v3 = vld [vmem:[%s8366_s2 + $0x1f8] sm:$0xff]  ;;  %v474_v8 = vld [vmem:[%s8366_s2 + $0x1e0] sm:$0xff]  ;;  %v472_v11 = vld [vmem:[%s8366_s2 + $0x1d0] sm:$0xff] }
  0x67   :  { %363 = vmatprep.mubr.f32.mxu1 %v8374_v0  ;;  %4771 = vmatprep.subr.bf16.mxu0 %v7116_v36  ;;  %8596 = vst [vmem:[#allocation34_spill] sm:$0xff] %v7192_v5  ;;  %8597 = vst [vmem:[#allocation35_spill] sm:$0xff] %v7202_v9  ;;  %v476_v12 = vld [vmem:[%s8366_s2 + $0x1f0] sm:$0xff]  ;;  %v7212_v13 = vpack.c.bf16 %v477_v3, %v473_v2  ;;  %v479_v15 = vld [vmem:[#allocation7 + $0x8] sm:$0xff]  ;;  %v7219_v19 = vpack.c.bf16 %v474_v8, %v470_v6 }
  0x68   :  { %4622 = vmatmul.mubr.msk.f32.gmra.mrb[10].mxu0 %vm131_vm0, %v90_v44  ;;  %4803 = vmatprep.subr.bf16.mxu1 %v7126_v40  ;;  %v483_v16 = vld [vmem:[#allocation7 + $0x28] sm:$0xff]  ;;  %v92_v18 = vld [vmem:[%s8364_s0 + $0x38] sm:$0xff]  ;;  %v7223_v24 = vpack.c.bf16 %v476_v12, %v472_v11  ;;  %v478_v25 = vld [vmem:[#allocation7] sm:$0xff] }
  0x69   :  { %4630 = vmatmul.mubr.msk.f32.gmra.mrb[10].mxu1 %vm131_vm0, %v90_v44  ;;  %4773 = vmatpush1.bf16.msra.mxu0 %v7139_v45  ;;  %8598 = vst [vmem:[#allocation36_spill] sm:$0xff] %v7212_v13  ;;  %8599 = vst [vmem:[#allocation37_spill] sm:$0xff] %v7219_v19  ;;  %v481_v21 = vld [vmem:[#allocation7 + $0x18] sm:$0xff]  ;;  %v482_v26 = vld [vmem:[#allocation7 + $0x20] sm:$0xff]  ;;  %v7227_v31 = vpack.c.bf16 %v483_v16, %v479_v15 }
  0x6a   :  { %4805 = vmatpush1.bf16.msra.mxu1 %v7149_v49  ;;  %256 = vmatprep.mubr.f32.mxu0 %v8374_v0  ;;  %v485_v22 = vld [vmem:[#allocation7 + $0x38] sm:$0xff]  ;;  %8600 = vst [vmem:[#allocation38_spill] sm:$0xff] %v7223_v24  ;;  %v480_v28 = vld [vmem:[#allocation7 + $0x10] sm:$0xff]  ;;  %v487_v34 = vld [vmem:[#allocation7 + $0x48] sm:$0xff]  ;;  %v7235_v44 = vpack.c.bf16 %v482_v26, %v478_v25 }
  0x6b   :  { %369 = vmatprep.mubr.f32.mxu1 %v8374_v0  ;;  %4775 = vmatprep.subr.bf16.mxu0 %v7159_v53  ;;  %8601 = vst [vmem:[#allocation39_spill] sm:$0xff] %v7227_v31  ;;  %v484_v33 = vld [vmem:[#allocation7 + $0x30] sm:$0xff]  ;;  %v491_v37 = vld [vmem:[#allocation7 + $0x68] sm:$0xff]  ;;  %v7231_v39 = vpack.c.bf16 %v485_v22, %v481_v21  ;;  %v489_v41 = vld [vmem:[#allocation7 + $0x58] sm:$0xff] }
  0x6c   :  { %4623 = vmatmul.mubr.msk.f32.gmra.mrb[12].mxu0 %vm131_vm0, %v91_v62  ;;  %4807 = vmatprep.subr.bf16.mxu1 %v7169_v58  ;;  %v493_v43 = vld [vmem:[#allocation7 + $0x78] sm:$0xff]  ;;  %8603 = vst [vmem:[#allocation41_spill] sm:$0xff] %v7235_v44  ;;  %v7239_v46 = vpack.c.bf16 %v484_v33, %v480_v28  ;;  %v7241_v48 = vpack.c.bf16 %v491_v37, %v487_v34  ;;  %v486_v51 = vld [vmem:[#allocation7 + $0x40] sm:$0xff]  ;;  %v488_v55 = vld [vmem:[#allocation7 + $0x50] sm:$0xff] }
  0x6d   :  { %4631 = vmatmul.mubr.msk.f32.gmra.mrb[12].mxu1 %vm131_vm0, %v91_v62  ;;  %4777 = vmatpush1.bf16.msra.mxu0 %v7182_v63  ;;  %8602 = vst [vmem:[#allocation40_spill] sm:$0xff] %v7231_v39  ;;  %v490_v52 = vld [vmem:[#allocation7 + $0x60] sm:$0xff]  ;;  %v7245_v56 = vpack.c.bf16 %v493_v43, %v489_v41  ;;  %v492_v59 = vld [vmem:[#allocation7 + $0x70] sm:$0xff]  ;;  %v495_v61 = vld [vmem:[#allocation7 + $0x88] sm:$0xff] }
  0x6e   :  { %4809 = vmatpush1.bf16.msra.mxu1 %v7192_v5  ;;  %262 = vmatprep.mubr.f32.mxu0 %v8374_v0  ;;  %8604 = vst [vmem:[#allocation42_spill] sm:$0xff] %v7239_v46  ;;  %8605 = vst [vmem:[#allocation43_spill] sm:$0xff] %v7241_v48  ;;  %v499_v62 = vld [vmem:[#allocation7 + $0xa8] sm:$0xff]  ;;  %v497_v2 = vld [vmem:[#allocation7 + $0x98] sm:$0xff]  ;;  %v7251_v6 = vpack.c.bf16 %v490_v52, %v486_v51  ;;  %v7255_v8 = vpack.c.bf16 %v492_v59, %v488_v55 }
  0x6f   :  { %375 = vmatprep.mubr.f32.mxu1 %v8374_v0  ;;  %4779 = vmatprep.subr.bf16.mxu0 %v7202_v9  ;;  %8606 = vst [vmem:[#allocation44_spill] sm:$0xff] %v7245_v56  ;;  %v501_v3 = vld [vmem:[#allocation7 + $0xb8] sm:$0xff]  ;;  %v7257_v11 = vpack.c.bf16 %v499_v62, %v495_v61  ;;  %v494_v12 = vld [vmem:[#allocation7 + $0x80] sm:$0xff]  ;;  %v496_v16 = vld [vmem:[#allocation7 + $0x90] sm:$0xff] }
  0x70   :  { %4624 = vmatmul.mubr.msk.f32.gmra.mrb[14].mxu0 %vm131_vm0, %v92_v18  ;;  %4811 = vmatprep.subr.bf16.mxu1 %v7212_v13  ;;  %8607 = vst [vmem:[#allocation45_spill] sm:$0xff] %v7251_v6  ;;  %8608 = vst [vmem:[#allocation46_spill] sm:$0xff] %v7255_v8  ;;  %v498_v15 = vld [vmem:[#allocation7 + $0xa0] sm:$0xff]  ;;  %v500_v21 = vld [vmem:[#allocation7 + $0xb0] sm:$0xff] }
  0x71   :  { %4632 = vmatmul.mubr.msk.f32.gmra.mrb[14].mxu1 %vm131_vm0, %v92_v18  ;;  %4781 = vmatpush1.bf16.msra.mxu0 %v7219_v19  ;;  %8609 = vst [vmem:[#allocation47_spill] sm:$0xff] %v7257_v11  ;;  %v7260_v18 = vpack.c.bf16 %v501_v3, %v497_v2  ;;  %v503_v22 = vld [vmem:[#allocation7 + $0xc8] sm:$0xff]  ;;  %v505_v26 = vld [vmem:[#allocation7 + $0xd8] sm:$0xff]  ;;  %v7265_v33 = vpack.c.bf16 %v498_v15, %v494_v12  ;;  %v502_v41 = vld [vmem:[#allocation7 + $0xc0] sm:$0xff] }
  0x72   :  { %4813 = vmatpush1.bf16.msra.mxu1 %v7223_v24  ;;  %696 = vmatprep.mubr.f32.mxu0 %v8374_v0  ;;  %v507_v25 = vld [vmem:[#allocation7 + $0xe8] sm:$0xff]  ;;  %v509_v28 = vld [vmem:[#allocation7 + $0xf8] sm:$0xff]  ;;  %v7269_v34 = vpack.c.bf16 %v500_v21, %v496_v16  ;;  %v506_v43 = vld [vmem:[#allocation7 + $0xe0] sm:$0xff] }
  0x73   :  { %767 = vmatprep.mubr.f32.mxu1 %v8374_v0  ;;  %4815 = vmatprep.subr.bf16.mxu0 %v7227_v31  ;;  %8610 = vst [vmem:[#allocation48_spill] sm:$0xff] %v7260_v18  ;;  %8611 = vst [vmem:[#allocation49_spill] sm:$0xff] %v7265_v33  ;;  %v7271_v37 = vpack.c.bf16 %v507_v25, %v503_v22  ;;  %v504_v51 = vld [vmem:[#allocation7 + $0xd0] sm:$0xff]  ;;  %v7274_v52 = vpack.c.bf16 %v509_v28, %v505_v26  ;;  %v511_v59 = vld [vmem:[#allocation7 + $0x108] sm:$0xff] }
  0x74   :  { %697 = vmatmul.mubr.f32.vlgmr.msra.gmra.mrb[0].mxu0 %v8374_v0  ;;  %4847 = vmatprep.subr.bf16.mxu1 %v7231_v39  ;;  %8612 = vst [vmem:[#allocation50_spill] sm:$0xff] %v7269_v34  ;;  %v508_v55 = vld [vmem:[#allocation7 + $0xf0] sm:$0xff]  ;;  %v515_v61 = vld [vmem:[#allocation7 + $0x128] sm:$0xff]  ;;  %v513_v62 = vld [vmem:[#allocation7 + $0x118] sm:$0xff]  ;;  %v7277_v3 = vpack.c.bf16 %v506_v43, %v502_v41 }
  0x75   :  { %768 = vmatmul.mubr.f32.vlgmr.msra.gmra.mrb[0].mxu1 %v8374_v0  ;;  %4817 = vmatpush1.bf16.msra.mxu0 %v7235_v44  ;;  %8613 = vst [vmem:[#allocation51_spill] sm:$0xff] %v7271_v37  ;;  %8614 = vst [vmem:[#allocation52_spill] sm:$0xff] %v7274_v52  ;;  %v517_v2 = vld [vmem:[#allocation7 + $0x138] sm:$0xff]  ;;  %v7281_v12 = vpack.c.bf16 %v508_v55, %v504_v51  ;;  %v7283_v15 = vpack.c.bf16 %v515_v61, %v511_v59  ;;  %v510_v16 = vld [vmem:[#allocation7 + $0x100] sm:$0xff] }
  0x76   :  { %4849 = vmatpush1.bf16.msra.mxu1 %v7239_v46  ;;  %4819 = vmatprep.subr.bf16.mxu0 %v7241_v48  ;;  %8615 = vst [vmem:[#allocation53_spill] sm:$0xff] %v7277_v3  ;;  %v514_v21 = vld [vmem:[#allocation7 + $0x120] sm:$0xff]  ;;  %v7286_v22 = vpack.c.bf16 %v517_v2, %v513_v62  ;;  %v512_v25 = vld [vmem:[#allocation7 + $0x110] sm:$0xff]  ;;  %v519_v43 = vld [vmem:[#allocation7 + $0x148] sm:$0xff] }
  0x77   :  { %4851 = vmatprep.subr.bf16.mxu1 %v7245_v56  ;;  %866 = vmatprep.mubr.f32.mxu0 %v8374_v0  ;;  %8616 = vst [vmem:[#allocation54_spill] sm:$0xff] %v7281_v12  ;;  %8617 = vst [vmem:[#allocation55_spill] sm:$0xff] %v7283_v15  ;;  %v516_v26 = vld [vmem:[#allocation7 + $0x130] sm:$0xff]  ;;  %v7289_v28 = vpack.c.bf16 %v514_v21, %v510_v16  ;;  %v523_v51 = vld [vmem:[#allocation7 + $0x168] sm:$0xff] }
  0x78   :  { %937 = vmatprep.mubr.f32.mxu1 %v8374_v0  ;;  %8618 = vst [vmem:[#allocation56_spill] sm:$0xff] %v7286_v22  ;;  %v7293_v41 = vpack.c.bf16 %v516_v26, %v512_v25  ;;  %v521_v55 = vld [vmem:[#allocation7 + $0x158] sm:$0xff]  ;;  %v7298_v59 = vpack.c.bf16 %v523_v51, %v519_v43  ;;  %v518_v62 = vld [vmem:[#allocation7 + $0x140] sm:$0xff]  ;;  %v520_v25 = vld [vmem:[#allocation7 + $0x150] sm:$0xff] }
  0x79   :  { %4821 = vmatpush1.bf16.msra.mxu0 %v7251_v6  ;;  %8619 = vst [vmem:[#allocation57_spill] sm:$0xff] %v7289_v28  ;;  %v525_v61 = vld [vmem:[#allocation7 + $0x178] sm:$0xff]  ;;  %v522_v2 = vld [vmem:[#allocation7 + $0x160] sm:$0xff]  ;;  %v524_v26 = vld [vmem:[#allocation7 + $0x170] sm:$0xff] }
  0x7a   :  { %4853 = vmatpush1.bf16.msra.mxu1 %v7255_v8  ;;  %4823 = vmatprep.subr.bf16.mxu0 %v7257_v11  ;;  %8620 = vst [vmem:[#allocation58_spill] sm:$0xff] %v7293_v41  ;;  %8621 = vst [vmem:[#allocation59_spill] sm:$0xff] %v7298_v59  ;;  %v7300_v16 = vpack.c.bf16 %v525_v61, %v521_v55  ;;  %v7302_v21 = vpack.c.bf16 %v522_v2, %v518_v62  ;;  %v531_v43 = vld [vmem:[#allocation7 + $0x1a8] sm:$0xff]  ;;  %v529_v51 = vld [vmem:[#allocation7 + $0x198] sm:$0xff] }
  0x7b   :  { %4855 = vmatprep.subr.bf16.mxu1 %v7260_v18  ;;  %v7305_v0 = vpack.c.bf16 %v524_v26, %v520_v25  ;;  %v533_v55 = vld [vmem:[#allocation7 + $0x1b8] sm:$0xff]  ;;  %v526_v61 = vld [vmem:[#allocation7 + $0x180] sm:$0xff]  ;;  %v528_v25 = vld [vmem:[#allocation7 + $0x190] sm:$0xff] }
  0x7c   :  { %8622 = vst [vmem:[#allocation60_spill] sm:$0xff] %v7300_v16  ;;  %8623 = vst [vmem:[#allocation61_spill] sm:$0xff] %v7302_v21  ;;  %v530_v62 = vld [vmem:[#allocation7 + $0x1a0] sm:$0xff]  ;;  %v7312_v2 = vpack.c.bf16 %v533_v55, %v529_v51  ;;  %v532_v26 = vld [vmem:[#allocation7 + $0x1b0] sm:$0xff] }
  0x7d   :  { %4825 = vmatpush1.bf16.msra.mxu0 %v7265_v33  ;;  %8624 = vst [vmem:[#allocation62_spill] sm:$0xff] %v7305_v0  ;;  %v541_v51 = vld [vmem:[#allocation7 + $0x1f8] sm:$0xff]  ;;  %v534_v55 = vld [vmem:[#allocation7 + $0x1c0] sm:$0xff] }
  0x7e   :  { %4857 = vmatpush1.bf16.msra.mxu1 %v7269_v34  ;;  %4827 = vmatprep.subr.bf16.mxu0 %v7271_v37  ;;  %8626 = vst [vmem:[#allocation64_spill] sm:$0xff] %v7312_v2 }
  0x7f   :  { %4859 = vmatprep.subr.bf16.mxu1 %v7274_v52 }
  0x81   :  { %4829 = vmatpush1.bf16.msra.mxu0 %v7277_v3  ;;  %v597_v3 = vld [vmem:[#allocation5 + $0x1b8] sm:$0xff] }
  0x82   :  { %4861 = vmatpush1.bf16.msra.mxu1 %v7281_v12  ;;  %4831 = vmatprep.subr.bf16.mxu0 %v7283_v15  ;;  %v595_v12 = vld [vmem:[#allocation5 + $0x1a8] sm:$0xff] }
  0x83   :  { %4863 = vmatprep.subr.bf16.mxu1 %v7286_v22  ;;  %v7314_v22 = vpack.c.bf16 %v530_v62, %v526_v61  ;;  %v538_v61 = vld [vmem:[#allocation7 + $0x1e0] sm:$0xff] }
  0x85   :  { %4833 = vmatpush1.bf16.msra.mxu0 %v7289_v28  ;;  %8627 = vst [vmem:[#allocation65_spill] sm:$0xff] %v7314_v22 }
  0x86   :  { %4865 = vmatpush1.bf16.msra.mxu1 %v7293_v41  ;;  %4835 = vmatprep.subr.bf16.mxu0 %v7298_v59  ;;  %v527_v41 = vld [vmem:[#allocation7 + $0x188] sm:$0xff]  ;;  %v7326_v59 = vpack.c.bf16 %v538_v61, %v534_v55  ;;  %v546_v55 = vld [vmem:[#allocation5 + $0x20] sm:$0xff] }
  0x87   :  { %4867 = vmatprep.subr.bf16.mxu1 %v7300_v16  ;;  %v7310_v28 = vpack.c.bf16 %v531_v43, %v527_v41  ;;  %v7317_v16 = vpack.c.bf16 %v532_v26, %v528_v25  ;;  %v539_v41 = vld [vmem:[#allocation7 + $0x1e8] sm:$0xff]  ;;  %v537_v43 = vld [vmem:[#allocation7 + $0x1d8] sm:$0xff]  ;;  %v536_v25 = vld [vmem:[#allocation7 + $0x1d0] sm:$0xff] }
  0x88   :  { %v7324_v62 = vpack.c.bf16 %v541_v51, %v537_v43  ;;  %8631 = vst [vmem:[#allocation69_spill] sm:$0xff] %v7326_v59  ;;  %v540_v26 = vld [vmem:[#allocation7 + $0x1f0] sm:$0xff]  ;;  %v549_v43 = vld [vmem:[#allocation5 + $0x38] sm:$0xff]  ;;  %v542_v51 = vld [vmem:[#allocation5] sm:$0xff] }
  0x89   :  { %4837 = vmatpush1.bf16.msra.mxu0 %v7302_v21  ;;  %8625 = vst [vmem:[#allocation63_spill] sm:$0xff] %v7310_v28  ;;  %8628 = vst [vmem:[#allocation66_spill] sm:$0xff] %v7317_v16 }
  0x8a   :  { %4869 = vmatpush1.bf16.msra.mxu1 %v7305_v0  ;;  %4839 = vmatprep.subr.bf16.mxu0 %v7310_v28  ;;  %v535_v0 = vld [vmem:[#allocation7 + $0x1c8] sm:$0xff]  ;;  %8630 = vst [vmem:[#allocation68_spill] sm:$0xff] %v7324_v62  ;;  %v7338_v28 = vpack.c.bf16 %v546_v55, %v542_v51  ;;  %v550_v51 = vld [vmem:[#allocation5 + $0x40] sm:$0xff] }
  0x8b   :  { %4871 = vmatprep.subr.bf16.mxu1 %v7312_v2  ;;  %v7322_v21 = vpack.c.bf16 %v539_v41, %v535_v0  ;;  %v7329_v2 = vpack.c.bf16 %v540_v26, %v536_v25  ;;  %v547_v0 = vld [vmem:[#allocation5 + $0x28] sm:$0xff]  ;;  %v545_v41 = vld [vmem:[#allocation5 + $0x18] sm:$0xff]  ;;  %v544_v25 = vld [vmem:[#allocation5 + $0x10] sm:$0xff] }
  0x8c   :  { %v7336_v61 = vpack.c.bf16 %v549_v43, %v545_v41  ;;  %8635 = vst [vmem:[#allocation73_spill] sm:$0xff] %v7338_v28  ;;  %v548_v26 = vld [vmem:[#allocation5 + $0x30] sm:$0xff]  ;;  %v557_v43 = vld [vmem:[#allocation5 + $0x78] sm:$0xff]  ;;  %v554_v55 = vld [vmem:[#allocation5 + $0x60] sm:$0xff] }
  0x8d   :  { %4841 = vmatpush1.bf16.msra.mxu0 %v7314_v22  ;;  %8629 = vst [vmem:[#allocation67_spill] sm:$0xff] %v7322_v21  ;;  %8632 = vst [vmem:[#allocation70_spill] sm:$0xff] %v7329_v2 }
  0x8e   :  { %4873 = vmatpush1.bf16.msra.mxu1 %v7317_v16  ;;  %4843 = vmatprep.subr.bf16.mxu0 %v7322_v21  ;;  %v543_v16 = vld [vmem:[#allocation5 + $0x8] sm:$0xff]  ;;  %8634 = vst [vmem:[#allocation72_spill] sm:$0xff] %v7336_v61 }
  0x8f   :  { %4875 = vmatprep.subr.bf16.mxu1 %v7324_v62  ;;  %v7334_v22 = vpack.c.bf16 %v547_v0, %v543_v16  ;;  %v8636_v62 = vmov 0.0   ;;  %v551_v16 = vld [vmem:[#allocation5 + $0x48] sm:$0xff] }
  0x90   :  { %v555_v0 = vld [vmem:[#allocation5 + $0x68] sm:$0xff] }
  0x91   :  { %4845 = vmatpush1.bf16.msra.mxu0 %v7326_v59  ;;  %8633 = vst [vmem:[#allocation71_spill] sm:$0xff] %v7334_v22  ;;  %v7342_v59 = vpack.c.bf16 %v548_v26, %v544_v25  ;;  %v7348_v41 = vpack.c.bf16 %v555_v0, %v551_v16  ;;  %v7352_v25 = vpack.c.bf16 %v554_v55, %v550_v51  ;;  %v552_v26 = vld [vmem:[#allocation5 + $0x50] sm:$0xff]  ;;  %v559_v16 = vld [vmem:[#allocation5 + $0x88] sm:$0xff]  ;;  %v558_v51 = vld [vmem:[#allocation5 + $0x80] sm:$0xff] }
  0x92   :  { %4877 = vmatpush1.bf16.msra.mxu1 %v7329_v2  ;;  %4879 = vmatprep.subr.bf16.mxu0 %v7334_v22  ;;  %v553_v2 = vld [vmem:[#allocation5 + $0x58] sm:$0xff]  ;;  %v563_v0 = vld [vmem:[#allocation5 + $0xa8] sm:$0xff]  ;;  %v562_v55 = vld [vmem:[#allocation5 + $0xa0] sm:$0xff] }
  0x93   :  { %8637 = vst [vmem:[#allocation74_spill] sm:$0xff] %v7342_v59  ;;  %4911 = vmatprep.subr.bf16.mxu1 %v7336_v61  ;;  %8638 = vst [vmem:[#allocation75_spill] sm:$0xff] %v7348_v41  ;;  %v7350_v22 = vpack.c.bf16 %v557_v43, %v553_v2  ;;  %v556_v61 = vld [vmem:[#allocation5 + $0x70] sm:$0xff]  ;;  %v7362_v2 = vpack.c.bf16 %v563_v0, %v559_v16  ;;  %v565_v43 = vld [vmem:[#allocation5 + $0xb8] sm:$0xff]  ;;  %v7366_v15 = vpack.c.bf16 %v562_v55, %v558_v51 }
  0x94   :  { %867 = vmatmul.mubr.f32.vlgmr.msra.gmra.mrb[16].mxu0 %v8636_v62  ;;  %8640 = vst [vmem:[#allocation77_spill] sm:$0xff] %v7352_v25  ;;  %v566_v0 = vld [vmem:[#allocation5 + $0xc0] sm:$0xff] }
  0x95   :  { %938 = vmatmul.mubr.f32.vlgmr.msra.gmra.mrb[16].mxu1 %v8636_v62  ;;  %4881 = vmatpush1.bf16.msra.mxu0 %v7338_v28  ;;  %8639 = vst [vmem:[#allocation76_spill] sm:$0xff] %v7350_v22  ;;  %v7357_v28 = vpack.c.bf16 %v556_v61, %v552_v26  ;;  %8642 = vst [vmem:[#allocation79_spill] sm:$0xff] %v7362_v2  ;;  %v560_v61 = vld [vmem:[#allocation5 + $0x90] sm:$0xff] }
  0x96   :  { %4913 = vmatpush1.bf16.msra.mxu1 %v7342_v59  ;;  %1008 = vmatprep.mubr.f32.mxu0 %v8636_v62  ;;  %v561_v59 = vld [vmem:[#allocation5 + $0x98] sm:$0xff]  ;;  %8644 = vst [vmem:[#allocation81_spill] sm:$0xff] %v7366_v15  ;;  %v564_v26 = vld [vmem:[#allocation5 + $0xb0] sm:$0xff] }
  0x97   :  { %1079 = vmatprep.mubr.f32.mxu1 %v8636_v62  ;;  %4883 = vmatprep.subr.bf16.mxu0 %v7348_v41  ;;  %8641 = vst [vmem:[#allocation78_spill] sm:$0xff] %v7357_v28  ;;  %v7364_v21 = vpack.c.bf16 %v565_v43, %v561_v59  ;;  %v571_v41 = vld [vmem:[#allocation5 + $0xe8] sm:$0xff]  ;;  %v573_v59 = vld [vmem:[#allocation5 + $0xf8] sm:$0xff]  ;;  %v570_v43 = vld [vmem:[#allocation5 + $0xe0] sm:$0xff] }
  0x98   :  { %4915 = vmatprep.subr.bf16.mxu1 %v7350_v22  ;;  %v7369_v22 = vpack.c.bf16 %v564_v26, %v560_v61  ;;  %v7378_v55 = vpack.c.bf16 %v570_v43, %v566_v0  ;;  %v568_v61 = vld [vmem:[#allocation5 + $0xd0] sm:$0xff] }
  0x99   :  { %4885 = vmatpush1.bf16.msra.mxu0 %v7352_v25  ;;  %8643 = vst [vmem:[#allocation80_spill] sm:$0xff] %v7364_v21  ;;  %v567_v25 = vld [vmem:[#allocation5 + $0xc8] sm:$0xff]  ;;  %v572_v26 = vld [vmem:[#allocation5 + $0xf0] sm:$0xff] }
  0x9a   :  { %4917 = vmatpush1.bf16.msra.mxu1 %v7357_v28  ;;  %4887 = vmatprep.subr.bf16.mxu0 %v7362_v2  ;;  %8645 = vst [vmem:[#allocation82_spill] sm:$0xff] %v7369_v22  ;;  %v569_v28 = vld [vmem:[#allocation5 + $0xd8] sm:$0xff]  ;;  %v7374_v16 = vpack.c.bf16 %v571_v41, %v567_v25  ;;  %8648 = vst [vmem:[#allocation85_spill] sm:$0xff] %v7378_v55  ;;  %v579_v2 = vld [vmem:[#allocation5 + $0x128] sm:$0xff] }
  0x9b   :  { %4919 = vmatprep.subr.bf16.mxu1 %v7364_v21  ;;  %v7376_v51 = vpack.c.bf16 %v573_v59, %v569_v28  ;;  %v7381_v21 = vpack.c.bf16 %v572_v26, %v568_v61  ;;  %v581_v28 = vld [vmem:[#allocation5 + $0x138] sm:$0xff]  ;;  %v574_v25 = vld [vmem:[#allocation5 + $0x100] sm:$0xff]  ;;  %v576_v61 = vld [vmem:[#allocation5 + $0x110] sm:$0xff] }
  0x9c   :  { %8646 = vst [vmem:[#allocation83_spill] sm:$0xff] %v7374_v16  ;;  %v578_v59 = vld [vmem:[#allocation5 + $0x120] sm:$0xff]  ;;  %v580_v26 = vld [vmem:[#allocation5 + $0x130] sm:$0xff] }
  0x9d   :  { %4889 = vmatpush1.bf16.msra.mxu0 %v7366_v15  ;;  %8647 = vst [vmem:[#allocation84_spill] sm:$0xff] %v7376_v51  ;;  %8649 = vst [vmem:[#allocation86_spill] sm:$0xff] %v7381_v21  ;;  %v575_v15 = vld [vmem:[#allocation5 + $0x108] sm:$0xff]  ;;  %v7390_v43 = vpack.c.bf16 %v578_v59, %v574_v25 }
  0x9e   :  { %4921 = vmatpush1.bf16.msra.mxu1 %v7369_v22  ;;  %4891 = vmatprep.subr.bf16.mxu0 %v7374_v16  ;;  %v577_v22 = vld [vmem:[#allocation5 + $0x118] sm:$0xff]  ;;  %v7386_v41 = vpack.c.bf16 %v579_v2, %v575_v15  ;;  %v587_v16 = vld [vmem:[#allocation5 + $0x168] sm:$0xff]  ;;  %v582_v2 = vld [vmem:[#allocation5 + $0x140] sm:$0xff] }
  0x9f   :  { %4923 = vmatprep.subr.bf16.mxu1 %v7376_v51  ;;  %v7388_v0 = vpack.c.bf16 %v581_v28, %v577_v22  ;;  %8652 = vst [vmem:[#allocation89_spill] sm:$0xff] %v7390_v43  ;;  %v7393_v51 = vpack.c.bf16 %v580_v26, %v576_v61  ;;  %v589_v22 = vld [vmem:[#allocation5 + $0x178] sm:$0xff]  ;;  %v586_v28 = vld [vmem:[#allocation5 + $0x160] sm:$0xff]  ;;  %v584_v61 = vld [vmem:[#allocation5 + $0x150] sm:$0xff] }
  0xa0   :  { %8650 = vst [vmem:[#allocation87_spill] sm:$0xff] %v7386_v41  ;;  %v7402_v59 = vpack.c.bf16 %v586_v28, %v582_v2  ;;  %v588_v26 = vld [vmem:[#allocation5 + $0x170] sm:$0xff] }
  0xa1   :  { %4893 = vmatpush1.bf16.msra.mxu0 %v7378_v55  ;;  %8651 = vst [vmem:[#allocation88_spill] sm:$0xff] %v7388_v0  ;;  %8653 = vst [vmem:[#allocation90_spill] sm:$0xff] %v7393_v51  ;;  %v583_v55 = vld [vmem:[#allocation5 + $0x148] sm:$0xff]  ;;  %v592_v2 = vld [vmem:[#allocation5 + $0x190] sm:$0xff] }
  0xa2   :  { %4925 = vmatpush1.bf16.msra.mxu1 %v7381_v21  ;;  %4895 = vmatprep.subr.bf16.mxu0 %v7386_v41  ;;  %v585_v21 = vld [vmem:[#allocation5 + $0x158] sm:$0xff]  ;;  %v7398_v15 = vpack.c.bf16 %v587_v16, %v583_v55  ;;  %8656 = vst [vmem:[#allocation93_spill] sm:$0xff] %v7402_v59  ;;  %v591_v41 = vld [vmem:[#allocation5 + $0x188] sm:$0xff] }
  0xa3   :  { %4927 = vmatprep.subr.bf16.mxu1 %v7388_v0  ;;  %v7400_v25 = vpack.c.bf16 %v589_v22, %v585_v21  ;;  %v7405_v0 = vpack.c.bf16 %v588_v26, %v584_v61  ;;  %v7408_v16 = vpack.c.bf16 %v595_v12, %v591_v41  ;;  %v590_v21 = vld [vmem:[#allocation5 + $0x180] sm:$0xff]  ;;  %v596_v61 = vld [vmem:[#allocation5 + $0x1b0] sm:$0xff]  ;;  %v599_v26 = vld [vmem:[#allocation5 + $0x1c8] sm:$0xff] }
  0xa4   :  { %8654 = vst [vmem:[#allocation91_spill] sm:$0xff] %v7398_v15  ;;  %v594_v22 = vld [vmem:[#allocation5 + $0x1a0] sm:$0xff]  ;;  %v7418_v12 = vpack.c.bf16 %v596_v61, %v592_v2  ;;  %v601_v41 = vld [vmem:[#allocation5 + $0x1d8] sm:$0xff] }
  0xa5   :  { %4897 = vmatpush1.bf16.msra.mxu0 %v7390_v43  ;;  %8655 = vst [vmem:[#allocation92_spill] sm:$0xff] %v7400_v25  ;;  %8657 = vst [vmem:[#allocation94_spill] sm:$0xff] %v7405_v0  ;;  %v593_v43 = vld [vmem:[#allocation5 + $0x198] sm:$0xff]  ;;  %v7414_v28 = vpack.c.bf16 %v594_v22, %v590_v21  ;;  %v604_v21 = vld [vmem:[#allocation5 + $0x1f0] sm:$0xff] }
  0xa6   :  { %4929 = vmatpush1.bf16.msra.mxu1 %v7393_v51  ;;  %4899 = vmatprep.subr.bf16.mxu0 %v7398_v15  ;;  %8658 = vst [vmem:[#allocation95_spill] sm:$0xff] %v7408_v16  ;;  %v7410_v55 = vpack.c.bf16 %v597_v3, %v593_v43  ;;  %v603_v15 = vld [vmem:[#allocation5 + $0x1e8] sm:$0xff]  ;;  %8661 = vst [vmem:[#allocation98_spill] sm:$0xff] %v7418_v12  ;;  %v605_v43 = vld [vmem:[#allocation5 + $0x1f8] sm:$0xff] }
  0xa7   :  { %4931 = vmatprep.subr.bf16.mxu1 %v7400_v25  ;;  %8660 = vst [vmem:[#allocation97_spill] sm:$0xff] %v7414_v28  ;;  %v7420_v3 = vpack.c.bf16 %v603_v15, %v599_v26  ;;  %v598_v25 = vld [vmem:[#allocation5 + $0x1c0] sm:$0xff]  ;;  %v7422_v51 = vpack.c.bf16 %v605_v43, %v601_v41  ;;  %v111_v15 = vlaneseq }
  0xa8   :  { %8659 = vst [vmem:[#allocation96_spill] sm:$0xff] %v7410_v55 }
  0xa9   :  { %4901 = vmatpush1.bf16.msra.mxu0 %v7402_v59  ;;  %8662 = vst [vmem:[#allocation99_spill] sm:$0xff] %v7420_v3  ;;  %8663 = vst [vmem:[#allocation100_spill] sm:$0xff] %v7422_v51  ;;  %v602_v59 = vld [vmem:[#allocation5 + $0x1e0] sm:$0xff]  ;;  %v7436_v2 = vshrl.u32 %v111_v15, 7 }
  0xaa   :  { %4933 = vmatpush1.bf16.msra.mxu1 %v7405_v0  ;;  %4903 = vmatprep.subr.bf16.mxu0 %v7408_v16  ;;  %v600_v0 = vld [vmem:[#allocation5 + $0x1d0] sm:$0xff]  ;;  %v7426_v22 = vpack.c.bf16 %v602_v59, %v598_v25 }
  0xab   :  { %4935 = vmatprep.subr.bf16.mxu1 %v7410_v55  ;;  %v7428_v16 = vpack.c.bf16 %v604_v21, %v600_v0  ;;  %v8472_v25 = vsub.s32 0, %v7436_v2  ;;  %v109_v0 = vld [vmem:[%s8367_s3] sm:$0xf]  ;;  %v8473_v59 = vsub.s32 1, %v7436_v2  ;;  %v8480_v43 = vsub.s32 3, %v7436_v2 }
  0xac   :  { %8664 = vst [vmem:[#allocation101_spill] sm:$0xff] %v7426_v22 }
  0xad   :  { %4905 = vmatpush1.bf16.msra.mxu0 %v7414_v28  ;;  %8665 = vst [vmem:[#allocation102_spill] sm:$0xff] %v7428_v16  ;;  %v7445_v61 = vrot.slane %v109_v0, %v8472_v25  ;;  %v7449_v26 = vrot.slane %v109_v0, %v8473_v59  ;;  %v7456_v25 = vrot.slane %v109_v0, %v8480_v43  ;;  %v8489_v59 = vsub.s32 2, %v7436_v2 }
  0xae   :  { %4937 = vmatpush1.bf16.msra.mxu1 %v7418_v12  ;;  %4907 = vmatprep.subr.bf16.mxu0 %v7420_v3 }
  0xaf   :  { %4939 = vmatprep.subr.bf16.mxu1 %v7422_v51  ;;  %8666 = vst [vmem:[#allocation103_spill] sm:$0xff] %v7445_v61  ;;  %8667 = vst [vmem:[#allocation104_spill] sm:$0xff] %v7449_v26 }
  0xb0   :  { %8668 = vst [vmem:[#allocation105_spill] sm:$0xff] %v7456_v25 }
  0xb1   :  { %4909 = vmatpush1.bf16.msra.mxu0 %v7426_v22 }
  0xb2   :  { %4941 = vmatpush1.bf16.msra.mxu1 %v7428_v16  ;;  %4943 = vmatprep.subr.bf16.mxu0 %v6902_v29 }
  0xb3   :  { %4975 = vmatprep.subr.bf16.mxu1 %v6904_v30 }
 0x147   :  { %v698_v41 = vpop.f32.mrb[0].mxu0 }
 0x148   :  { %v6310_v21 = vadd.f32 %v698_v41, %v7445_v61  ;;  %v769_v15 = vpop.f32.mrb[0].mxu1  ;;  %v700_v30 = vpop.f32.mrb[1].mxu0  ;;  %v7462_v41 = vrot.slane %v109_v0, %v8489_v59  ;;  %v8684_v59 = vld [vmem:[#allocation68_spill] sm:$0xff] }
 0x149   :  { %v6311_v29 = vadd.f32 %v700_v30, %v7449_v26  ;;  %v771_v16 = vpop.f32.mrb[1].mxu1 }
 0x14a   :  { %v4633_v22 = vmul.f32 -1.442695, %v6310_v21  ;;  %v6327_v3 = vadd.f32 %v771_v16, %v7456_v25  ;;  %v6326_v30 = vadd.f32 %v769_v15, %v7462_v41 }
 0x14b   :  { %v4634_v51 = vmul.f32 -1.442695, %v6311_v29 }
 0x14c   :  { %6415 = vpow2.f32 %v4633_v22  ;;  %v4635_v12 = vmul.f32 -1.442695, %v6327_v3 }
 0x14d   :  { %6417 = vpow2.f32 %v4634_v51 }
 0x14e   :  { %6419 = vpow2.f32 %v4635_v12  ;;  %v8670_v12 = vld [vmem:[#allocation54_spill] sm:$0xff] }
 0x14f   :  { %6421 = vtanh.f32 %v6326_v30  ;;  %v8675_v30 = vld [vmem:[#allocation59_spill] sm:$0xff] }
 0x156   :  { %v6416_v28 = vpop.eup %6415 }
 0x157   :  { %v6418_v21 = vpop.eup %6417  ;;  %v781_v29 = vadd.f32 1.0, %v6416_v28 }
 0x158   :  { %v787_v43 = vadd.f32 1.0, %v6418_v21  ;;  %v6420_v22 = vpop.eup %6419  ;;  %v8676_v21 = vld [vmem:[#allocation60_spill] sm:$0xff] }
 0x159   :  { %6423 = vrcp.f32 %v781_v29  ;;  %v6422_v55 = vpop.eup %6421  ;;  %v794_v25 = vadd.f32 1.0, %v6420_v22  ;;  %v8677_v29 = vld [vmem:[#allocation61_spill] sm:$0xff]  ;;  %v8678_v22 = vld [vmem:[#allocation62_spill] sm:$0xff] }
 0x15a   :  { %6425 = vrcp.f32 %v787_v43  ;;  %v8674_v43 = vld [vmem:[#allocation58_spill] sm:$0xff] }
 0x15b   :  { %6427 = vrcp.f32 %v794_v25  ;;  %v8671_v25 = vld [vmem:[#allocation55_spill] sm:$0xff] }
 0x163   :  { %v6424_v51 = vpop.eup %6423 }
 0x164   :  { %v6426_v26 = vpop.eup %6425  ;;  %v798_v16 = vmul.f32 %v6424_v51, %v6422_v55  ;;  %v8669_v55 = vld [vmem:[#allocation53_spill] sm:$0xff]  ;;  %v8679_v51 = vld [vmem:[#allocation63_spill] sm:$0xff] }
 0x165   :  { %v797_v61 = vmul.f32 0.0, %v6426_v26  ;;  %v6428_v3 = vpop.eup %6427  ;;  %v8673_v26 = vld [vmem:[#allocation57_spill] sm:$0xff] }
 0x167   :  { %v7465_v0 = vadd.f32 %v798_v16, %v797_v61  ;;  %v8672_v61 = vld [vmem:[#allocation56_spill] sm:$0xff] }
 0x168   :  { %v8680_v16 = vld [vmem:[#allocation64_spill] sm:$0xff] }
 0x169   :  { %6429 = vtanh.f32 %v7465_v0 }
 0x173   :  { %v6430_v15 = vpop.eup %6429 }
 0x174   :  { %v801_v28 = vmul.f32 %v6430_v15, %v6428_v3  ;;  %v8681_v3 = vld [vmem:[#allocation65_spill] sm:$0xff]  ;;  %v8682_v15 = vld [vmem:[#allocation66_spill] sm:$0xff] }
 0x176   :  { %1009 = vmatmul.mubr.f32.vlgmr.msra.gmra.mrb[16].mxu0 %v801_v28  ;;  %1080 = vmatmul.mubr.f32.vlgmr.msra.gmra.mrb[16].mxu1 %v801_v28 }
 0x177   :  { %4945 = vmatpush1.bf16.msra.mxu0 %v6918_v35  ;;  %4977 = vmatpush1.bf16.msra.mxu1 %v6927_v38 }
 0x178   :  { %4947 = vmatprep.subr.bf16.mxu0 %v6939_v42  ;;  %4979 = vmatprep.subr.bf16.mxu1 %v6954_v47 }
 0x179   :  { %1182 = vmatprep.mubr.f32.mxu0 %v8636_v62  ;;  %1253 = vmatprep.mubr.f32.mxu1 %v8636_v62 }
 0x17b   :  { %4949 = vmatpush1.bf16.msra.mxu0 %v6964_v50  ;;  %4981 = vmatpush1.bf16.msra.mxu1 %v6977_v54 }
 0x17c   :  { %4951 = vmatprep.subr.bf16.mxu0 %v6987_v57  ;;  %4983 = vmatprep.subr.bf16.mxu1 %v6997_v60 }
 0x17f   :  { %4953 = vmatpush1.bf16.msra.mxu0 %v7010_v1  ;;  %4985 = vmatpush1.bf16.msra.mxu1 %v7020_v4 }
 0x180   :  { %4955 = vmatprep.subr.bf16.mxu0 %v7030_v7  ;;  %4987 = vmatprep.subr.bf16.mxu1 %v7040_v10 }
 0x183   :  { %4957 = vmatpush1.bf16.msra.mxu0 %v7053_v14  ;;  %4989 = vmatpush1.bf16.msra.mxu1 %v7063_v17 }
 0x184   :  { %4959 = vmatprep.subr.bf16.mxu0 %v7073_v20  ;;  %4991 = vmatprep.subr.bf16.mxu1 %v7083_v23 }
 0x187   :  { %4961 = vmatpush1.bf16.msra.mxu0 %v7096_v27  ;;  %4993 = vmatpush1.bf16.msra.mxu1 %v7106_v32 }
 0x188   :  { %4963 = vmatprep.subr.bf16.mxu0 %v7116_v36  ;;  %4995 = vmatprep.subr.bf16.mxu1 %v7126_v40 }
 0x18b   :  { %4965 = vmatpush1.bf16.msra.mxu0 %v7139_v45  ;;  %4997 = vmatpush1.bf16.msra.mxu1 %v7149_v49 }
 0x18c   :  { %4967 = vmatprep.subr.bf16.mxu0 %v7159_v53  ;;  %4999 = vmatprep.subr.bf16.mxu1 %v7169_v58 }
 0x18f   :  { %4969 = vmatpush1.bf16.msra.mxu0 %v7182_v63  ;;  %5001 = vmatpush1.bf16.msra.mxu1 %v7192_v5 }
 0x190   :  { %4971 = vmatprep.subr.bf16.mxu0 %v7202_v9  ;;  %5003 = vmatprep.subr.bf16.mxu1 %v7212_v13 }
 0x193   :  { %4973 = vmatpush1.bf16.msra.mxu0 %v7219_v19  ;;  %5005 = vmatpush1.bf16.msra.mxu1 %v7223_v24 }
 0x194   :  { %5007 = vmatprep.subr.bf16.mxu0 %v7227_v31  ;;  %5039 = vmatprep.subr.bf16.mxu1 %v7231_v39 }
 0x196   :  { %1183 = vmatmul.mubr.f32.vlgmr.msra.gmra.mrb[2].mxu0 %v801_v28  ;;  %1254 = vmatmul.mubr.f32.vlgmr.msra.gmra.mrb[2].mxu1 %v801_v28  ;;  %v8683_v28 = vld [vmem:[#allocation67_spill] sm:$0xff] }
 0x197   :  { %5009 = vmatpush1.bf16.msra.mxu0 %v7235_v44  ;;  %5041 = vmatpush1.bf16.msra.mxu1 %v7239_v46 }
 0x198   :  { %5011 = vmatprep.subr.bf16.mxu0 %v7241_v48  ;;  %5043 = vmatprep.subr.bf16.mxu1 %v7245_v56 }
 0x199   :  { %1352 = vmatprep.mubr.f32.mxu0 %v8636_v62  ;;  %1423 = vmatprep.mubr.f32.mxu1 %v8636_v62 }
 0x19b   :  { %5013 = vmatpush1.bf16.msra.mxu0 %v7251_v6  ;;  %5045 = vmatpush1.bf16.msra.mxu1 %v7255_v8 }
 0x19c   :  { %5015 = vmatprep.subr.bf16.mxu0 %v7257_v11  ;;  %5047 = vmatprep.subr.bf16.mxu1 %v7260_v18 }
 0x19f   :  { %5017 = vmatpush1.bf16.msra.mxu0 %v7265_v33  ;;  %5049 = vmatpush1.bf16.msra.mxu1 %v7269_v34 }
 0x1a0   :  { %5019 = vmatprep.subr.bf16.mxu0 %v7271_v37  ;;  %5051 = vmatprep.subr.bf16.mxu1 %v7274_v52 }
 0x1a3   :  { %5021 = vmatpush1.bf16.msra.mxu0 %v8669_v55  ;;  %5053 = vmatpush1.bf16.msra.mxu1 %v8670_v12 }
 0x1a4   :  { %5023 = vmatprep.subr.bf16.mxu0 %v8671_v25  ;;  %5055 = vmatprep.subr.bf16.mxu1 %v8672_v61 }
 0x1a7   :  { %5025 = vmatpush1.bf16.msra.mxu0 %v8673_v26  ;;  %5057 = vmatpush1.bf16.msra.mxu1 %v8674_v43  ;;  %v8685_v43 = vld [vmem:[#allocation69_spill] sm:$0xff] }
 0x1a8   :  { %5027 = vmatprep.subr.bf16.mxu0 %v8675_v30  ;;  %5059 = vmatprep.subr.bf16.mxu1 %v8676_v21  ;;  %v8686_v30 = vld [vmem:[#allocation70_spill] sm:$0xff]  ;;  %v8687_v21 = vld [vmem:[#allocation71_spill] sm:$0xff] }
 0x1ab   :  { %5029 = vmatpush1.bf16.msra.mxu0 %v8677_v29  ;;  %5061 = vmatpush1.bf16.msra.mxu1 %v8678_v22  ;;  %v8688_v29 = vld [vmem:[#allocation72_spill] sm:$0xff] }
 0x1ac   :  { %5031 = vmatprep.subr.bf16.mxu0 %v8679_v51  ;;  %5063 = vmatprep.subr.bf16.mxu1 %v8680_v16  ;;  %v606_v22 = vld [vmem:[#allocation8] sm:$0xf]  ;;  %v8689_v51 = vsub.s32 0, %v7436_v2 }
 0x1ae   :  { %v7538_v16 = vrot.slane %v606_v22, %v8689_v51 }
 0x1af   :  { %5033 = vmatpush1.bf16.msra.mxu0 %v8681_v3  ;;  %5065 = vmatpush1.bf16.msra.mxu1 %v8682_v15  ;;  %v8691_v3 = vsub.s32 1, %v7436_v2 }
 0x1b0   :  { %5035 = vmatprep.subr.bf16.mxu0 %v8683_v28  ;;  %5067 = vmatprep.subr.bf16.mxu1 %v8684_v59  ;;  %8690 = vst [vmem:[#allocation106_spill] sm:$0xff] %v7538_v16 }
 0x1b1   :  { %v7542_v15 = vrot.slane %v606_v22, %v8691_v3  ;;  %v8695_v3 = vsub.s32 2, %v7436_v2 }
 0x1b3   :  { %5037 = vmatpush1.bf16.msra.mxu0 %v8685_v43  ;;  %5069 = vmatpush1.bf16.msra.mxu1 %v8686_v30  ;;  %8692 = vst [vmem:[#allocation107_spill] sm:$0xff] %v7542_v15  ;;  %v7553_v55 = vrot.slane %v606_v22, %v8695_v3 }
 0x1b4   :  { %5071 = vmatprep.subr.bf16.mxu0 %v8687_v21  ;;  %5103 = vmatprep.subr.bf16.mxu1 %v8688_v29  ;;  %v8693_v29 = vsub.s32 3, %v7436_v2 }
 0x1b5   :  { %8696 = vst [vmem:[#allocation109_spill] sm:$0xff] %v7553_v55 }
 0x1b6   :  { %v7548_v12 = vrot.slane %v606_v22, %v8693_v29 }
 0x1b8   :  { %8694 = vst [vmem:[#allocation108_spill] sm:$0xff] %v7548_v12 }
 0x249   :  { %v1010_v28 = vpop.f32.mrb[16].mxu0  ;;  %v1081_v26 = vpop.f32.mrb[16].mxu1 }
 0x24a   :  { %v1086_v59 = vadd.f32 %v1010_v28, %v7538_v16  ;;  %v1012_v43 = vpop.f32.mrb[17].mxu0  ;;  %v1083_v61 = vpop.f32.mrb[17].mxu1  ;;  %v1088_v28 = vadd.f32 %v1081_v26, %v7553_v55  ;;  %v8698_v26 = vld [vmem:[#allocation103_spill] sm:$0xff] }
 0x24b   :  { %v1087_v30 = vadd.f32 %v1012_v43, %v7542_v15  ;;  %v1089_v51 = vadd.f32 %v1083_v61, %v7548_v12 }
 0x24c   :  { %v4636_v21 = vmul.f32 -1.442695, %v1086_v59 }
 0x24d   :  { %v4637_v25 = vmul.f32 -1.442695, %v1087_v30  ;;  %v4638_v52 = vmul.f32 -1.442695, %v1089_v51 }
 0x24e   :  { %6431 = vpow2.f32 %v4636_v21 }
 0x24f   :  { %6433 = vpow2.f32 %v4637_v25 }
 0x250   :  { %6435 = vpow2.f32 %v4638_v52 }
 0x251   :  { %6437 = vtanh.f32 %v1088_v28 }
 0x258   :  { %v6432_v16 = vpop.eup %6431 }
 0x259   :  { %v6434_v37 = vpop.eup %6433  ;;  %v1093_v43 = vadd.f32 1.0, %v6432_v16 }
 0x25a   :  { %v1099_v59 = vadd.f32 1.0, %v6434_v37  ;;  %v6436_v30 = vpop.eup %6435  ;;  %v8699_v37 = vld [vmem:[#allocation104_spill] sm:$0xff] }
 0x25b   :  { %6439 = vrcp.f32 %v1093_v43  ;;  %v6438_v21 = vpop.eup %6437  ;;  %v1106_v12 = vadd.f32 1.0, %v6436_v30 }
 0x25c   :  { %6441 = vrcp.f32 %v1099_v59 }
 0x25d   :  { %6443 = vrcp.f32 %v1106_v12 }
 0x265   :  { %v6440_v25 = vpop.eup %6439 }
 0x266   :  { %v6442_v29 = vpop.eup %6441  ;;  %v1110_v61 = vmul.f32 %v6440_v25, %v6438_v21  ;;  %v8700_v21 = vld [vmem:[#allocation105_spill] sm:$0xff] }
 0x267   :  { %v1109_v2 = vmul.f32 0.0, %v6442_v29  ;;  %v6444_v25 = vpop.eup %6443 }
 0x269   :  { %v7556_v22 = vadd.f32 %v1110_v61, %v1109_v2  ;;  %v1184_v51 = vpop.f32.mrb[2].mxu0  ;;  %v1255_v3 = vpop.f32.mrb[2].mxu1 }
 0x26a   :  { %v6312_v55 = vadd.f32 %v1184_v51, %v8698_v26  ;;  %v1186_v16 = vpop.f32.mrb[3].mxu0  ;;  %v1257_v52 = vpop.f32.mrb[3].mxu1  ;;  %v6328_v2 = vadd.f32 %v1255_v3, %v7462_v41  ;;  %v8705_v3 = vld [vmem:[#allocation77_spill] sm:$0xff] }
 0x26b   :  { %8697 = vst [vmem:[#allocation110_spill] sm:$0xff] %v7556_v22  ;;  %6445 = vtanh.f32 %v7556_v22  ;;  %v6313_v28 = vadd.f32 %v1186_v16, %v8699_v37  ;;  %v6329_v30 = vadd.f32 %v1257_v52, %v8700_v21  ;;  %v8701_v22 = vld [vmem:[#allocation73_spill] sm:$0xff]  ;;  %v8704_v52 = vld [vmem:[#allocation76_spill] sm:$0xff] }
 0x26c   :  { %v4639_v43 = vmul.f32 -1.442695, %v6312_v55  ;;  %v8702_v55 = vld [vmem:[#allocation74_spill] sm:$0xff] }
 0x26d   :  { %v4640_v59 = vmul.f32 -1.442695, %v6313_v28  ;;  %v4641_v61 = vmul.f32 -1.442695, %v6329_v30  ;;  %v8703_v28 = vld [vmem:[#allocation75_spill] sm:$0xff]  ;;  %v8709_v30 = vld [vmem:[#allocation81_spill] sm:$0xff] }
 0x26e   :  { %6447 = vpow2.f32 %v4639_v43  ;;  %v8707_v43 = vld [vmem:[#allocation79_spill] sm:$0xff] }
 0x26f   :  { %6449 = vpow2.f32 %v4640_v59  ;;  %v8708_v59 = vld [vmem:[#allocation80_spill] sm:$0xff] }
 0x270   :  { %6451 = vpow2.f32 %v4641_v61 }
 0x271   :  { %6453 = vtanh.f32 %v6328_v2 }
 0x275   :  { %v6446_v29 = vpop.eup %6445 }
 0x276   :  { %v1113_v12 = vmul.f32 %v6446_v29, %v6444_v25  ;;  %v8710_v25 = vld [vmem:[#allocation82_spill] sm:$0xff]  ;;  %v8711_v29 = vld [vmem:[#allocation83_spill] sm:$0xff] }
 0x278   :  { %v6448_v15 = vpop.eup %6447  ;;  %1353 = vmatmul.mubr.f32.vlgmr.msra.gmra.mrb[18].mxu0 %v1113_v12  ;;  %1424 = vmatmul.mubr.f32.vlgmr.msra.gmra.mrb[18].mxu1 %v1113_v12 }
 0x279   :  { %v6450_v51 = vpop.eup %6449  ;;  %v1267_v26 = vadd.f32 1.0, %v6448_v15  ;;  %5073 = vmatpush1.bf16.msra.mxu0 %v8701_v22  ;;  %5105 = vmatpush1.bf16.msra.mxu1 %v8702_v55  ;;  %v8706_v15 = vld [vmem:[#allocation78_spill] sm:$0xff] }
 0x27a   :  { %v1273_v16 = vadd.f32 1.0, %v6450_v51  ;;  %5075 = vmatprep.subr.bf16.mxu0 %v8703_v28  ;;  %5107 = vmatprep.subr.bf16.mxu1 %v8704_v52  ;;  %v6452_v61 = vpop.eup %6451  ;;  %v8713_v51 = vld [vmem:[#allocation85_spill] sm:$0xff]  ;;  %v8715_v52 = vld [vmem:[#allocation87_spill] sm:$0xff] }
 0x27b   :  { %6455 = vrcp.f32 %v1267_v26  ;;  %1494 = vmatprep.mubr.f32.mxu0 %v8636_v62  ;;  %1565 = vmatprep.mubr.f32.mxu1 %v8636_v62  ;;  %v8712_v26 = vld [vmem:[#allocation84_spill] sm:$0xff]  ;;  %v6454_v2 = vpop.eup %6453  ;;  %v8719_v28 = vld [vmem:[#allocation91_spill] sm:$0xff] }
 0x27c   :  { %6457 = vrcp.f32 %v1273_v16  ;;  %v8714_v16 = vld [vmem:[#allocation86_spill] sm:$0xff] }
 0x27d   :  { %5077 = vmatpush1.bf16.msra.mxu0 %v8705_v3  ;;  %5109 = vmatpush1.bf16.msra.mxu1 %v8706_v15 }
 0x27e   :  { %5079 = vmatprep.subr.bf16.mxu0 %v8707_v43  ;;  %5111 = vmatprep.subr.bf16.mxu1 %v8708_v59  ;;  %v1280_v43 = vadd.f32 1.0, %v6452_v61  ;;  %v8716_v59 = vld [vmem:[#allocation88_spill] sm:$0xff]  ;;  %v8721_v61 = vld [vmem:[#allocation93_spill] sm:$0xff] }
 0x280   :  { %6459 = vrcp.f32 %v1280_v43  ;;  %v8728_v43 = vld [vmem:[#allocation100_spill] sm:$0xff] }
 0x281   :  { %5081 = vmatpush1.bf16.msra.mxu0 %v8709_v30  ;;  %5113 = vmatpush1.bf16.msra.mxu1 %v8710_v25 }
 0x282   :  { %5083 = vmatprep.subr.bf16.mxu0 %v8711_v29  ;;  %5115 = vmatprep.subr.bf16.mxu1 %v8712_v26  ;;  %v8717_v29 = vld [vmem:[#allocation89_spill] sm:$0xff]  ;;  %v8718_v26 = vld [vmem:[#allocation90_spill] sm:$0xff] }
 0x285   :  { %v6456_v12 = vpop.eup %6455  ;;  %5085 = vmatpush1.bf16.msra.mxu0 %v8713_v51  ;;  %5117 = vmatpush1.bf16.msra.mxu1 %v8714_v16  ;;  %v8720_v51 = vld [vmem:[#allocation92_spill] sm:$0xff] }
 0x286   :  { %v6458_v15 = vpop.eup %6457  ;;  %v1284_v3 = vmul.f32 %v6456_v12, %v6454_v2  ;;  %5087 = vmatprep.subr.bf16.mxu0 %v8715_v52  ;;  %5119 = vmatprep.subr.bf16.mxu1 %v8716_v59  ;;  %v8722_v2 = vld [vmem:[#allocation94_spill] sm:$0xff]  ;;  %v8723_v12 = vld [vmem:[#allocation95_spill] sm:$0xff] }
 0x287   :  { %v1283_v25 = vmul.f32 %v6458_v15, %v7465_v0  ;;  %v8724_v0 = vld [vmem:[#allocation96_spill] sm:$0xff]  ;;  %v8726_v15 = vld [vmem:[#allocation98_spill] sm:$0xff] }
 0x289   :  { %v7582_v30 = vadd.f32 %v1284_v3, %v1283_v25  ;;  %5089 = vmatpush1.bf16.msra.mxu0 %v8717_v29  ;;  %5121 = vmatpush1.bf16.msra.mxu1 %v8718_v26  ;;  %v8725_v3 = vld [vmem:[#allocation97_spill] sm:$0xff]  ;;  %v8727_v25 = vld [vmem:[#allocation99_spill] sm:$0xff]  ;;  %v8730_v29 = vld [vmem:[#allocation102_spill] sm:$0xff] }
 0x28a   :  { %5091 = vmatprep.subr.bf16.mxu0 %v8719_v28  ;;  %5123 = vmatprep.subr.bf16.mxu1 %v8720_v51  ;;  %v6460_v28 = vpop.eup %6459  ;;  %v8729_v26 = vld [vmem:[#allocation101_spill] sm:$0xff] }
 0x28b   :  { %6461 = vtanh.f32 %v7582_v30 }
 0x28d   :  { %5093 = vmatpush1.bf16.msra.mxu0 %v8721_v61  ;;  %5125 = vmatpush1.bf16.msra.mxu1 %v8722_v2  ;;  %v8731_v2 = vld [vmem:[#allocation13_spill] sm:$0xff] }
 0x28e   :  { %5095 = vmatprep.subr.bf16.mxu0 %v8723_v12  ;;  %5127 = vmatprep.subr.bf16.mxu1 %v8724_v0  ;;  %v8732_v12 = vld [vmem:[#allocation14_spill] sm:$0xff] }
 0x291   :  { %5097 = vmatpush1.bf16.msra.mxu0 %v8725_v3  ;;  %5129 = vmatpush1.bf16.msra.mxu1 %v8726_v15 }
 0x292   :  { %5099 = vmatprep.subr.bf16.mxu0 %v8727_v25  ;;  %5131 = vmatprep.subr.bf16.mxu1 %v8728_v43 }
 0x295   :  { %v6462_v51 = vpop.eup %6461  ;;  %5101 = vmatpush1.bf16.msra.mxu0 %v8729_v26  ;;  %5133 = vmatpush1.bf16.msra.mxu1 %v8730_v29 }
 0x296   :  { %v1287_v61 = vmul.f32 %v6462_v51, %v6460_v28  ;;  %5135 = vmatprep.subr.bf16.mxu0 %v8731_v2  ;;  %5167 = vmatprep.subr.bf16.mxu1 %v8732_v12  ;;  %v8733_v28 = vld [vmem:[#allocation51_spill] sm:$0xff]  ;;  %v8734_v51 = vld [vmem:[#allocation52_spill] sm:$0xff] }
 0x298   :  { %1495 = vmatmul.mubr.f32.vlgmr.msra.gmra.mrb[18].mxu0 %v1287_v61  ;;  %1566 = vmatmul.mubr.f32.vlgmr.msra.gmra.mrb[18].mxu1 %v1287_v61 }
 0x299   :  { %5137 = vmatpush1.bf16.msra.mxu0 %v6918_v35  ;;  %5169 = vmatpush1.bf16.msra.mxu1 %v6927_v38 }
 0x29a   :  { %5139 = vmatprep.subr.bf16.mxu0 %v6939_v42  ;;  %5171 = vmatprep.subr.bf16.mxu1 %v6954_v47 }
 0x29b   :  { %1668 = vmatprep.mubr.f32.mxu0 %v8636_v62  ;;  %1739 = vmatprep.mubr.f32.mxu1 %v8636_v62 }
 0x29d   :  { %5141 = vmatpush1.bf16.msra.mxu0 %v6964_v50  ;;  %5173 = vmatpush1.bf16.msra.mxu1 %v6977_v54 }
 0x29e   :  { %5143 = vmatprep.subr.bf16.mxu0 %v6987_v57  ;;  %5175 = vmatprep.subr.bf16.mxu1 %v6997_v60 }
 0x2a1   :  { %5145 = vmatpush1.bf16.msra.mxu0 %v7010_v1  ;;  %5177 = vmatpush1.bf16.msra.mxu1 %v7020_v4 }
 0x2a2   :  { %5147 = vmatprep.subr.bf16.mxu0 %v7030_v7  ;;  %5179 = vmatprep.subr.bf16.mxu1 %v7040_v10 }
 0x2a5   :  { %5149 = vmatpush1.bf16.msra.mxu0 %v7053_v14  ;;  %5181 = vmatpush1.bf16.msra.mxu1 %v7063_v17 }
 0x2a6   :  { %5151 = vmatprep.subr.bf16.mxu0 %v7073_v20  ;;  %5183 = vmatprep.subr.bf16.mxu1 %v7083_v23 }
 0x2a9   :  { %5153 = vmatpush1.bf16.msra.mxu0 %v7096_v27  ;;  %5185 = vmatpush1.bf16.msra.mxu1 %v7106_v32 }
 0x2aa   :  { %5155 = vmatprep.subr.bf16.mxu0 %v7116_v36  ;;  %5187 = vmatprep.subr.bf16.mxu1 %v7126_v40 }
 0x2ad   :  { %5157 = vmatpush1.bf16.msra.mxu0 %v7139_v45  ;;  %5189 = vmatpush1.bf16.msra.mxu1 %v7149_v49 }
 0x2ae   :  { %5159 = vmatprep.subr.bf16.mxu0 %v7159_v53  ;;  %5191 = vmatprep.subr.bf16.mxu1 %v7169_v58 }
 0x2b1   :  { %5161 = vmatpush1.bf16.msra.mxu0 %v7182_v63  ;;  %5193 = vmatpush1.bf16.msra.mxu1 %v7192_v5 }
 0x2b2   :  { %5163 = vmatprep.subr.bf16.mxu0 %v7202_v9  ;;  %5195 = vmatprep.subr.bf16.mxu1 %v7212_v13 }
 0x2b5   :  { %5165 = vmatpush1.bf16.msra.mxu0 %v7219_v19  ;;  %5197 = vmatpush1.bf16.msra.mxu1 %v7223_v24 }
 0x2b6   :  { %5199 = vmatprep.subr.bf16.mxu0 %v7227_v31  ;;  %5231 = vmatprep.subr.bf16.mxu1 %v7231_v39  ;;  %v8756_v39 = vld [vmem:[#allocation107_spill] sm:$0xff] }
 0x2b8   :  { %1669 = vmatmul.mubr.f32.vlgmr.msra.gmra.mrb[4].mxu0 %v1287_v61  ;;  %1740 = vmatmul.mubr.f32.vlgmr.msra.gmra.mrb[4].mxu1 %v1287_v61  ;;  %v8735_v61 = vld [vmem:[#allocation53_spill] sm:$0xff] }
 0x2b9   :  { %5201 = vmatpush1.bf16.msra.mxu0 %v7235_v44  ;;  %5233 = vmatpush1.bf16.msra.mxu1 %v7239_v46  ;;  %v8755_v46 = vld [vmem:[#allocation106_spill] sm:$0xff] }
 0x2ba   :  { %5203 = vmatprep.subr.bf16.mxu0 %v7241_v48  ;;  %5235 = vmatprep.subr.bf16.mxu1 %v7245_v56  ;;  %v8736_v56 = vld [vmem:[#allocation54_spill] sm:$0xff]  ;;  %v8737_v48 = vld [vmem:[#allocation55_spill] sm:$0xff] }
 0x2bb   :  { %1838 = vmatprep.mubr.f32.mxu0 %v8636_v62  ;;  %1909 = vmatprep.mubr.f32.mxu1 %v8636_v62 }
 0x2bd   :  { %5205 = vmatpush1.bf16.msra.mxu0 %v7251_v6  ;;  %5237 = vmatpush1.bf16.msra.mxu1 %v7255_v8  ;;  %v8738_v6 = vld [vmem:[#allocation56_spill] sm:$0xff]  ;;  %v8739_v8 = vld [vmem:[#allocation57_spill] sm:$0xff] }
 0x2be   :  { %5207 = vmatprep.subr.bf16.mxu0 %v7257_v11  ;;  %5239 = vmatprep.subr.bf16.mxu1 %v7260_v18  ;;  %v8740_v11 = vld [vmem:[#allocation58_spill] sm:$0xff]  ;;  %v8741_v18 = vld [vmem:[#allocation59_spill] sm:$0xff] }
 0x2c1   :  { %5209 = vmatpush1.bf16.msra.mxu0 %v7265_v33  ;;  %5241 = vmatpush1.bf16.msra.mxu1 %v7269_v34  ;;  %v8742_v33 = vld [vmem:[#allocation60_spill] sm:$0xff]  ;;  %v8743_v34 = vld [vmem:[#allocation61_spill] sm:$0xff] }
 0x2c2   :  { %5211 = vmatprep.subr.bf16.mxu0 %v8733_v28  ;;  %5243 = vmatprep.subr.bf16.mxu1 %v8734_v51  ;;  %v8744_v28 = vld [vmem:[#allocation62_spill] sm:$0xff]  ;;  %v8745_v51 = vld [vmem:[#allocation63_spill] sm:$0xff] }
 0x2c5   :  { %5213 = vmatpush1.bf16.msra.mxu0 %v8735_v61  ;;  %5245 = vmatpush1.bf16.msra.mxu1 %v8736_v56  ;;  %v8746_v61 = vld [vmem:[#allocation64_spill] sm:$0xff]  ;;  %v8747_v56 = vld [vmem:[#allocation65_spill] sm:$0xff] }
 0x2c6   :  { %5215 = vmatprep.subr.bf16.mxu0 %v8737_v48  ;;  %5247 = vmatprep.subr.bf16.mxu1 %v8738_v6  ;;  %v8748_v48 = vld [vmem:[#allocation66_spill] sm:$0xff]  ;;  %v8749_v6 = vld [vmem:[#allocation67_spill] sm:$0xff] }
 0x2c9   :  { %5217 = vmatpush1.bf16.msra.mxu0 %v8739_v8  ;;  %5249 = vmatpush1.bf16.msra.mxu1 %v8740_v11  ;;  %v8750_v8 = vld [vmem:[#allocation68_spill] sm:$0xff]  ;;  %v8751_v11 = vld [vmem:[#allocation69_spill] sm:$0xff] }
 0x2ca   :  { %5219 = vmatprep.subr.bf16.mxu0 %v8741_v18  ;;  %5251 = vmatprep.subr.bf16.mxu1 %v8742_v33  ;;  %v8752_v18 = vld [vmem:[#allocation70_spill] sm:$0xff]  ;;  %v8753_v33 = vld [vmem:[#allocation71_spill] sm:$0xff] }
 0x2cd   :  { %5221 = vmatpush1.bf16.msra.mxu0 %v8743_v34  ;;  %5253 = vmatpush1.bf16.msra.mxu1 %v8744_v28  ;;  %v8754_v34 = vld [vmem:[#allocation72_spill] sm:$0xff] }
 0x2ce   :  { %5223 = vmatprep.subr.bf16.mxu0 %v8745_v51  ;;  %5255 = vmatprep.subr.bf16.mxu1 %v8746_v61 }
 0x2d1   :  { %5225 = vmatpush1.bf16.msra.mxu0 %v8747_v56  ;;  %5257 = vmatpush1.bf16.msra.mxu1 %v8748_v48 }
 0x2d2   :  { %5227 = vmatprep.subr.bf16.mxu0 %v8749_v6  ;;  %5259 = vmatprep.subr.bf16.mxu1 %v8750_v8  ;;  %v8757_v8 = vld [vmem:[#allocation108_spill] sm:$0xff] }
 0x2d5   :  { %5229 = vmatpush1.bf16.msra.mxu0 %v8751_v11  ;;  %5261 = vmatpush1.bf16.msra.mxu1 %v8752_v18  ;;  %v8758_v18 = vld [vmem:[#allocation109_spill] sm:$0xff] }
 0x2d6   :  { %5263 = vmatprep.subr.bf16.mxu0 %v8753_v33  ;;  %5295 = vmatprep.subr.bf16.mxu1 %v8754_v34 }
 0x36b   :  { %v1496_v28 = vpop.f32.mrb[18].mxu0  ;;  %v1567_v51 = vpop.f32.mrb[18].mxu1 }
 0x36c   :  { %v1572_v61 = vadd.f32 %v1496_v28, %v8755_v46  ;;  %v1498_v44 = vpop.f32.mrb[19].mxu0  ;;  %v1569_v56 = vpop.f32.mrb[19].mxu1  ;;  %v1574_v19 = vadd.f32 %v1567_v51, %v8758_v18  ;;  %v8760_v18 = vld [vmem:[#allocation103_spill] sm:$0xff] }
 0x36d   :  { %v1573_v48 = vadd.f32 %v1498_v44, %v8756_v39  ;;  %v1575_v11 = vadd.f32 %v1569_v56, %v8757_v8 }
 0x36e   :  { %v4642_v31 = vmul.f32 -1.442695, %v1572_v61 }
 0x36f   :  { %v4643_v6 = vmul.f32 -1.442695, %v1573_v48  ;;  %v4644_v24 = vmul.f32 -1.442695, %v1575_v11 }
 0x370   :  { %6463 = vpow2.f32 %v4642_v31 }
 0x371   :  { %6465 = vpow2.f32 %v4643_v6  ;;  %v8759_v6 = vld [vmem:[#allocation110_spill] sm:$0xff] }
 0x372   :  { %6467 = vpow2.f32 %v4644_v24 }
 0x373   :  { %6469 = vtanh.f32 %v1574_v19 }
 0x37a   :  { %v6464_v33 = vpop.eup %6463 }
 0x37b   :  { %v6466_v13 = vpop.eup %6465  ;;  %v1579_v34 = vadd.f32 1.0, %v6464_v33 }
 0x37c   :  { %v1585_v9 = vadd.f32 1.0, %v6466_v13  ;;  %v6468_v28 = vpop.eup %6467 }
 0x37d   :  { %6471 = vrcp.f32 %v1579_v34  ;;  %v6470_v46 = vpop.eup %6469  ;;  %v1592_v31 = vadd.f32 1.0, %v6468_v28 }
 0x37e   :  { %6473 = vrcp.f32 %v1585_v9 }
 0x37f   :  { %6475 = vrcp.f32 %v1592_v31 }
 0x387   :  { %v6472_v44 = vpop.eup %6471 }
 0x388   :  { %v6474_v61 = vpop.eup %6473  ;;  %v1596_v48 = vmul.f32 %v6472_v44, %v6470_v46 }
 0x389   :  { %v1595_v39 = vmul.f32 %v6474_v61, %v8759_v6  ;;  %v6476_v28 = vpop.eup %6475 }
 0x38b   :  { %v7674_v56 = vadd.f32 %v1596_v48, %v1595_v39  ;;  %v1670_v11 = vpop.f32.mrb[4].mxu0  ;;  %v1741_v51 = vpop.f32.mrb[4].mxu1 }
 0x38c   :  { %v6314_v33 = vadd.f32 %v1670_v11, %v8760_v18  ;;  %v1672_v24 = vpop.f32.mrb[5].mxu0  ;;  %v1743_v19 = vpop.f32.mrb[5].mxu1  ;;  %v6330_v61 = vadd.f32 %v1741_v51, %v7462_v41  ;;  %v8763_v51 = vld [vmem:[#allocation77_spill] sm:$0xff] }
 0x38d   :  { %v6315_v13 = vadd.f32 %v1672_v24, %v8699_v37  ;;  %6477 = vtanh.f32 %v7674_v56  ;;  %v6331_v46 = vadd.f32 %v1743_v19, %v8700_v21  ;;  %v8761_v24 = vld [vmem:[#allocation75_spill] sm:$0xff]  ;;  %v8762_v19 = vld [vmem:[#allocation76_spill] sm:$0xff] }
 0x38e   :  { %v4645_v9 = vmul.f32 -1.442695, %v6314_v33 }
 0x38f   :  { %v4646_v34 = vmul.f32 -1.442695, %v6315_v13  ;;  %v4647_v44 = vmul.f32 -1.442695, %v6331_v46  ;;  %v8764_v13 = vld [vmem:[#allocation78_spill] sm:$0xff]  ;;  %v8767_v46 = vld [vmem:[#allocation81_spill] sm:$0xff] }
 0x390   :  { %6479 = vpow2.f32 %v4645_v9  ;;  %v8765_v9 = vld [vmem:[#allocation79_spill] sm:$0xff] }
 0x391   :  { %6481 = vpow2.f32 %v4646_v34  ;;  %v8766_v34 = vld [vmem:[#allocation80_spill] sm:$0xff] }
 0x392   :  { %6483 = vpow2.f32 %v4647_v44  ;;  %v8770_v44 = vld [vmem:[#allocation84_spill] sm:$0xff] }
 0x393   :  { %6485 = vtanh.f32 %v6330_v61 }
 0x397   :  { %v6478_v39 = vpop.eup %6477 }
 0x398   :  { %v1599_v48 = vmul.f32 %v6478_v39, %v6476_v28  ;;  %v8768_v28 = vld [vmem:[#allocation82_spill] sm:$0xff]  ;;  %v8769_v39 = vld [vmem:[#allocation83_spill] sm:$0xff] }
 0x39a   :  { %v6480_v31 = vpop.eup %6479  ;;  %1839 = vmatmul.mubr.f32.vlgmr.msra.gmra.mrb[20].mxu0 %v1599_v48  ;;  %1910 = vmatmul.mubr.f32.vlgmr.msra.gmra.mrb[20].mxu1 %v1599_v48 }
 0x39b   :  { %v6482_v6 = vpop.eup %6481  ;;  %v1753_v11 = vadd.f32 1.0, %v6480_v31  ;;  %5265 = vmatpush1.bf16.msra.mxu0 %v8701_v22  ;;  %5297 = vmatpush1.bf16.msra.mxu1 %v8702_v55 }
 0x39c   :  { %v1759_v33 = vadd.f32 1.0, %v6482_v6  ;;  %5267 = vmatprep.subr.bf16.mxu0 %v8761_v24  ;;  %5299 = vmatprep.subr.bf16.mxu1 %v8762_v19  ;;  %v6484_v61 = vpop.eup %6483  ;;  %v8771_v6 = vld [vmem:[#allocation85_spill] sm:$0xff] }
 0x39d   :  { %6487 = vrcp.f32 %v1753_v11  ;;  %1980 = vmatprep.mubr.f32.mxu0 %v8636_v62  ;;  %2051 = vmatprep.mubr.f32.mxu1 %v8636_v62  ;;  %v6486_v48 = vpop.eup %6485 }
 0x39e   :  { %6489 = vrcp.f32 %v1759_v33 }
 0x39f   :  { %5269 = vmatpush1.bf16.msra.mxu0 %v8763_v51  ;;  %5301 = vmatpush1.bf16.msra.mxu1 %v8764_v13 }
 0x3a0   :  { %5271 = vmatprep.subr.bf16.mxu0 %v8765_v9  ;;  %5303 = vmatprep.subr.bf16.mxu1 %v8766_v34  ;;  %v1766_v9 = vadd.f32 1.0, %v6484_v61  ;;  %v8774_v34 = vld [vmem:[#allocation91_spill] sm:$0xff]  ;;  %v8776_v61 = vld [vmem:[#allocation93_spill] sm:$0xff] }
 0x3a2   :  { %6491 = vrcp.f32 %v1766_v9 }
 0x3a3   :  { %5273 = vmatpush1.bf16.msra.mxu0 %v8767_v46  ;;  %5305 = vmatpush1.bf16.msra.mxu1 %v8768_v28 }
 0x3a4   :  { %5275 = vmatprep.subr.bf16.mxu0 %v8769_v39  ;;  %5307 = vmatprep.subr.bf16.mxu1 %v8770_v44  ;;  %v8772_v39 = vld [vmem:[#allocation89_spill] sm:$0xff]  ;;  %v8773_v44 = vld [vmem:[#allocation90_spill] sm:$0xff] }
 0x3a7   :  { %v6488_v31 = vpop.eup %6487  ;;  %5277 = vmatpush1.bf16.msra.mxu0 %v8771_v6  ;;  %5309 = vmatpush1.bf16.msra.mxu1 %v8714_v16  ;;  %v8775_v6 = vld [vmem:[#allocation92_spill] sm:$0xff] }
 0x3a8   :  { %v6490_v11 = vpop.eup %6489  ;;  %v1770_v33 = vmul.f32 %v6488_v31, %v6486_v48  ;;  %5279 = vmatprep.subr.bf16.mxu0 %v8715_v52  ;;  %5311 = vmatprep.subr.bf16.mxu1 %v8716_v59  ;;  %v8777_v48 = vld [vmem:[#allocation94_spill] sm:$0xff]  ;;  %v8778_v31 = vld [vmem:[#allocation95_spill] sm:$0xff] }
 0x3a9   :  { %v1769_v28 = vmul.f32 %v6490_v11, %v7582_v30  ;;  %v8779_v11 = vld [vmem:[#allocation35_spill] sm:$0xff] }
 0x3ab   :  { %v7700_v46 = vadd.f32 %v1770_v33, %v1769_v28  ;;  %5281 = vmatpush1.bf16.msra.mxu0 %v8772_v39  ;;  %5313 = vmatpush1.bf16.msra.mxu1 %v8773_v44  ;;  %v8780_v33 = vld [vmem:[#allocation36_spill] sm:$0xff] }
 0x3ac   :  { %5283 = vmatprep.subr.bf16.mxu0 %v8774_v34  ;;  %5315 = vmatprep.subr.bf16.mxu1 %v8775_v6  ;;  %v6492_v30 = vpop.eup %6491 }
 0x3ad   :  { %6493 = vtanh.f32 %v7700_v46 }
 0x3af   :  { %5285 = vmatpush1.bf16.msra.mxu0 %v8776_v61  ;;  %5317 = vmatpush1.bf16.msra.mxu1 %v8777_v48 }
 0x3b0   :  { %5287 = vmatprep.subr.bf16.mxu0 %v8778_v31  ;;  %5319 = vmatprep.subr.bf16.mxu1 %v8724_v0 }
 0x3b3   :  { %5289 = vmatpush1.bf16.msra.mxu0 %v8725_v3  ;;  %5321 = vmatpush1.bf16.msra.mxu1 %v8726_v15 }
 0x3b4   :  { %5291 = vmatprep.subr.bf16.mxu0 %v8727_v25  ;;  %5323 = vmatprep.subr.bf16.mxu1 %v8728_v43 }
 0x3b7   :  { %v6494_v9 = vpop.eup %6493  ;;  %5293 = vmatpush1.bf16.msra.mxu0 %v8729_v26  ;;  %5325 = vmatpush1.bf16.msra.mxu1 %v8730_v29 }
 0x3b8   :  { %5327 = vmatprep.subr.bf16.mxu0 %v8731_v2  ;;  %5359 = vmatprep.subr.bf16.mxu1 %v8732_v12  ;;  %v1773_v28 = vmul.f32 %v6494_v9, %v6492_v30  ;;  %v8781_v30 = vld [vmem:[#allocation37_spill] sm:$0xff]  ;;  %v8782_v9 = vld [vmem:[#allocation38_spill] sm:$0xff] }
 0x3ba   :  { %1981 = vmatmul.mubr.f32.vlgmr.msra.gmra.mrb[20].mxu0 %v1773_v28  ;;  %2052 = vmatmul.mubr.f32.vlgmr.msra.gmra.mrb[20].mxu1 %v1773_v28 }
 0x3bb   :  { %5329 = vmatpush1.bf16.msra.mxu0 %v6918_v35  ;;  %5361 = vmatpush1.bf16.msra.mxu1 %v6927_v38 }
 0x3bc   :  { %5331 = vmatprep.subr.bf16.mxu0 %v6939_v42  ;;  %5363 = vmatprep.subr.bf16.mxu1 %v6954_v47 }
 0x3bd   :  { %2154 = vmatprep.mubr.f32.mxu0 %v8636_v62  ;;  %2225 = vmatprep.mubr.f32.mxu1 %v8636_v62 }
 0x3bf   :  { %5333 = vmatpush1.bf16.msra.mxu0 %v6964_v50  ;;  %5365 = vmatpush1.bf16.msra.mxu1 %v6977_v54 }
 0x3c0   :  { %5335 = vmatprep.subr.bf16.mxu0 %v6987_v57  ;;  %5367 = vmatprep.subr.bf16.mxu1 %v6997_v60 }
 0x3c3   :  { %5337 = vmatpush1.bf16.msra.mxu0 %v7010_v1  ;;  %5369 = vmatpush1.bf16.msra.mxu1 %v7020_v4 }
 0x3c4   :  { %5339 = vmatprep.subr.bf16.mxu0 %v7030_v7  ;;  %5371 = vmatprep.subr.bf16.mxu1 %v7040_v10 }
 0x3c7   :  { %5341 = vmatpush1.bf16.msra.mxu0 %v7053_v14  ;;  %5373 = vmatpush1.bf16.msra.mxu1 %v7063_v17 }
 0x3c8   :  { %5343 = vmatprep.subr.bf16.mxu0 %v7073_v20  ;;  %5375 = vmatprep.subr.bf16.mxu1 %v7083_v23 }
 0x3cb   :  { %5345 = vmatpush1.bf16.msra.mxu0 %v7096_v27  ;;  %5377 = vmatpush1.bf16.msra.mxu1 %v7106_v32  ;;  %v8818_v32 = vld [vmem:[#allocation107_spill] sm:$0xff] }
 0x3cc   :  { %5347 = vmatprep.subr.bf16.mxu0 %v7116_v36  ;;  %5379 = vmatprep.subr.bf16.mxu1 %v7126_v40  ;;  %v8783_v40 = vld [vmem:[#allocation39_spill] sm:$0xff] }
 0x3cf   :  { %5349 = vmatpush1.bf16.msra.mxu0 %v7139_v45  ;;  %5381 = vmatpush1.bf16.msra.mxu1 %v7149_v49  ;;  %v8784_v45 = vld [vmem:[#allocation40_spill] sm:$0xff]  ;;  %v8817_v49 = vld [vmem:[#allocation106_spill] sm:$0xff] }
 0x3d0   :  { %5351 = vmatprep.subr.bf16.mxu0 %v7159_v53  ;;  %5383 = vmatprep.subr.bf16.mxu1 %v7169_v58  ;;  %v8785_v53 = vld [vmem:[#allocation41_spill] sm:$0xff]  ;;  %v8786_v58 = vld [vmem:[#allocation42_spill] sm:$0xff] }
 0x3d3   :  { %5353 = vmatpush1.bf16.msra.mxu0 %v7182_v63  ;;  %5385 = vmatpush1.bf16.msra.mxu1 %v7192_v5  ;;  %v8787_v63 = vld [vmem:[#allocation43_spill] sm:$0xff]  ;;  %v8788_v5 = vld [vmem:[#allocation44_spill] sm:$0xff] }
 0x3d4   :  { %5355 = vmatprep.subr.bf16.mxu0 %v8779_v11  ;;  %5387 = vmatprep.subr.bf16.mxu1 %v8780_v33  ;;  %v8798_v33 = vld [vmem:[#allocation54_spill] sm:$0xff]  ;;  %v8799_v11 = vld [vmem:[#allocation55_spill] sm:$0xff] }
 0x3d7   :  { %5357 = vmatpush1.bf16.msra.mxu0 %v8781_v30  ;;  %5389 = vmatpush1.bf16.msra.mxu1 %v8782_v9  ;;  %v8789_v30 = vld [vmem:[#allocation45_spill] sm:$0xff]  ;;  %v8790_v9 = vld [vmem:[#allocation46_spill] sm:$0xff] }
 0x3d8   :  { %5391 = vmatprep.subr.bf16.mxu0 %v8783_v40  ;;  %5423 = vmatprep.subr.bf16.mxu1 %v8784_v45  ;;  %v8791_v40 = vld [vmem:[#allocation47_spill] sm:$0xff]  ;;  %v8792_v45 = vld [vmem:[#allocation48_spill] sm:$0xff] }
 0x3da   :  { %2155 = vmatmul.mubr.f32.vlgmr.msra.gmra.mrb[6].mxu0 %v1773_v28  ;;  %2226 = vmatmul.mubr.f32.vlgmr.msra.gmra.mrb[6].mxu1 %v1773_v28  ;;  %v8793_v28 = vld [vmem:[#allocation49_spill] sm:$0xff] }
 0x3db   :  { %5393 = vmatpush1.bf16.msra.mxu0 %v8785_v53  ;;  %5425 = vmatpush1.bf16.msra.mxu1 %v8786_v58  ;;  %v8794_v53 = vld [vmem:[#allocation50_spill] sm:$0xff]  ;;  %v8795_v58 = vld [vmem:[#allocation51_spill] sm:$0xff] }
 0x3dc   :  { %5395 = vmatprep.subr.bf16.mxu0 %v8787_v63  ;;  %5427 = vmatprep.subr.bf16.mxu1 %v8788_v5  ;;  %v8796_v63 = vld [vmem:[#allocation52_spill] sm:$0xff]  ;;  %v8797_v5 = vld [vmem:[#allocation53_spill] sm:$0xff] }
 0x3dd   :  { %2324 = vmatprep.mubr.f32.mxu0 %v8636_v62  ;;  %2395 = vmatprep.mubr.f32.mxu1 %v8636_v62 }
 0x3df   :  { %5397 = vmatpush1.bf16.msra.mxu0 %v8789_v30  ;;  %5429 = vmatpush1.bf16.msra.mxu1 %v8790_v9  ;;  %v8800_v30 = vld [vmem:[#allocation56_spill] sm:$0xff]  ;;  %v8801_v9 = vld [vmem:[#allocation57_spill] sm:$0xff] }
 0x3e0   :  { %5399 = vmatprep.subr.bf16.mxu0 %v8791_v40  ;;  %5431 = vmatprep.subr.bf16.mxu1 %v8792_v45  ;;  %v8802_v40 = vld [vmem:[#allocation58_spill] sm:$0xff]  ;;  %v8803_v45 = vld [vmem:[#allocation59_spill] sm:$0xff] }
 0x3e3   :  { %5401 = vmatpush1.bf16.msra.mxu0 %v8793_v28  ;;  %5433 = vmatpush1.bf16.msra.mxu1 %v8794_v53  ;;  %v8804_v28 = vld [vmem:[#allocation60_spill] sm:$0xff]  ;;  %v8805_v53 = vld [vmem:[#allocation61_spill] sm:$0xff] }
 0x3e4   :  { %5403 = vmatprep.subr.bf16.mxu0 %v8795_v58  ;;  %5435 = vmatprep.subr.bf16.mxu1 %v8796_v63  ;;  %v8806_v58 = vld [vmem:[#allocation62_spill] sm:$0xff]  ;;  %v8807_v63 = vld [vmem:[#allocation63_spill] sm:$0xff] }
 0x3e7   :  { %5405 = vmatpush1.bf16.msra.mxu0 %v8797_v5  ;;  %5437 = vmatpush1.bf16.msra.mxu1 %v8798_v33  ;;  %v8808_v5 = vld [vmem:[#allocation64_spill] sm:$0xff]  ;;  %v8809_v33 = vld [vmem:[#allocation65_spill] sm:$0xff] }
 0x3e8   :  { %5407 = vmatprep.subr.bf16.mxu0 %v8799_v11  ;;  %5439 = vmatprep.subr.bf16.mxu1 %v8800_v30  ;;  %v8810_v11 = vld [vmem:[#allocation66_spill] sm:$0xff]  ;;  %v8811_v30 = vld [vmem:[#allocation67_spill] sm:$0xff] }
 0x3eb   :  { %5409 = vmatpush1.bf16.msra.mxu0 %v8801_v9  ;;  %5441 = vmatpush1.bf16.msra.mxu1 %v8802_v40  ;;  %v8812_v9 = vld [vmem:[#allocation68_spill] sm:$0xff]  ;;  %v8813_v40 = vld [vmem:[#allocation69_spill] sm:$0xff] }
 0x3ec   :  { %5411 = vmatprep.subr.bf16.mxu0 %v8803_v45  ;;  %5443 = vmatprep.subr.bf16.mxu1 %v8804_v28  ;;  %v8814_v45 = vld [vmem:[#allocation70_spill] sm:$0xff]  ;;  %v8815_v28 = vld [vmem:[#allocation71_spill] sm:$0xff] }
 0x3ef   :  { %5413 = vmatpush1.bf16.msra.mxu0 %v8805_v53  ;;  %5445 = vmatpush1.bf16.msra.mxu1 %v8806_v58  ;;  %v8816_v53 = vld [vmem:[#allocation72_spill] sm:$0xff] }
 0x3f0   :  { %5415 = vmatprep.subr.bf16.mxu0 %v8807_v63  ;;  %5447 = vmatprep.subr.bf16.mxu1 %v8808_v5 }
 0x3f3   :  { %5417 = vmatpush1.bf16.msra.mxu0 %v8809_v33  ;;  %5449 = vmatpush1.bf16.msra.mxu1 %v8810_v11 }
 0x3f4   :  { %5419 = vmatprep.subr.bf16.mxu0 %v8811_v30  ;;  %5451 = vmatprep.subr.bf16.mxu1 %v8812_v9 }
 0x3f7   :  { %5421 = vmatpush1.bf16.msra.mxu0 %v8813_v40  ;;  %5453 = vmatpush1.bf16.msra.mxu1 %v8814_v45  ;;  %v8819_v45 = vld [vmem:[#allocation109_spill] sm:$0xff] }
 0x3f8   :  { %5455 = vmatprep.subr.bf16.mxu0 %v8815_v28  ;;  %5487 = vmatprep.subr.bf16.mxu1 %v8816_v53 }
 0x48d   :  { %v1982_v58 = vpop.f32.mrb[20].mxu0  ;;  %v2053_v63 = vpop.f32.mrb[20].mxu1 }
 0x48e   :  { %v2058_v5 = vadd.f32 %v1982_v58, %v8817_v49  ;;  %v1984_v36 = vpop.f32.mrb[21].mxu0  ;;  %v2055_v33 = vpop.f32.mrb[21].mxu1  ;;  %v2060_v23 = vadd.f32 %v2053_v63, %v8819_v45 }
 0x48f   :  { %v2059_v11 = vadd.f32 %v1984_v36, %v8818_v32  ;;  %v2061_v40 = vadd.f32 %v2055_v33, %v8757_v8 }
 0x490   :  { %v4648_v27 = vmul.f32 -1.442695, %v2058_v5 }
 0x491   :  { %v4649_v30 = vmul.f32 -1.442695, %v2059_v11  ;;  %v4650_v9 = vmul.f32 -1.442695, %v2061_v40 }
 0x492   :  { %6495 = vpow2.f32 %v4648_v27 }
 0x493   :  { %6497 = vpow2.f32 %v4649_v30 }
 0x494   :  { %6499 = vpow2.f32 %v4650_v9 }
 0x495   :  { %6501 = vtanh.f32 %v2060_v23 }
 0x49c   :  { %v6496_v28 = vpop.eup %6495 }
 0x49d   :  { %v6498_v20 = vpop.eup %6497  ;;  %v2065_v53 = vadd.f32 1.0, %v6496_v28 }
 0x49e   :  { %v2071_v17 = vadd.f32 1.0, %v6498_v20  ;;  %v6500_v58 = vpop.eup %6499 }
 0x49f   :  { %6503 = vrcp.f32 %v2065_v53  ;;  %v6502_v49 = vpop.eup %6501  ;;  %v2078_v27 = vadd.f32 1.0, %v6500_v58 }
 0x4a0   :  { %6505 = vrcp.f32 %v2071_v17 }
 0x4a1   :  { %6507 = vrcp.f32 %v2078_v27 }
 0x4a9   :  { %v6504_v36 = vpop.eup %6503 }
 0x4aa   :  { %v6506_v5 = vpop.eup %6505  ;;  %v2082_v11 = vmul.f32 %v6504_v36, %v6502_v49 }
 0x4ab   :  { %v2081_v30 = vmul.f32 %v6506_v5, %v7674_v56  ;;  %v6508_v56 = vpop.eup %6507 }
 0x4ad   :  { %v7792_v33 = vadd.f32 %v2082_v11, %v2081_v30  ;;  %v2156_v40 = vpop.f32.mrb[6].mxu0  ;;  %v2227_v63 = vpop.f32.mrb[6].mxu1 }
 0x4ae   :  { %v6316_v28 = vadd.f32 %v2156_v40, %v8760_v18  ;;  %v2158_v9 = vpop.f32.mrb[7].mxu0  ;;  %v2229_v23 = vpop.f32.mrb[7].mxu1  ;;  %v6332_v5 = vadd.f32 %v2227_v63, %v7462_v41  ;;  %v8820_v63 = vld [vmem:[#allocation79_spill] sm:$0xff] }
 0x4af   :  { %v6317_v20 = vadd.f32 %v2158_v9, %v8699_v37  ;;  %6509 = vtanh.f32 %v7792_v33  ;;  %v6333_v49 = vadd.f32 %v2229_v23, %v8700_v21  ;;  %v8821_v9 = vld [vmem:[#allocation80_spill] sm:$0xff]  ;;  %v8822_v23 = vld [vmem:[#allocation81_spill] sm:$0xff] }
 0x4b0   :  { %v4651_v17 = vmul.f32 -1.442695, %v6316_v28 }
 0x4b1   :  { %v4652_v53 = vmul.f32 -1.442695, %v6317_v20  ;;  %v4653_v36 = vmul.f32 -1.442695, %v6333_v49  ;;  %v8823_v20 = vld [vmem:[#allocation82_spill] sm:$0xff] }
 0x4b2   :  { %6511 = vpow2.f32 %v4651_v17  ;;  %v8824_v17 = vld [vmem:[#allocation83_spill] sm:$0xff] }
 0x4b3   :  { %6513 = vpow2.f32 %v4652_v53  ;;  %v8825_v53 = vld [vmem:[#allocation84_spill] sm:$0xff] }
 0x4b4   :  { %6515 = vpow2.f32 %v4653_v36  ;;  %v8826_v36 = vld [vmem:[#allocation85_spill] sm:$0xff] }
 0x4b5   :  { %6517 = vtanh.f32 %v6332_v5 }
 0x4b9   :  { %v6510_v58 = vpop.eup %6509 }
 0x4ba   :  { %v2085_v11 = vmul.f32 %v6510_v58, %v6508_v56 }
 0x4bc   :  { %v6512_v27 = vpop.eup %6511  ;;  %2325 = vmatmul.mubr.f32.vlgmr.msra.gmra.mrb[22].mxu0 %v2085_v11  ;;  %2396 = vmatmul.mubr.f32.vlgmr.msra.gmra.mrb[22].mxu1 %v2085_v11 }
 0x4bd   :  { %v6514_v30 = vpop.eup %6513  ;;  %v2239_v40 = vadd.f32 1.0, %v6512_v27  ;;  %5457 = vmatpush1.bf16.msra.mxu0 %v8701_v22  ;;  %5489 = vmatpush1.bf16.msra.mxu1 %v8702_v55 }
 0x4be   :  { %v2245_v28 = vadd.f32 1.0, %v6514_v30  ;;  %5459 = vmatprep.subr.bf16.mxu0 %v8761_v24  ;;  %5491 = vmatprep.subr.bf16.mxu1 %v8762_v19  ;;  %v6516_v49 = vpop.eup %6515 }
 0x4bf   :  { %6519 = vrcp.f32 %v2239_v40  ;;  %2466 = vmatprep.mubr.f32.mxu0 %v8636_v62  ;;  %2537 = vmatprep.mubr.f32.mxu1 %v8636_v62  ;;  %v6518_v56 = vpop.eup %6517  ;;  %v2252_v27 = vadd.f32 1.0, %v6516_v49 }
 0x4c0   :  { %6521 = vrcp.f32 %v2245_v28 }
 0x4c1   :  { %5461 = vmatpush1.bf16.msra.mxu0 %v8763_v51  ;;  %5493 = vmatpush1.bf16.msra.mxu1 %v8764_v13  ;;  %6523 = vrcp.f32 %v2252_v27  ;;  %v8831_v27 = vld [vmem:[#allocation26_spill] sm:$0xff] }
 0x4c2   :  { %5463 = vmatprep.subr.bf16.mxu0 %v8820_v63  ;;  %5495 = vmatprep.subr.bf16.mxu1 %v8821_v9 }
 0x4c5   :  { %5465 = vmatpush1.bf16.msra.mxu0 %v8822_v23  ;;  %5497 = vmatpush1.bf16.msra.mxu1 %v8823_v20 }
 0x4c6   :  { %5467 = vmatprep.subr.bf16.mxu0 %v8824_v17  ;;  %5499 = vmatprep.subr.bf16.mxu1 %v8825_v53 }
 0x4c9   :  { %v6520_v58 = vpop.eup %6519  ;;  %5469 = vmatpush1.bf16.msra.mxu0 %v8826_v36  ;;  %5501 = vmatpush1.bf16.msra.mxu1 %v8714_v16 }
 0x4ca   :  { %v6522_v5 = vpop.eup %6521  ;;  %v2256_v11 = vmul.f32 %v6520_v58, %v6518_v56  ;;  %5471 = vmatprep.subr.bf16.mxu0 %v8715_v52  ;;  %5503 = vmatprep.subr.bf16.mxu1 %v8716_v59  ;;  %v8827_v56 = vld [vmem:[#allocation22_spill] sm:$0xff]  ;;  %v8828_v58 = vld [vmem:[#allocation23_spill] sm:$0xff] }
 0x4cb   :  { %v2255_v30 = vmul.f32 %v6522_v5, %v7700_v46  ;;  %v6524_v46 = vpop.eup %6523  ;;  %v8829_v5 = vld [vmem:[#allocation24_spill] sm:$0xff] }
 0x4cd   :  { %v7818_v40 = vadd.f32 %v2256_v11, %v2255_v30  ;;  %5473 = vmatpush1.bf16.msra.mxu0 %v8772_v39  ;;  %5505 = vmatpush1.bf16.msra.mxu1 %v8773_v44  ;;  %v8830_v11 = vld [vmem:[#allocation25_spill] sm:$0xff]  ;;  %v8832_v30 = vld [vmem:[#allocation27_spill] sm:$0xff] }
 0x4ce   :  { %5475 = vmatprep.subr.bf16.mxu0 %v8774_v34  ;;  %5507 = vmatprep.subr.bf16.mxu1 %v8775_v6 }
 0x4cf   :  { %6525 = vtanh.f32 %v7818_v40 }
 0x4d1   :  { %5477 = vmatpush1.bf16.msra.mxu0 %v8776_v61  ;;  %5509 = vmatpush1.bf16.msra.mxu1 %v8777_v48 }
 0x4d2   :  { %5479 = vmatprep.subr.bf16.mxu0 %v8778_v31  ;;  %5511 = vmatprep.subr.bf16.mxu1 %v8724_v0 }
 0x4d5   :  { %5481 = vmatpush1.bf16.msra.mxu0 %v8725_v3  ;;  %5513 = vmatpush1.bf16.msra.mxu1 %v8726_v15 }
 0x4d6   :  { %5483 = vmatprep.subr.bf16.mxu0 %v8727_v25  ;;  %5515 = vmatprep.subr.bf16.mxu1 %v8728_v43 }
 0x4d9   :  { %v6526_v28 = vpop.eup %6525  ;;  %5485 = vmatpush1.bf16.msra.mxu0 %v8729_v26  ;;  %5517 = vmatpush1.bf16.msra.mxu1 %v8730_v29 }
 0x4da   :  { %v2259_v49 = vmul.f32 %v6526_v28, %v6524_v46  ;;  %5519 = vmatprep.subr.bf16.mxu0 %v8731_v2  ;;  %5551 = vmatprep.subr.bf16.mxu1 %v8732_v12  ;;  %v8833_v46 = vld [vmem:[#allocation28_spill] sm:$0xff]  ;;  %v8834_v28 = vld [vmem:[#allocation29_spill] sm:$0xff] }
 0x4dc   :  { %2467 = vmatmul.mubr.f32.vlgmr.msra.gmra.mrb[22].mxu0 %v2259_v49  ;;  %2538 = vmatmul.mubr.f32.vlgmr.msra.gmra.mrb[22].mxu1 %v2259_v49 }
 0x4dd   :  { %5521 = vmatpush1.bf16.msra.mxu0 %v6918_v35  ;;  %5553 = vmatpush1.bf16.msra.mxu1 %v6927_v38 }
 0x4de   :  { %5523 = vmatprep.subr.bf16.mxu0 %v6939_v42  ;;  %5555 = vmatprep.subr.bf16.mxu1 %v6954_v47 }
 0x4df   :  { %2640 = vmatprep.mubr.f32.mxu0 %v8636_v62  ;;  %2711 = vmatprep.mubr.f32.mxu1 %v8636_v62 }
 0x4e1   :  { %5525 = vmatpush1.bf16.msra.mxu0 %v6964_v50  ;;  %5557 = vmatpush1.bf16.msra.mxu1 %v6977_v54 }
 0x4e2   :  { %5527 = vmatprep.subr.bf16.mxu0 %v6987_v57  ;;  %5559 = vmatprep.subr.bf16.mxu1 %v6997_v60 }
 0x4e5   :  { %5529 = vmatpush1.bf16.msra.mxu0 %v7010_v1  ;;  %5561 = vmatpush1.bf16.msra.mxu1 %v7020_v4 }
 0x4e6   :  { %5531 = vmatprep.subr.bf16.mxu0 %v7030_v7  ;;  %5563 = vmatprep.subr.bf16.mxu1 %v7040_v10  ;;  %v8835_v7 = vld [vmem:[#allocation30_spill] sm:$0xff]  ;;  %v8836_v10 = vld [vmem:[#allocation31_spill] sm:$0xff] }
 0x4e9   :  { %5533 = vmatpush1.bf16.msra.mxu0 %v7053_v14  ;;  %5565 = vmatpush1.bf16.msra.mxu1 %v8827_v56  ;;  %v8837_v14 = vld [vmem:[#allocation32_spill] sm:$0xff]  ;;  %v8838_v56 = vld [vmem:[#allocation33_spill] sm:$0xff] }
 0x4ea   :  { %5535 = vmatprep.subr.bf16.mxu0 %v8828_v58  ;;  %5567 = vmatprep.subr.bf16.mxu1 %v8829_v5  ;;  %v8839_v58 = vld [vmem:[#allocation34_spill] sm:$0xff]  ;;  %v8840_v5 = vld [vmem:[#allocation35_spill] sm:$0xff] }
 0x4ed   :  { %5537 = vmatpush1.bf16.msra.mxu0 %v8830_v11  ;;  %5569 = vmatpush1.bf16.msra.mxu1 %v8831_v27  ;;  %v8841_v11 = vld [vmem:[#allocation36_spill] sm:$0xff]  ;;  %v8842_v27 = vld [vmem:[#allocation37_spill] sm:$0xff] }
 0x4ee   :  { %5539 = vmatprep.subr.bf16.mxu0 %v8832_v30  ;;  %5571 = vmatprep.subr.bf16.mxu1 %v8833_v46  ;;  %v8843_v30 = vld [vmem:[#allocation38_spill] sm:$0xff]  ;;  %v8844_v46 = vld [vmem:[#allocation39_spill] sm:$0xff] }
 0x4f1   :  { %5541 = vmatpush1.bf16.msra.mxu0 %v8834_v28  ;;  %5573 = vmatpush1.bf16.msra.mxu1 %v8835_v7  ;;  %v8845_v28 = vld [vmem:[#allocation40_spill] sm:$0xff]  ;;  %v8878_v7 = vld [vmem:[#allocation106_spill] sm:$0xff] }
 0x4f2   :  { %5543 = vmatprep.subr.bf16.mxu0 %v8836_v10  ;;  %5575 = vmatprep.subr.bf16.mxu1 %v8837_v14  ;;  %v8846_v10 = vld [vmem:[#allocation41_spill] sm:$0xff]  ;;  %v8847_v14 = vld [vmem:[#allocation42_spill] sm:$0xff] }
 0x4f5   :  { %5545 = vmatpush1.bf16.msra.mxu0 %v8838_v56  ;;  %5577 = vmatpush1.bf16.msra.mxu1 %v8839_v58  ;;  %v8848_v56 = vld [vmem:[#allocation43_spill] sm:$0xff]  ;;  %v8849_v58 = vld [vmem:[#allocation44_spill] sm:$0xff] }
 0x4f6   :  { %5547 = vmatprep.subr.bf16.mxu0 %v8840_v5  ;;  %5579 = vmatprep.subr.bf16.mxu1 %v8841_v11  ;;  %v8859_v11 = vld [vmem:[#allocation54_spill] sm:$0xff]  ;;  %v8860_v5 = vld [vmem:[#allocation55_spill] sm:$0xff] }
 0x4f9   :  { %5549 = vmatpush1.bf16.msra.mxu0 %v8842_v27  ;;  %5581 = vmatpush1.bf16.msra.mxu1 %v8843_v30  ;;  %v8850_v27 = vld [vmem:[#allocation45_spill] sm:$0xff]  ;;  %v8851_v30 = vld [vmem:[#allocation46_spill] sm:$0xff] }
 0x4fa   :  { %5583 = vmatprep.subr.bf16.mxu0 %v8844_v46  ;;  %5615 = vmatprep.subr.bf16.mxu1 %v8845_v28  ;;  %v8852_v46 = vld [vmem:[#allocation47_spill] sm:$0xff]  ;;  %v8853_v28 = vld [vmem:[#allocation48_spill] sm:$0xff] }
 0x4fc   :  { %2641 = vmatmul.mubr.f32.vlgmr.msra.gmra.mrb[8].mxu0 %v2259_v49  ;;  %2712 = vmatmul.mubr.f32.vlgmr.msra.gmra.mrb[8].mxu1 %v2259_v49  ;;  %v8854_v49 = vld [vmem:[#allocation49_spill] sm:$0xff] }
 0x4fd   :  { %5585 = vmatpush1.bf16.msra.mxu0 %v8846_v10  ;;  %5617 = vmatpush1.bf16.msra.mxu1 %v8847_v14  ;;  %v8855_v10 = vld [vmem:[#allocation50_spill] sm:$0xff]  ;;  %v8856_v14 = vld [vmem:[#allocation51_spill] sm:$0xff] }
 0x4fe   :  { %5587 = vmatprep.subr.bf16.mxu0 %v8848_v56  ;;  %5619 = vmatprep.subr.bf16.mxu1 %v8849_v58  ;;  %v8857_v56 = vld [vmem:[#allocation52_spill] sm:$0xff]  ;;  %v8858_v58 = vld [vmem:[#allocation53_spill] sm:$0xff] }
 0x4ff   :  { %2810 = vmatprep.mubr.f32.mxu0 %v8636_v62  ;;  %2881 = vmatprep.mubr.f32.mxu1 %v8636_v62 }
 0x501   :  { %5589 = vmatpush1.bf16.msra.mxu0 %v8850_v27  ;;  %5621 = vmatpush1.bf16.msra.mxu1 %v8851_v30  ;;  %v8861_v27 = vld [vmem:[#allocation56_spill] sm:$0xff]  ;;  %v8862_v30 = vld [vmem:[#allocation57_spill] sm:$0xff] }
 0x502   :  { %5591 = vmatprep.subr.bf16.mxu0 %v8852_v46  ;;  %5623 = vmatprep.subr.bf16.mxu1 %v8853_v28  ;;  %v8863_v46 = vld [vmem:[#allocation58_spill] sm:$0xff]  ;;  %v8864_v28 = vld [vmem:[#allocation59_spill] sm:$0xff] }
 0x505   :  { %5593 = vmatpush1.bf16.msra.mxu0 %v8854_v49  ;;  %5625 = vmatpush1.bf16.msra.mxu1 %v8855_v10  ;;  %v8865_v49 = vld [vmem:[#allocation60_spill] sm:$0xff]  ;;  %v8866_v10 = vld [vmem:[#allocation61_spill] sm:$0xff] }
 0x506   :  { %5595 = vmatprep.subr.bf16.mxu0 %v8856_v14  ;;  %5627 = vmatprep.subr.bf16.mxu1 %v8857_v56  ;;  %v8867_v14 = vld [vmem:[#allocation62_spill] sm:$0xff]  ;;  %v8868_v56 = vld [vmem:[#allocation63_spill] sm:$0xff] }
 0x509   :  { %5597 = vmatpush1.bf16.msra.mxu0 %v8858_v58  ;;  %5629 = vmatpush1.bf16.msra.mxu1 %v8859_v11  ;;  %v8869_v58 = vld [vmem:[#allocation64_spill] sm:$0xff]  ;;  %v8870_v11 = vld [vmem:[#allocation65_spill] sm:$0xff] }
 0x50a   :  { %5599 = vmatprep.subr.bf16.mxu0 %v8860_v5  ;;  %5631 = vmatprep.subr.bf16.mxu1 %v8861_v27  ;;  %v8871_v5 = vld [vmem:[#allocation66_spill] sm:$0xff]  ;;  %v8872_v27 = vld [vmem:[#allocation67_spill] sm:$0xff] }
 0x50d   :  { %5601 = vmatpush1.bf16.msra.mxu0 %v8862_v30  ;;  %5633 = vmatpush1.bf16.msra.mxu1 %v8863_v46  ;;  %v8873_v30 = vld [vmem:[#allocation68_spill] sm:$0xff]  ;;  %v8874_v46 = vld [vmem:[#allocation69_spill] sm:$0xff] }
 0x50e   :  { %5603 = vmatprep.subr.bf16.mxu0 %v8864_v28  ;;  %5635 = vmatprep.subr.bf16.mxu1 %v8865_v49  ;;  %v8875_v28 = vld [vmem:[#allocation70_spill] sm:$0xff]  ;;  %v8876_v49 = vld [vmem:[#allocation71_spill] sm:$0xff] }
 0x511   :  { %5605 = vmatpush1.bf16.msra.mxu0 %v8866_v10  ;;  %5637 = vmatpush1.bf16.msra.mxu1 %v8867_v14  ;;  %v8877_v10 = vld [vmem:[#allocation72_spill] sm:$0xff] }
 0x512   :  { %5607 = vmatprep.subr.bf16.mxu0 %v8868_v56  ;;  %5639 = vmatprep.subr.bf16.mxu1 %v8869_v58 }
 0x515   :  { %5609 = vmatpush1.bf16.msra.mxu0 %v8870_v11  ;;  %5641 = vmatpush1.bf16.msra.mxu1 %v8871_v5 }
 0x516   :  { %5611 = vmatprep.subr.bf16.mxu0 %v8872_v27  ;;  %5643 = vmatprep.subr.bf16.mxu1 %v8873_v30 }
 0x519   :  { %5613 = vmatpush1.bf16.msra.mxu0 %v8874_v46  ;;  %5645 = vmatpush1.bf16.msra.mxu1 %v8875_v28 }
 0x51a   :  { %5647 = vmatprep.subr.bf16.mxu0 %v8876_v49  ;;  %5679 = vmatprep.subr.bf16.mxu1 %v8877_v10 }
 0x5af   :  { %v2468_v14 = vpop.f32.mrb[22].mxu0  ;;  %v2539_v56 = vpop.f32.mrb[22].mxu1 }
 0x5b0   :  { %v2544_v58 = vadd.f32 %v2468_v14, %v8878_v7  ;;  %v2470_v4 = vpop.f32.mrb[23].mxu0  ;;  %v2541_v11 = vpop.f32.mrb[23].mxu1  ;;  %v2546_v28 = vadd.f32 %v2539_v56, %v8819_v45 }
 0x5b1   :  { %v2545_v5 = vadd.f32 %v2470_v4, %v8818_v32  ;;  %v2547_v46 = vadd.f32 %v2541_v11, %v8757_v8 }
 0x5b2   :  { %v4654_v1 = vmul.f32 -1.442695, %v2544_v58 }
 0x5b3   :  { %v4655_v27 = vmul.f32 -1.442695, %v2545_v5  ;;  %v4656_v30 = vmul.f32 -1.442695, %v2547_v46 }
 0x5b4   :  { %6527 = vpow2.f32 %v4654_v1 }
 0x5b5   :  { %6529 = vpow2.f32 %v4655_v27 }
 0x5b6   :  { %6531 = vpow2.f32 %v4656_v30 }
 0x5b7   :  { %6533 = vtanh.f32 %v2546_v28 }
 0x5be   :  { %v6528_v49 = vpop.eup %6527 }
 0x5bf   :  { %v6530_v60 = vpop.eup %6529  ;;  %v2551_v10 = vadd.f32 1.0, %v6528_v49 }
 0x5c0   :  { %v2557_v57 = vadd.f32 1.0, %v6530_v60  ;;  %v6532_v14 = vpop.eup %6531 }
 0x5c1   :  { %6535 = vrcp.f32 %v2551_v10  ;;  %v6534_v7 = vpop.eup %6533  ;;  %v2564_v1 = vadd.f32 1.0, %v6532_v14 }
 0x5c2   :  { %6537 = vrcp.f32 %v2557_v57 }
 0x5c3   :  { %6539 = vrcp.f32 %v2564_v1 }
 0x5cb   :  { %v6536_v4 = vpop.eup %6535 }
 0x5cc   :  { %v6538_v58 = vpop.eup %6537  ;;  %v2568_v5 = vmul.f32 %v6536_v4, %v6534_v7 }
 0x5cd   :  { %v2567_v27 = vmul.f32 %v6538_v58, %v7792_v33  ;;  %v6540_v33 = vpop.eup %6539 }
 0x5cf   :  { %v7910_v11 = vadd.f32 %v2568_v5, %v2567_v27  ;;  %v2642_v46 = vpop.f32.mrb[8].mxu0  ;;  %v2713_v56 = vpop.f32.mrb[8].mxu1 }
 0x5d0   :  { %v6318_v49 = vadd.f32 %v2642_v46, %v8760_v18  ;;  %v2644_v30 = vpop.f32.mrb[9].mxu0  ;;  %v2715_v28 = vpop.f32.mrb[9].mxu1  ;;  %v6334_v58 = vadd.f32 %v2713_v56, %v7462_v41 }
 0x5d1   :  { %v6319_v60 = vadd.f32 %v2644_v30, %v8699_v37  ;;  %6541 = vtanh.f32 %v7910_v11  ;;  %v6335_v7 = vadd.f32 %v2715_v28, %v8700_v21 }
 0x5d2   :  { %v4657_v57 = vmul.f32 -1.442695, %v6318_v49 }
 0x5d3   :  { %v4658_v10 = vmul.f32 -1.442695, %v6319_v60  ;;  %v4659_v4 = vmul.f32 -1.442695, %v6335_v7 }
 0x5d4   :  { %6543 = vpow2.f32 %v4657_v57 }
 0x5d5   :  { %6545 = vpow2.f32 %v4658_v10 }
 0x5d6   :  { %6547 = vpow2.f32 %v4659_v4 }
 0x5d7   :  { %6549 = vtanh.f32 %v6334_v58  ;;  %v8879_v58 = vld [vmem:[#allocation15_spill] sm:$0xff] }
 0x5db   :  { %v6542_v14 = vpop.eup %6541 }
 0x5dc   :  { %v2571_v5 = vmul.f32 %v6542_v14, %v6540_v33 }
 0x5de   :  { %v6544_v1 = vpop.eup %6543  ;;  %2811 = vmatmul.mubr.f32.vlgmr.msra.gmra.mrb[24].mxu0 %v2571_v5  ;;  %2882 = vmatmul.mubr.f32.vlgmr.msra.gmra.mrb[24].mxu1 %v2571_v5  ;;  %v8880_v5 = vld [vmem:[#allocation16_spill] sm:$0xff] }
 0x5df   :  { %v6546_v27 = vpop.eup %6545  ;;  %v2725_v46 = vadd.f32 1.0, %v6544_v1  ;;  %5649 = vmatpush1.bf16.msra.mxu0 %v8701_v22  ;;  %5681 = vmatpush1.bf16.msra.mxu1 %v8702_v55  ;;  %v8881_v1 = vld [vmem:[#allocation17_spill] sm:$0xff] }
 0x5e0   :  { %v2731_v49 = vadd.f32 1.0, %v6546_v27  ;;  %5651 = vmatprep.subr.bf16.mxu0 %v8761_v24  ;;  %5683 = vmatprep.subr.bf16.mxu1 %v8762_v19  ;;  %v6548_v56 = vpop.eup %6547  ;;  %v8882_v27 = vld [vmem:[#allocation18_spill] sm:$0xff] }
 0x5e1   :  { %6551 = vrcp.f32 %v2725_v46  ;;  %2952 = vmatprep.mubr.f32.mxu0 %v8636_v62  ;;  %3023 = vmatprep.mubr.f32.mxu1 %v8636_v62  ;;  %v6550_v30 = vpop.eup %6549  ;;  %v2738_v10 = vadd.f32 1.0, %v6548_v56  ;;  %v8883_v46 = vld [vmem:[#allocation19_spill] sm:$0xff]  ;;  %v8885_v56 = vld [vmem:[#allocation21_spill] sm:$0xff] }
 0x5e2   :  { %6553 = vrcp.f32 %v2731_v49  ;;  %v8884_v49 = vld [vmem:[#allocation20_spill] sm:$0xff] }
 0x5e3   :  { %5653 = vmatpush1.bf16.msra.mxu0 %v8763_v51  ;;  %5685 = vmatpush1.bf16.msra.mxu1 %v8764_v13  ;;  %6555 = vrcp.f32 %v2738_v10  ;;  %v8890_v10 = vld [vmem:[#allocation26_spill] sm:$0xff] }
 0x5e4   :  { %5655 = vmatprep.subr.bf16.mxu0 %v8820_v63  ;;  %5687 = vmatprep.subr.bf16.mxu1 %v8821_v9 }
 0x5e7   :  { %5657 = vmatpush1.bf16.msra.mxu0 %v8822_v23  ;;  %5689 = vmatpush1.bf16.msra.mxu1 %v8823_v20 }
 0x5e8   :  { %5659 = vmatprep.subr.bf16.mxu0 %v8824_v17  ;;  %5691 = vmatprep.subr.bf16.mxu1 %v8825_v53 }
 0x5eb   :  { %v6552_v28 = vpop.eup %6551  ;;  %5661 = vmatpush1.bf16.msra.mxu0 %v8826_v36  ;;  %5693 = vmatpush1.bf16.msra.mxu1 %v8714_v16 }
 0x5ec   :  { %v6554_v60 = vpop.eup %6553  ;;  %v2742_v57 = vmul.f32 %v6552_v28, %v6550_v30  ;;  %5663 = vmatprep.subr.bf16.mxu0 %v8715_v52  ;;  %5695 = vmatprep.subr.bf16.mxu1 %v8716_v59  ;;  %v8886_v30 = vld [vmem:[#allocation22_spill] sm:$0xff]  ;;  %v8887_v28 = vld [vmem:[#allocation23_spill] sm:$0xff] }
 0x5ed   :  { %v2741_v7 = vmul.f32 %v6554_v60, %v7818_v40  ;;  %v6556_v40 = vpop.eup %6555  ;;  %v8888_v60 = vld [vmem:[#allocation24_spill] sm:$0xff] }
 0x5ef   :  { %v7936_v33 = vadd.f32 %v2742_v57, %v2741_v7  ;;  %5665 = vmatpush1.bf16.msra.mxu0 %v8772_v39  ;;  %5697 = vmatpush1.bf16.msra.mxu1 %v8773_v44  ;;  %v8889_v57 = vld [vmem:[#allocation25_spill] sm:$0xff]  ;;  %v8891_v7 = vld [vmem:[#allocation27_spill] sm:$0xff] }
 0x5f0   :  { %5667 = vmatprep.subr.bf16.mxu0 %v8774_v34  ;;  %5699 = vmatprep.subr.bf16.mxu1 %v8775_v6 }
 0x5f1   :  { %6557 = vtanh.f32 %v7936_v33 }
 0x5f3   :  { %5669 = vmatpush1.bf16.msra.mxu0 %v8776_v61  ;;  %5701 = vmatpush1.bf16.msra.mxu1 %v8777_v48 }
 0x5f4   :  { %5671 = vmatprep.subr.bf16.mxu0 %v8778_v31  ;;  %5703 = vmatprep.subr.bf16.mxu1 %v8724_v0 }
 0x5f7   :  { %5673 = vmatpush1.bf16.msra.mxu0 %v8725_v3  ;;  %5705 = vmatpush1.bf16.msra.mxu1 %v8726_v15 }
 0x5f8   :  { %5675 = vmatprep.subr.bf16.mxu0 %v8727_v25  ;;  %5707 = vmatprep.subr.bf16.mxu1 %v8728_v43 }
 0x5fb   :  { %v6558_v14 = vpop.eup %6557  ;;  %5677 = vmatpush1.bf16.msra.mxu0 %v8729_v26  ;;  %5709 = vmatpush1.bf16.msra.mxu1 %v8730_v29 }
 0x5fc   :  { %5711 = vmatprep.subr.bf16.mxu0 %v8731_v2  ;;  %5743 = vmatprep.subr.bf16.mxu1 %v8732_v12  ;;  %v2745_v4 = vmul.f32 %v6558_v14, %v6556_v40  ;;  %v8892_v40 = vld [vmem:[#allocation28_spill] sm:$0xff]  ;;  %v8893_v14 = vld [vmem:[#allocation29_spill] sm:$0xff] }
 0x5fe   :  { %2953 = vmatmul.mubr.f32.vlgmr.msra.gmra.mrb[24].mxu0 %v2745_v4  ;;  %3024 = vmatmul.mubr.f32.vlgmr.msra.gmra.mrb[24].mxu1 %v2745_v4 }
 0x5ff   :  { %5713 = vmatpush1.bf16.msra.mxu0 %v6918_v35  ;;  %5745 = vmatpush1.bf16.msra.mxu1 %v6927_v38 }
 0x600   :  { %5715 = vmatprep.subr.bf16.mxu0 %v6939_v42  ;;  %5747 = vmatprep.subr.bf16.mxu1 %v6954_v47 }
 0x601   :  { %3126 = vmatprep.mubr.f32.mxu0 %v8636_v62  ;;  %3197 = vmatprep.mubr.f32.mxu1 %v8636_v62 }
 0x603   :  { %5717 = vmatpush1.bf16.msra.mxu0 %v6964_v50  ;;  %5749 = vmatpush1.bf16.msra.mxu1 %v6977_v54 }
 0x604   :  { %5719 = vmatprep.subr.bf16.mxu0 %v8879_v58  ;;  %5751 = vmatprep.subr.bf16.mxu1 %v8880_v5 }
 0x607   :  { %5721 = vmatpush1.bf16.msra.mxu0 %v8881_v1  ;;  %5753 = vmatpush1.bf16.msra.mxu1 %v8882_v27 }
 0x608   :  { %5723 = vmatprep.subr.bf16.mxu0 %v8883_v46  ;;  %5755 = vmatprep.subr.bf16.mxu1 %v8884_v49  ;;  %v8894_v46 = vld [vmem:[#allocation30_spill] sm:$0xff]  ;;  %v8895_v49 = vld [vmem:[#allocation31_spill] sm:$0xff] }
 0x60b   :  { %5725 = vmatpush1.bf16.msra.mxu0 %v8885_v56  ;;  %5757 = vmatpush1.bf16.msra.mxu1 %v8886_v30  ;;  %v8896_v56 = vld [vmem:[#allocation32_spill] sm:$0xff]  ;;  %v8897_v30 = vld [vmem:[#allocation33_spill] sm:$0xff] }
 0x60c   :  { %5727 = vmatprep.subr.bf16.mxu0 %v8887_v28  ;;  %5759 = vmatprep.subr.bf16.mxu1 %v8888_v60  ;;  %v8898_v28 = vld [vmem:[#allocation34_spill] sm:$0xff]  ;;  %v8899_v60 = vld [vmem:[#allocation35_spill] sm:$0xff] }
 0x60f   :  { %5729 = vmatpush1.bf16.msra.mxu0 %v8889_v57  ;;  %5761 = vmatpush1.bf16.msra.mxu1 %v8890_v10  ;;  %v8900_v57 = vld [vmem:[#allocation36_spill] sm:$0xff]  ;;  %v8901_v10 = vld [vmem:[#allocation37_spill] sm:$0xff] }
 0x610   :  { %5731 = vmatprep.subr.bf16.mxu0 %v8891_v7  ;;  %5763 = vmatprep.subr.bf16.mxu1 %v8892_v40  ;;  %v8902_v7 = vld [vmem:[#allocation38_spill] sm:$0xff]  ;;  %v8903_v40 = vld [vmem:[#allocation39_spill] sm:$0xff] }
 0x613   :  { %5733 = vmatpush1.bf16.msra.mxu0 %v8893_v14  ;;  %5765 = vmatpush1.bf16.msra.mxu1 %v8894_v46  ;;  %v8904_v14 = vld [vmem:[#allocation40_spill] sm:$0xff]  ;;  %v8937_v46 = vld [vmem:[#allocation106_spill] sm:$0xff] }
 0x614   :  { %5735 = vmatprep.subr.bf16.mxu0 %v8895_v49  ;;  %5767 = vmatprep.subr.bf16.mxu1 %v8896_v56  ;;  %v8905_v49 = vld [vmem:[#allocation41_spill] sm:$0xff]  ;;  %v8906_v56 = vld [vmem:[#allocation42_spill] sm:$0xff] }
 0x617   :  { %5737 = vmatpush1.bf16.msra.mxu0 %v8897_v30  ;;  %5769 = vmatpush1.bf16.msra.mxu1 %v8898_v28  ;;  %v8907_v30 = vld [vmem:[#allocation43_spill] sm:$0xff]  ;;  %v8908_v28 = vld [vmem:[#allocation44_spill] sm:$0xff] }
 0x618   :  { %5739 = vmatprep.subr.bf16.mxu0 %v8899_v60  ;;  %5771 = vmatprep.subr.bf16.mxu1 %v8900_v57  ;;  %v8918_v57 = vld [vmem:[#allocation54_spill] sm:$0xff]  ;;  %v8919_v60 = vld [vmem:[#allocation55_spill] sm:$0xff] }
 0x61b   :  { %5741 = vmatpush1.bf16.msra.mxu0 %v8901_v10  ;;  %5773 = vmatpush1.bf16.msra.mxu1 %v8902_v7  ;;  %v8909_v10 = vld [vmem:[#allocation45_spill] sm:$0xff]  ;;  %v8910_v7 = vld [vmem:[#allocation46_spill] sm:$0xff] }
 0x61c   :  { %5775 = vmatprep.subr.bf16.mxu0 %v8903_v40  ;;  %5807 = vmatprep.subr.bf16.mxu1 %v8904_v14  ;;  %v8911_v40 = vld [vmem:[#allocation47_spill] sm:$0xff]  ;;  %v8912_v14 = vld [vmem:[#allocation48_spill] sm:$0xff] }
 0x61e   :  { %3127 = vmatmul.mubr.f32.vlgmr.msra.gmra.mrb[10].mxu0 %v2745_v4  ;;  %3198 = vmatmul.mubr.f32.vlgmr.msra.gmra.mrb[10].mxu1 %v2745_v4  ;;  %v8913_v4 = vld [vmem:[#allocation49_spill] sm:$0xff] }
 0x61f   :  { %5777 = vmatpush1.bf16.msra.mxu0 %v8905_v49  ;;  %5809 = vmatpush1.bf16.msra.mxu1 %v8906_v56  ;;  %v8914_v49 = vld [vmem:[#allocation50_spill] sm:$0xff]  ;;  %v8915_v56 = vld [vmem:[#allocation51_spill] sm:$0xff] }
 0x620   :  { %5779 = vmatprep.subr.bf16.mxu0 %v8907_v30  ;;  %5811 = vmatprep.subr.bf16.mxu1 %v8908_v28  ;;  %v8916_v30 = vld [vmem:[#allocation52_spill] sm:$0xff]  ;;  %v8917_v28 = vld [vmem:[#allocation53_spill] sm:$0xff] }
 0x621   :  { %3296 = vmatprep.mubr.f32.mxu0 %v8636_v62  ;;  %3367 = vmatprep.mubr.f32.mxu1 %v8636_v62 }
 0x623   :  { %5781 = vmatpush1.bf16.msra.mxu0 %v8909_v10  ;;  %5813 = vmatpush1.bf16.msra.mxu1 %v8910_v7  ;;  %v8920_v10 = vld [vmem:[#allocation56_spill] sm:$0xff]  ;;  %v8921_v7 = vld [vmem:[#allocation57_spill] sm:$0xff] }
 0x624   :  { %5783 = vmatprep.subr.bf16.mxu0 %v8911_v40  ;;  %5815 = vmatprep.subr.bf16.mxu1 %v8912_v14  ;;  %v8922_v40 = vld [vmem:[#allocation58_spill] sm:$0xff]  ;;  %v8923_v14 = vld [vmem:[#allocation59_spill] sm:$0xff] }
 0x627   :  { %5785 = vmatpush1.bf16.msra.mxu0 %v8913_v4  ;;  %5817 = vmatpush1.bf16.msra.mxu1 %v8914_v49  ;;  %v8924_v4 = vld [vmem:[#allocation60_spill] sm:$0xff]  ;;  %v8925_v49 = vld [vmem:[#allocation61_spill] sm:$0xff] }
 0x628   :  { %5787 = vmatprep.subr.bf16.mxu0 %v8915_v56  ;;  %5819 = vmatprep.subr.bf16.mxu1 %v8916_v30  ;;  %v8926_v56 = vld [vmem:[#allocation62_spill] sm:$0xff]  ;;  %v8927_v30 = vld [vmem:[#allocation63_spill] sm:$0xff] }
 0x62b   :  { %5789 = vmatpush1.bf16.msra.mxu0 %v8917_v28  ;;  %5821 = vmatpush1.bf16.msra.mxu1 %v8918_v57  ;;  %v8928_v28 = vld [vmem:[#allocation64_spill] sm:$0xff]  ;;  %v8929_v57 = vld [vmem:[#allocation65_spill] sm:$0xff] }
 0x62c   :  { %5791 = vmatprep.subr.bf16.mxu0 %v8919_v60  ;;  %5823 = vmatprep.subr.bf16.mxu1 %v8920_v10  ;;  %v8930_v60 = vld [vmem:[#allocation66_spill] sm:$0xff]  ;;  %v8931_v10 = vld [vmem:[#allocation67_spill] sm:$0xff] }
 0x62f   :  { %5793 = vmatpush1.bf16.msra.mxu0 %v8921_v7  ;;  %5825 = vmatpush1.bf16.msra.mxu1 %v8922_v40  ;;  %v8932_v7 = vld [vmem:[#allocation68_spill] sm:$0xff]  ;;  %v8933_v40 = vld [vmem:[#allocation69_spill] sm:$0xff] }
 0x630   :  { %5795 = vmatprep.subr.bf16.mxu0 %v8923_v14  ;;  %5827 = vmatprep.subr.bf16.mxu1 %v8924_v4  ;;  %v8934_v14 = vld [vmem:[#allocation70_spill] sm:$0xff]  ;;  %v8935_v4 = vld [vmem:[#allocation71_spill] sm:$0xff] }
 0x633   :  { %5797 = vmatpush1.bf16.msra.mxu0 %v8925_v49  ;;  %5829 = vmatpush1.bf16.msra.mxu1 %v8926_v56  ;;  %v8936_v49 = vld [vmem:[#allocation72_spill] sm:$0xff] }
 0x634   :  { %5799 = vmatprep.subr.bf16.mxu0 %v8927_v30  ;;  %5831 = vmatprep.subr.bf16.mxu1 %v8928_v28 }
 0x637   :  { %5801 = vmatpush1.bf16.msra.mxu0 %v8929_v57  ;;  %5833 = vmatpush1.bf16.msra.mxu1 %v8930_v60 }
 0x638   :  { %5803 = vmatprep.subr.bf16.mxu0 %v8931_v10  ;;  %5835 = vmatprep.subr.bf16.mxu1 %v8932_v7 }
 0x63b   :  { %5805 = vmatpush1.bf16.msra.mxu0 %v8933_v40  ;;  %5837 = vmatpush1.bf16.msra.mxu1 %v8934_v14 }
 0x63c   :  { %5839 = vmatprep.subr.bf16.mxu0 %v8935_v4  ;;  %5871 = vmatprep.subr.bf16.mxu1 %v8936_v49 }
 0x6d1   :  { %v2954_v56 = vpop.f32.mrb[24].mxu0  ;;  %v3025_v30 = vpop.f32.mrb[24].mxu1 }
 0x6d2   :  { %v3030_v28 = vadd.f32 %v2954_v56, %v8937_v46  ;;  %v2956_v27 = vpop.f32.mrb[25].mxu0  ;;  %v3027_v57 = vpop.f32.mrb[25].mxu1  ;;  %v3032_v14 = vadd.f32 %v3025_v30, %v8819_v45 }
 0x6d3   :  { %v3031_v60 = vadd.f32 %v2956_v27, %v8818_v32  ;;  %v3033_v40 = vadd.f32 %v3027_v57, %v8757_v8 }
 0x6d4   :  { %v4660_v1 = vmul.f32 -1.442695, %v3030_v28 }
 0x6d5   :  { %v4661_v10 = vmul.f32 -1.442695, %v3031_v60  ;;  %v4662_v7 = vmul.f32 -1.442695, %v3033_v40 }
 0x6d6   :  { %6559 = vpow2.f32 %v4660_v1 }
 0x6d7   :  { %6561 = vpow2.f32 %v4661_v10 }
 0x6d8   :  { %6563 = vpow2.f32 %v4662_v7 }
 0x6d9   :  { %6565 = vtanh.f32 %v3032_v14 }
 0x6e0   :  { %v6560_v4 = vpop.eup %6559 }
 0x6e1   :  { %v6562_v5 = vpop.eup %6561  ;;  %v3037_v49 = vadd.f32 1.0, %v6560_v4 }
 0x6e2   :  { %v3043_v58 = vadd.f32 1.0, %v6562_v5  ;;  %v6564_v56 = vpop.eup %6563 }
 0x6e3   :  { %6567 = vrcp.f32 %v3037_v49  ;;  %v6566_v46 = vpop.eup %6565  ;;  %v3050_v1 = vadd.f32 1.0, %v6564_v56 }
 0x6e4   :  { %6569 = vrcp.f32 %v3043_v58 }
 0x6e5   :  { %6571 = vrcp.f32 %v3050_v1 }
 0x6ed   :  { %v6568_v27 = vpop.eup %6567 }
 0x6ee   :  { %v6570_v28 = vpop.eup %6569  ;;  %v3054_v60 = vmul.f32 %v6568_v27, %v6566_v46 }
 0x6ef   :  { %v3053_v10 = vmul.f32 %v6570_v28, %v7910_v11  ;;  %v6572_v11 = vpop.eup %6571 }
 0x6f1   :  { %v8028_v57 = vadd.f32 %v3054_v60, %v3053_v10  ;;  %v3128_v40 = vpop.f32.mrb[10].mxu0  ;;  %v3199_v30 = vpop.f32.mrb[10].mxu1 }
 0x6f2   :  { %v6320_v4 = vadd.f32 %v3128_v40, %v8760_v18  ;;  %v3130_v7 = vpop.f32.mrb[11].mxu0  ;;  %v3201_v14 = vpop.f32.mrb[11].mxu1  ;;  %v6336_v28 = vadd.f32 %v3199_v30, %v7462_v41 }
 0x6f3   :  { %v6321_v5 = vadd.f32 %v3130_v7, %v8699_v37  ;;  %6573 = vtanh.f32 %v8028_v57  ;;  %v6337_v46 = vadd.f32 %v3201_v14, %v8700_v21 }
 0x6f4   :  { %v4663_v58 = vmul.f32 -1.442695, %v6320_v4 }
 0x6f5   :  { %v4664_v49 = vmul.f32 -1.442695, %v6321_v5  ;;  %v4665_v27 = vmul.f32 -1.442695, %v6337_v46 }
 0x6f6   :  { %6575 = vpow2.f32 %v4663_v58 }
 0x6f7   :  { %6577 = vpow2.f32 %v4664_v49 }
 0x6f8   :  { %6579 = vpow2.f32 %v4665_v27 }
 0x6f9   :  { %6581 = vtanh.f32 %v6336_v28  ;;  %v8938_v28 = vld [vmem:[#allocation15_spill] sm:$0xff] }
 0x6fd   :  { %v6574_v56 = vpop.eup %6573 }
 0x6fe   :  { %v3057_v60 = vmul.f32 %v6574_v56, %v6572_v11 }
 0x700   :  { %v6576_v1 = vpop.eup %6575  ;;  %3297 = vmatmul.mubr.f32.vlgmr.msra.gmra.mrb[26].mxu0 %v3057_v60  ;;  %3368 = vmatmul.mubr.f32.vlgmr.msra.gmra.mrb[26].mxu1 %v3057_v60  ;;  %v8939_v60 = vld [vmem:[#allocation16_spill] sm:$0xff] }
 0x701   :  { %v6578_v10 = vpop.eup %6577  ;;  %v3211_v40 = vadd.f32 1.0, %v6576_v1  ;;  %5841 = vmatpush1.bf16.msra.mxu0 %v8701_v22  ;;  %5873 = vmatpush1.bf16.msra.mxu1 %v8702_v55  ;;  %v8940_v1 = vld [vmem:[#allocation17_spill] sm:$0xff] }
 0x702   :  { %v3217_v4 = vadd.f32 1.0, %v6578_v10  ;;  %5843 = vmatprep.subr.bf16.mxu0 %v8761_v24  ;;  %5875 = vmatprep.subr.bf16.mxu1 %v8762_v19  ;;  %v6580_v30 = vpop.eup %6579  ;;  %v8941_v10 = vld [vmem:[#allocation18_spill] sm:$0xff] }
 0x703   :  { %6583 = vrcp.f32 %v3211_v40  ;;  %3438 = vmatprep.mubr.f32.mxu0 %v8636_v62  ;;  %3509 = vmatprep.mubr.f32.mxu1 %v8636_v62  ;;  %v6582_v7 = vpop.eup %6581  ;;  %v3224_v49 = vadd.f32 1.0, %v6580_v30  ;;  %v8942_v40 = vld [vmem:[#allocation19_spill] sm:$0xff]  ;;  %v8944_v30 = vld [vmem:[#allocation21_spill] sm:$0xff] }
 0x704   :  { %6585 = vrcp.f32 %v3217_v4  ;;  %v8943_v4 = vld [vmem:[#allocation20_spill] sm:$0xff] }
 0x705   :  { %5845 = vmatpush1.bf16.msra.mxu0 %v8763_v51  ;;  %5877 = vmatpush1.bf16.msra.mxu1 %v8764_v13  ;;  %6587 = vrcp.f32 %v3224_v49  ;;  %v8949_v49 = vld [vmem:[#allocation26_spill] sm:$0xff] }
 0x706   :  { %5847 = vmatprep.subr.bf16.mxu0 %v8820_v63  ;;  %5879 = vmatprep.subr.bf16.mxu1 %v8821_v9 }
 0x709   :  { %5849 = vmatpush1.bf16.msra.mxu0 %v8822_v23  ;;  %5881 = vmatpush1.bf16.msra.mxu1 %v8823_v20 }
 0x70a   :  { %5851 = vmatprep.subr.bf16.mxu0 %v8824_v17  ;;  %5883 = vmatprep.subr.bf16.mxu1 %v8825_v53 }
 0x70d   :  { %v6584_v14 = vpop.eup %6583  ;;  %5853 = vmatpush1.bf16.msra.mxu0 %v8826_v36  ;;  %5885 = vmatpush1.bf16.msra.mxu1 %v8714_v16 }
 0x70e   :  { %v6586_v5 = vpop.eup %6585  ;;  %v3228_v58 = vmul.f32 %v6584_v14, %v6582_v7  ;;  %5855 = vmatprep.subr.bf16.mxu0 %v8715_v52  ;;  %5887 = vmatprep.subr.bf16.mxu1 %v8716_v59  ;;  %v8945_v7 = vld [vmem:[#allocation22_spill] sm:$0xff]  ;;  %v8946_v14 = vld [vmem:[#allocation23_spill] sm:$0xff] }
 0x70f   :  { %v3227_v46 = vmul.f32 %v6586_v5, %v7936_v33  ;;  %v6588_v33 = vpop.eup %6587  ;;  %v8947_v5 = vld [vmem:[#allocation24_spill] sm:$0xff] }
 0x711   :  { %v8054_v11 = vadd.f32 %v3228_v58, %v3227_v46  ;;  %5857 = vmatpush1.bf16.msra.mxu0 %v8772_v39  ;;  %5889 = vmatpush1.bf16.msra.mxu1 %v8773_v44  ;;  %v8948_v58 = vld [vmem:[#allocation25_spill] sm:$0xff]  ;;  %v8950_v46 = vld [vmem:[#allocation27_spill] sm:$0xff] }
 0x712   :  { %5859 = vmatprep.subr.bf16.mxu0 %v8774_v34  ;;  %5891 = vmatprep.subr.bf16.mxu1 %v8775_v6 }
 0x713   :  { %6589 = vtanh.f32 %v8054_v11 }
 0x715   :  { %5861 = vmatpush1.bf16.msra.mxu0 %v8776_v61  ;;  %5893 = vmatpush1.bf16.msra.mxu1 %v8777_v48 }
 0x716   :  { %5863 = vmatprep.subr.bf16.mxu0 %v8778_v31  ;;  %5895 = vmatprep.subr.bf16.mxu1 %v8724_v0 }
 0x719   :  { %5865 = vmatpush1.bf16.msra.mxu0 %v8725_v3  ;;  %5897 = vmatpush1.bf16.msra.mxu1 %v8726_v15 }
 0x71a   :  { %5867 = vmatprep.subr.bf16.mxu0 %v8727_v25  ;;  %5899 = vmatprep.subr.bf16.mxu1 %v8728_v43 }
 0x71d   :  { %v6590_v56 = vpop.eup %6589  ;;  %5869 = vmatpush1.bf16.msra.mxu0 %v8729_v26  ;;  %5901 = vmatpush1.bf16.msra.mxu1 %v8730_v29 }
 0x71e   :  { %v3231_v27 = vmul.f32 %v6590_v56, %v6588_v33  ;;  %5903 = vmatprep.subr.bf16.mxu0 %v8731_v2  ;;  %5935 = vmatprep.subr.bf16.mxu1 %v8732_v12  ;;  %v8951_v33 = vld [vmem:[#allocation28_spill] sm:$0xff]  ;;  %v8952_v56 = vld [vmem:[#allocation29_spill] sm:$0xff] }
 0x720   :  { %3439 = vmatmul.mubr.f32.vlgmr.msra.gmra.mrb[26].mxu0 %v3231_v27  ;;  %3510 = vmatmul.mubr.f32.vlgmr.msra.gmra.mrb[26].mxu1 %v3231_v27 }
 0x721   :  { %5905 = vmatpush1.bf16.msra.mxu0 %v6918_v35  ;;  %5937 = vmatpush1.bf16.msra.mxu1 %v6927_v38 }
 0x722   :  { %5907 = vmatprep.subr.bf16.mxu0 %v6939_v42  ;;  %5939 = vmatprep.subr.bf16.mxu1 %v6954_v47 }
 0x723   :  { %3612 = vmatprep.mubr.f32.mxu0 %v8636_v62  ;;  %3683 = vmatprep.mubr.f32.mxu1 %v8636_v62 }
 0x725   :  { %5909 = vmatpush1.bf16.msra.mxu0 %v6964_v50  ;;  %5941 = vmatpush1.bf16.msra.mxu1 %v6977_v54 }
 0x726   :  { %5911 = vmatprep.subr.bf16.mxu0 %v8938_v28  ;;  %5943 = vmatprep.subr.bf16.mxu1 %v8939_v60 }
 0x729   :  { %5913 = vmatpush1.bf16.msra.mxu0 %v8940_v1  ;;  %5945 = vmatpush1.bf16.msra.mxu1 %v8941_v10 }
 0x72a   :  { %5915 = vmatprep.subr.bf16.mxu0 %v8942_v40  ;;  %5947 = vmatprep.subr.bf16.mxu1 %v8943_v4  ;;  %v8953_v40 = vld [vmem:[#allocation30_spill] sm:$0xff]  ;;  %v8954_v4 = vld [vmem:[#allocation31_spill] sm:$0xff] }
 0x72d   :  { %5917 = vmatpush1.bf16.msra.mxu0 %v8944_v30  ;;  %5949 = vmatpush1.bf16.msra.mxu1 %v8945_v7  ;;  %v8955_v30 = vld [vmem:[#allocation32_spill] sm:$0xff]  ;;  %v8956_v7 = vld [vmem:[#allocation33_spill] sm:$0xff] }
 0x72e   :  { %5919 = vmatprep.subr.bf16.mxu0 %v8946_v14  ;;  %5951 = vmatprep.subr.bf16.mxu1 %v8947_v5  ;;  %v8957_v14 = vld [vmem:[#allocation34_spill] sm:$0xff]  ;;  %v8958_v5 = vld [vmem:[#allocation35_spill] sm:$0xff] }
 0x731   :  { %5921 = vmatpush1.bf16.msra.mxu0 %v8948_v58  ;;  %5953 = vmatpush1.bf16.msra.mxu1 %v8949_v49  ;;  %v8959_v58 = vld [vmem:[#allocation36_spill] sm:$0xff]  ;;  %v8960_v49 = vld [vmem:[#allocation37_spill] sm:$0xff] }
 0x732   :  { %5923 = vmatprep.subr.bf16.mxu0 %v8950_v46  ;;  %5955 = vmatprep.subr.bf16.mxu1 %v8951_v33  ;;  %v8961_v46 = vld [vmem:[#allocation38_spill] sm:$0xff]  ;;  %v8962_v33 = vld [vmem:[#allocation39_spill] sm:$0xff] }
 0x735   :  { %5925 = vmatpush1.bf16.msra.mxu0 %v8952_v56  ;;  %5957 = vmatpush1.bf16.msra.mxu1 %v8953_v40  ;;  %v8963_v56 = vld [vmem:[#allocation40_spill] sm:$0xff]  ;;  %v8996_v40 = vld [vmem:[#allocation106_spill] sm:$0xff] }
 0x736   :  { %5927 = vmatprep.subr.bf16.mxu0 %v8954_v4  ;;  %5959 = vmatprep.subr.bf16.mxu1 %v8955_v30  ;;  %v8964_v4 = vld [vmem:[#allocation41_spill] sm:$0xff]  ;;  %v8965_v30 = vld [vmem:[#allocation42_spill] sm:$0xff] }
 0x739   :  { %5929 = vmatpush1.bf16.msra.mxu0 %v8956_v7  ;;  %5961 = vmatpush1.bf16.msra.mxu1 %v8957_v14  ;;  %v8966_v7 = vld [vmem:[#allocation43_spill] sm:$0xff]  ;;  %v8967_v14 = vld [vmem:[#allocation44_spill] sm:$0xff] }
 0x73a   :  { %5931 = vmatprep.subr.bf16.mxu0 %v8958_v5  ;;  %5963 = vmatprep.subr.bf16.mxu1 %v8959_v58  ;;  %v8977_v58 = vld [vmem:[#allocation54_spill] sm:$0xff]  ;;  %v8978_v5 = vld [vmem:[#allocation55_spill] sm:$0xff] }
 0x73d   :  { %5933 = vmatpush1.bf16.msra.mxu0 %v8960_v49  ;;  %5965 = vmatpush1.bf16.msra.mxu1 %v8961_v46  ;;  %v8968_v49 = vld [vmem:[#allocation45_spill] sm:$0xff]  ;;  %v8969_v46 = vld [vmem:[#allocation46_spill] sm:$0xff] }
 0x73e   :  { %5967 = vmatprep.subr.bf16.mxu0 %v8962_v33  ;;  %5999 = vmatprep.subr.bf16.mxu1 %v8963_v56  ;;  %v8970_v33 = vld [vmem:[#allocation47_spill] sm:$0xff]  ;;  %v8971_v56 = vld [vmem:[#allocation48_spill] sm:$0xff] }
 0x740   :  { %3613 = vmatmul.mubr.f32.vlgmr.msra.gmra.mrb[12].mxu0 %v3231_v27  ;;  %3684 = vmatmul.mubr.f32.vlgmr.msra.gmra.mrb[12].mxu1 %v3231_v27  ;;  %v8972_v27 = vld [vmem:[#allocation49_spill] sm:$0xff] }
 0x741   :  { %5969 = vmatpush1.bf16.msra.mxu0 %v8964_v4  ;;  %6001 = vmatpush1.bf16.msra.mxu1 %v8965_v30  ;;  %v8973_v4 = vld [vmem:[#allocation50_spill] sm:$0xff]  ;;  %v8974_v30 = vld [vmem:[#allocation51_spill] sm:$0xff] }
 0x742   :  { %5971 = vmatprep.subr.bf16.mxu0 %v8966_v7  ;;  %6003 = vmatprep.subr.bf16.mxu1 %v8967_v14  ;;  %v8975_v7 = vld [vmem:[#allocation52_spill] sm:$0xff]  ;;  %v8976_v14 = vld [vmem:[#allocation53_spill] sm:$0xff] }
 0x743   :  { %3782 = vmatprep.mubr.f32.mxu0 %v8636_v62  ;;  %3853 = vmatprep.mubr.f32.mxu1 %v8636_v62 }
 0x745   :  { %5973 = vmatpush1.bf16.msra.mxu0 %v8968_v49  ;;  %6005 = vmatpush1.bf16.msra.mxu1 %v8969_v46  ;;  %v8979_v49 = vld [vmem:[#allocation56_spill] sm:$0xff]  ;;  %v8980_v46 = vld [vmem:[#allocation57_spill] sm:$0xff] }
 0x746   :  { %5975 = vmatprep.subr.bf16.mxu0 %v8970_v33  ;;  %6007 = vmatprep.subr.bf16.mxu1 %v8971_v56  ;;  %v8981_v33 = vld [vmem:[#allocation58_spill] sm:$0xff]  ;;  %v8982_v56 = vld [vmem:[#allocation59_spill] sm:$0xff] }
 0x749   :  { %5977 = vmatpush1.bf16.msra.mxu0 %v8972_v27  ;;  %6009 = vmatpush1.bf16.msra.mxu1 %v8973_v4  ;;  %v8983_v27 = vld [vmem:[#allocation60_spill] sm:$0xff]  ;;  %v8984_v4 = vld [vmem:[#allocation61_spill] sm:$0xff] }
 0x74a   :  { %5979 = vmatprep.subr.bf16.mxu0 %v8974_v30  ;;  %6011 = vmatprep.subr.bf16.mxu1 %v8975_v7  ;;  %v8985_v30 = vld [vmem:[#allocation62_spill] sm:$0xff]  ;;  %v8986_v7 = vld [vmem:[#allocation63_spill] sm:$0xff] }
 0x74d   :  { %5981 = vmatpush1.bf16.msra.mxu0 %v8976_v14  ;;  %6013 = vmatpush1.bf16.msra.mxu1 %v8977_v58  ;;  %v8987_v14 = vld [vmem:[#allocation64_spill] sm:$0xff]  ;;  %v8988_v58 = vld [vmem:[#allocation65_spill] sm:$0xff] }
 0x74e   :  { %5983 = vmatprep.subr.bf16.mxu0 %v8978_v5  ;;  %6015 = vmatprep.subr.bf16.mxu1 %v8979_v49  ;;  %v8989_v5 = vld [vmem:[#allocation66_spill] sm:$0xff]  ;;  %v8990_v49 = vld [vmem:[#allocation67_spill] sm:$0xff] }
 0x751   :  { %5985 = vmatpush1.bf16.msra.mxu0 %v8980_v46  ;;  %6017 = vmatpush1.bf16.msra.mxu1 %v8981_v33  ;;  %v8991_v46 = vld [vmem:[#allocation68_spill] sm:$0xff]  ;;  %v8992_v33 = vld [vmem:[#allocation69_spill] sm:$0xff] }
 0x752   :  { %5987 = vmatprep.subr.bf16.mxu0 %v8982_v56  ;;  %6019 = vmatprep.subr.bf16.mxu1 %v8983_v27  ;;  %v8993_v56 = vld [vmem:[#allocation70_spill] sm:$0xff]  ;;  %v8994_v27 = vld [vmem:[#allocation71_spill] sm:$0xff] }
 0x755   :  { %5989 = vmatpush1.bf16.msra.mxu0 %v8984_v4  ;;  %6021 = vmatpush1.bf16.msra.mxu1 %v8985_v30  ;;  %v8995_v4 = vld [vmem:[#allocation72_spill] sm:$0xff] }
 0x756   :  { %5991 = vmatprep.subr.bf16.mxu0 %v8986_v7  ;;  %6023 = vmatprep.subr.bf16.mxu1 %v8987_v14 }
 0x759   :  { %5993 = vmatpush1.bf16.msra.mxu0 %v8988_v58  ;;  %6025 = vmatpush1.bf16.msra.mxu1 %v8989_v5 }
 0x75a   :  { %5995 = vmatprep.subr.bf16.mxu0 %v8990_v49  ;;  %6027 = vmatprep.subr.bf16.mxu1 %v8991_v46 }
 0x75d   :  { %5997 = vmatpush1.bf16.msra.mxu0 %v8992_v33  ;;  %6029 = vmatpush1.bf16.msra.mxu1 %v8993_v56 }
 0x75e   :  { %6031 = vmatprep.subr.bf16.mxu0 %v8994_v27  ;;  %6063 = vmatprep.subr.bf16.mxu1 %v8995_v4 }
 0x7f3   :  { %v3440_v30 = vpop.f32.mrb[26].mxu0  ;;  %v3511_v7 = vpop.f32.mrb[26].mxu1 }
 0x7f4   :  { %v3516_v14 = vadd.f32 %v3440_v30, %v8996_v40  ;;  %v3442_v10 = vpop.f32.mrb[27].mxu0  ;;  %v3513_v58 = vpop.f32.mrb[27].mxu1  ;;  %v3518_v56 = vadd.f32 %v3511_v7, %v8819_v45 }
 0x7f5   :  { %v3517_v5 = vadd.f32 %v3442_v10, %v8818_v32  ;;  %v3519_v33 = vadd.f32 %v3513_v58, %v8757_v8 }
 0x7f6   :  { %v4666_v1 = vmul.f32 -1.442695, %v3516_v14 }
 0x7f7   :  { %v4667_v49 = vmul.f32 -1.442695, %v3517_v5  ;;  %v4668_v46 = vmul.f32 -1.442695, %v3519_v33 }
 0x7f8   :  { %6591 = vpow2.f32 %v4666_v1 }
 0x7f9   :  { %6593 = vpow2.f32 %v4667_v49 }
 0x7fa   :  { %6595 = vpow2.f32 %v4668_v46 }
 0x7fb   :  { %6597 = vtanh.f32 %v3518_v56 }
 0x802   :  { %v6592_v27 = vpop.eup %6591 }
 0x803   :  { %v6594_v60 = vpop.eup %6593  ;;  %v3523_v4 = vadd.f32 1.0, %v6592_v27 }
 0x804   :  { %v3529_v28 = vadd.f32 1.0, %v6594_v60  ;;  %v6596_v30 = vpop.eup %6595 }
 0x805   :  { %6599 = vrcp.f32 %v3523_v4  ;;  %v6598_v40 = vpop.eup %6597  ;;  %v3536_v1 = vadd.f32 1.0, %v6596_v30 }
 0x806   :  { %6601 = vrcp.f32 %v3529_v28 }
 0x807   :  { %6603 = vrcp.f32 %v3536_v1 }
 0x80f   :  { %v6600_v10 = vpop.eup %6599 }
 0x810   :  { %v6602_v14 = vpop.eup %6601  ;;  %v3540_v5 = vmul.f32 %v6600_v10, %v6598_v40 }
 0x811   :  { %v3539_v49 = vmul.f32 %v6602_v14, %v8028_v57  ;;  %v6604_v57 = vpop.eup %6603 }
 0x813   :  { %v8146_v58 = vadd.f32 %v3540_v5, %v3539_v49  ;;  %v3614_v33 = vpop.f32.mrb[12].mxu0  ;;  %v3685_v7 = vpop.f32.mrb[12].mxu1 }
 0x814   :  { %v6322_v27 = vadd.f32 %v3614_v33, %v8760_v18  ;;  %v3616_v46 = vpop.f32.mrb[13].mxu0  ;;  %v3687_v56 = vpop.f32.mrb[13].mxu1  ;;  %v6338_v14 = vadd.f32 %v3685_v7, %v7462_v41 }
 0x815   :  { %v6323_v60 = vadd.f32 %v3616_v46, %v8699_v37  ;;  %6605 = vtanh.f32 %v8146_v58  ;;  %v6339_v40 = vadd.f32 %v3687_v56, %v8700_v21 }
 0x816   :  { %v4669_v28 = vmul.f32 -1.442695, %v6322_v27 }
 0x817   :  { %v4670_v4 = vmul.f32 -1.442695, %v6323_v60  ;;  %v4671_v10 = vmul.f32 -1.442695, %v6339_v40 }
 0x818   :  { %6607 = vpow2.f32 %v4669_v28 }
 0x819   :  { %6609 = vpow2.f32 %v4670_v4 }
 0x81a   :  { %6611 = vpow2.f32 %v4671_v10 }
 0x81b   :  { %6613 = vtanh.f32 %v6338_v14  ;;  %v8999_v14 = vld [vmem:[#allocation17_spill] sm:$0xff] }
 0x81f   :  { %v6606_v30 = vpop.eup %6605 }
 0x820   :  { %v3543_v5 = vmul.f32 %v6606_v30, %v6604_v57 }
 0x822   :  { %v6608_v1 = vpop.eup %6607  ;;  %3783 = vmatmul.mubr.f32.vlgmr.msra.gmra.mrb[28].mxu0 %v3543_v5  ;;  %3854 = vmatmul.mubr.f32.vlgmr.msra.gmra.mrb[28].mxu1 %v3543_v5  ;;  %v9004_v5 = vld [vmem:[#allocation22_spill] sm:$0xff] }
 0x823   :  { %v6610_v49 = vpop.eup %6609  ;;  %v3697_v33 = vadd.f32 1.0, %v6608_v1  ;;  %6033 = vmatpush1.bf16.msra.mxu0 %v8701_v22  ;;  %6065 = vmatpush1.bf16.msra.mxu1 %v8702_v55  ;;  %v9005_v1 = vld [vmem:[#allocation23_spill] sm:$0xff] }
 0x824   :  { %v3703_v27 = vadd.f32 1.0, %v6610_v49  ;;  %6035 = vmatprep.subr.bf16.mxu0 %v8761_v24  ;;  %6067 = vmatprep.subr.bf16.mxu1 %v8762_v19  ;;  %v6612_v7 = vpop.eup %6611  ;;  %v9008_v49 = vld [vmem:[#allocation26_spill] sm:$0xff] }
 0x825   :  { %6615 = vrcp.f32 %v3697_v33  ;;  %3924 = vmatprep.mubr.f32.mxu0 %v8636_v62  ;;  %3995 = vmatprep.mubr.f32.mxu1 %v8636_v62  ;;  %v6614_v46 = vpop.eup %6613  ;;  %v3710_v4 = vadd.f32 1.0, %v6612_v7  ;;  %v9009_v33 = vld [vmem:[#allocation27_spill] sm:$0xff]  ;;  %v9011_v7 = vld [vmem:[#allocation29_spill] sm:$0xff] }
 0x826   :  { %6617 = vrcp.f32 %v3703_v27  ;;  %v9010_v27 = vld [vmem:[#allocation28_spill] sm:$0xff] }
 0x827   :  { %6037 = vmatpush1.bf16.msra.mxu0 %v8763_v51  ;;  %6069 = vmatpush1.bf16.msra.mxu1 %v8764_v13  ;;  %6619 = vrcp.f32 %v3710_v4  ;;  %v9016_v4 = vld [vmem:[#allocation34_spill] sm:$0xff] }
 0x828   :  { %6039 = vmatprep.subr.bf16.mxu0 %v8820_v63  ;;  %6071 = vmatprep.subr.bf16.mxu1 %v8821_v9 }
 0x82b   :  { %6041 = vmatpush1.bf16.msra.mxu0 %v8822_v23  ;;  %6073 = vmatpush1.bf16.msra.mxu1 %v8823_v20 }
 0x82c   :  { %6043 = vmatprep.subr.bf16.mxu0 %v8824_v17  ;;  %6075 = vmatprep.subr.bf16.mxu1 %v8825_v53 }
 0x82f   :  { %v6616_v56 = vpop.eup %6615  ;;  %6045 = vmatpush1.bf16.msra.mxu0 %v8826_v36  ;;  %6077 = vmatpush1.bf16.msra.mxu1 %v8714_v16 }
 0x830   :  { %v6618_v60 = vpop.eup %6617  ;;  %v3714_v28 = vmul.f32 %v6616_v56, %v6614_v46  ;;  %6047 = vmatprep.subr.bf16.mxu0 %v8715_v52  ;;  %6079 = vmatprep.subr.bf16.mxu1 %v8716_v59  ;;  %v9012_v46 = vld [vmem:[#allocation30_spill] sm:$0xff]  ;;  %v9013_v56 = vld [vmem:[#allocation31_spill] sm:$0xff] }
 0x831   :  { %v3713_v40 = vmul.f32 %v6618_v60, %v8054_v11  ;;  %v6620_v11 = vpop.eup %6619  ;;  %v9014_v60 = vld [vmem:[#allocation32_spill] sm:$0xff] }
 0x833   :  { %v8172_v57 = vadd.f32 %v3714_v28, %v3713_v40  ;;  %6049 = vmatpush1.bf16.msra.mxu0 %v8772_v39  ;;  %6081 = vmatpush1.bf16.msra.mxu1 %v8773_v44  ;;  %v9015_v28 = vld [vmem:[#allocation33_spill] sm:$0xff]  ;;  %v9017_v40 = vld [vmem:[#allocation35_spill] sm:$0xff] }
 0x834   :  { %6051 = vmatprep.subr.bf16.mxu0 %v8774_v34  ;;  %6083 = vmatprep.subr.bf16.mxu1 %v8775_v6 }
 0x835   :  { %6621 = vtanh.f32 %v8172_v57 }
 0x837   :  { %6053 = vmatpush1.bf16.msra.mxu0 %v8776_v61  ;;  %6085 = vmatpush1.bf16.msra.mxu1 %v8777_v48 }
 0x838   :  { %6055 = vmatprep.subr.bf16.mxu0 %v8778_v31  ;;  %6087 = vmatprep.subr.bf16.mxu1 %v8724_v0 }
 0x83b   :  { %6057 = vmatpush1.bf16.msra.mxu0 %v8725_v3  ;;  %6089 = vmatpush1.bf16.msra.mxu1 %v8726_v15 }
 0x83c   :  { %6059 = vmatprep.subr.bf16.mxu0 %v8727_v25  ;;  %6091 = vmatprep.subr.bf16.mxu1 %v8728_v43 }
 0x83f   :  { %v6622_v30 = vpop.eup %6621  ;;  %6061 = vmatpush1.bf16.msra.mxu0 %v8729_v26  ;;  %6093 = vmatpush1.bf16.msra.mxu1 %v8730_v29 }
 0x840   :  { %6095 = vmatprep.subr.bf16.mxu0 %v8731_v2  ;;  %6127 = vmatprep.subr.bf16.mxu1 %v8732_v12  ;;  %v3717_v10 = vmul.f32 %v6622_v30, %v6620_v11  ;;  %v8997_v2 = vld [vmem:[#allocation15_spill] sm:$0xff]  ;;  %v8998_v12 = vld [vmem:[#allocation16_spill] sm:$0xff]  ;;  %v9019_v30 = vld [vmem:[#allocation37_spill] sm:$0xff] }
 0x841   :  { %v9018_v11 = vld [vmem:[#allocation36_spill] sm:$0xff] }
 0x842   :  { %3925 = vmatmul.mubr.f32.vlgmr.msra.gmra.mrb[28].mxu0 %v3717_v10  ;;  %3996 = vmatmul.mubr.f32.vlgmr.msra.gmra.mrb[28].mxu1 %v3717_v10 }
 0x843   :  { %6097 = vmatpush1.bf16.msra.mxu0 %v6918_v35  ;;  %6129 = vmatpush1.bf16.msra.mxu1 %v6927_v38  ;;  %v9000_v35 = vld [vmem:[#allocation18_spill] sm:$0xff]  ;;  %v9001_v38 = vld [vmem:[#allocation19_spill] sm:$0xff] }
 0x844   :  { %6099 = vmatprep.subr.bf16.mxu0 %v6939_v42  ;;  %6131 = vmatprep.subr.bf16.mxu1 %v6954_v47  ;;  %v9002_v42 = vld [vmem:[#allocation20_spill] sm:$0xff]  ;;  %v9003_v47 = vld [vmem:[#allocation21_spill] sm:$0xff] }
 0x845   :  { %4098 = vmatprep.mubr.f32.mxu0 %v8636_v62  ;;  %4169 = vmatprep.mubr.f32.mxu1 %v8636_v62 }
 0x847   :  { %6101 = vmatpush1.bf16.msra.mxu0 %v6964_v50  ;;  %6133 = vmatpush1.bf16.msra.mxu1 %v6977_v54  ;;  %v9006_v50 = vld [vmem:[#allocation24_spill] sm:$0xff]  ;;  %v9007_v54 = vld [vmem:[#allocation25_spill] sm:$0xff] }
 0x848   :  { %6103 = vmatprep.subr.bf16.mxu0 %v8997_v2  ;;  %6135 = vmatprep.subr.bf16.mxu1 %v8998_v12  ;;  %v9020_v2 = vld [vmem:[#allocation38_spill] sm:$0xff]  ;;  %v9021_v12 = vld [vmem:[#allocation39_spill] sm:$0xff] }
 0x84b   :  { %6105 = vmatpush1.bf16.msra.mxu0 %v8999_v14  ;;  %6137 = vmatpush1.bf16.msra.mxu1 %v9000_v35  ;;  %v9022_v14 = vld [vmem:[#allocation40_spill] sm:$0xff]  ;;  %v9023_v35 = vld [vmem:[#allocation41_spill] sm:$0xff] }
 0x84c   :  { %6107 = vmatprep.subr.bf16.mxu0 %v9001_v38  ;;  %6139 = vmatprep.subr.bf16.mxu1 %v9002_v42  ;;  %v9024_v38 = vld [vmem:[#allocation42_spill] sm:$0xff]  ;;  %v9025_v42 = vld [vmem:[#allocation43_spill] sm:$0xff] }
 0x84f   :  { %6109 = vmatpush1.bf16.msra.mxu0 %v9003_v47  ;;  %6141 = vmatpush1.bf16.msra.mxu1 %v9004_v5  ;;  %v9026_v47 = vld [vmem:[#allocation44_spill] sm:$0xff]  ;;  %v9027_v5 = vld [vmem:[#allocation45_spill] sm:$0xff] }
 0x850   :  { %6111 = vmatprep.subr.bf16.mxu0 %v9005_v1  ;;  %6143 = vmatprep.subr.bf16.mxu1 %v9006_v50  ;;  %v9028_v1 = vld [vmem:[#allocation46_spill] sm:$0xff]  ;;  %v9029_v50 = vld [vmem:[#allocation47_spill] sm:$0xff] }
 0x853   :  { %6113 = vmatpush1.bf16.msra.mxu0 %v9007_v54  ;;  %6145 = vmatpush1.bf16.msra.mxu1 %v9008_v49  ;;  %v9030_v54 = vld [vmem:[#allocation48_spill] sm:$0xff]  ;;  %v9032_v49 = vld [vmem:[#allocation50_spill] sm:$0xff] }
 0x854   :  { %6115 = vmatprep.subr.bf16.mxu0 %v9009_v33  ;;  %6147 = vmatprep.subr.bf16.mxu1 %v9010_v27  ;;  %v9033_v33 = vld [vmem:[#allocation51_spill] sm:$0xff]  ;;  %v9034_v27 = vld [vmem:[#allocation52_spill] sm:$0xff] }
 0x857   :  { %6117 = vmatpush1.bf16.msra.mxu0 %v9011_v7  ;;  %6149 = vmatpush1.bf16.msra.mxu1 %v9012_v46  ;;  %v9035_v7 = vld [vmem:[#allocation53_spill] sm:$0xff]  ;;  %v9036_v46 = vld [vmem:[#allocation54_spill] sm:$0xff] }
 0x858   :  { %6119 = vmatprep.subr.bf16.mxu0 %v9013_v56  ;;  %6151 = vmatprep.subr.bf16.mxu1 %v9014_v60  ;;  %v9037_v56 = vld [vmem:[#allocation55_spill] sm:$0xff]  ;;  %v9038_v60 = vld [vmem:[#allocation56_spill] sm:$0xff] }
 0x85b   :  { %6121 = vmatpush1.bf16.msra.mxu0 %v9015_v28  ;;  %6153 = vmatpush1.bf16.msra.mxu1 %v9016_v4  ;;  %v9039_v28 = vld [vmem:[#allocation57_spill] sm:$0xff]  ;;  %v9040_v4 = vld [vmem:[#allocation58_spill] sm:$0xff] }
 0x85c   :  { %6123 = vmatprep.subr.bf16.mxu0 %v9017_v40  ;;  %6155 = vmatprep.subr.bf16.mxu1 %v9018_v11  ;;  %v9041_v40 = vld [vmem:[#allocation59_spill] sm:$0xff]  ;;  %v9042_v11 = vld [vmem:[#allocation60_spill] sm:$0xff] }
 0x85f   :  { %6125 = vmatpush1.bf16.msra.mxu0 %v9019_v30  ;;  %6157 = vmatpush1.bf16.msra.mxu1 %v9020_v2  ;;  %v9043_v30 = vld [vmem:[#allocation61_spill] sm:$0xff]  ;;  %v9044_v2 = vld [vmem:[#allocation62_spill] sm:$0xff] }
 0x860   :  { %6159 = vmatprep.subr.bf16.mxu0 %v9021_v12  ;;  %6191 = vmatprep.subr.bf16.mxu1 %v9022_v14  ;;  %v9045_v12 = vld [vmem:[#allocation63_spill] sm:$0xff]  ;;  %v9046_v14 = vld [vmem:[#allocation64_spill] sm:$0xff] }
 0x862   :  { %4099 = vmatmul.mubr.f32.vlgmr.msra.gmra.mrb[14].mxu0 %v3717_v10  ;;  %4170 = vmatmul.mubr.f32.vlgmr.msra.gmra.mrb[14].mxu1 %v3717_v10  ;;  %v9031_v10 = vld [vmem:[#allocation49_spill] sm:$0xff] }
 0x863   :  { %6161 = vmatpush1.bf16.msra.mxu0 %v9023_v35  ;;  %6193 = vmatpush1.bf16.msra.mxu1 %v9024_v38  ;;  %v9047_v35 = vld [vmem:[#allocation65_spill] sm:$0xff]  ;;  %v9048_v38 = vld [vmem:[#allocation66_spill] sm:$0xff] }
 0x864   :  { %6163 = vmatprep.subr.bf16.mxu0 %v9025_v42  ;;  %6195 = vmatprep.subr.bf16.mxu1 %v9026_v47  ;;  %v9049_v42 = vld [vmem:[#allocation67_spill] sm:$0xff]  ;;  %v9050_v47 = vld [vmem:[#allocation68_spill] sm:$0xff] }
 0x865   :  { %4268 = vmatprep.mubr.f32.mxu0 %v8636_v62  ;;  %4339 = vmatprep.mubr.f32.mxu1 %v8636_v62 }
 0x867   :  { %6165 = vmatpush1.bf16.msra.mxu0 %v9027_v5  ;;  %6197 = vmatpush1.bf16.msra.mxu1 %v9028_v1  ;;  %v9051_v5 = vld [vmem:[#allocation69_spill] sm:$0xff]  ;;  %v9052_v1 = vld [vmem:[#allocation70_spill] sm:$0xff] }
 0x868   :  { %6167 = vmatprep.subr.bf16.mxu0 %v9029_v50  ;;  %6199 = vmatprep.subr.bf16.mxu1 %v9030_v54  ;;  %v9053_v50 = vld [vmem:[#allocation71_spill] sm:$0xff]  ;;  %v9054_v54 = vld [vmem:[#allocation72_spill] sm:$0xff] }
 0x86b   :  { %6169 = vmatpush1.bf16.msra.mxu0 %v9031_v10  ;;  %6201 = vmatpush1.bf16.msra.mxu1 %v9032_v49 }
 0x86c   :  { %6171 = vmatprep.subr.bf16.mxu0 %v9033_v33  ;;  %6203 = vmatprep.subr.bf16.mxu1 %v9034_v27  ;;  %v9055_v33 = vld [vmem:[#allocation106_spill] sm:$0xff] }
 0x86f   :  { %6173 = vmatpush1.bf16.msra.mxu0 %v9035_v7  ;;  %6205 = vmatpush1.bf16.msra.mxu1 %v9036_v46 }
 0x870   :  { %6175 = vmatprep.subr.bf16.mxu0 %v9037_v56  ;;  %6207 = vmatprep.subr.bf16.mxu1 %v9038_v60 }
 0x873   :  { %6177 = vmatpush1.bf16.msra.mxu0 %v9039_v28  ;;  %6209 = vmatpush1.bf16.msra.mxu1 %v9040_v4 }
 0x874   :  { %6179 = vmatprep.subr.bf16.mxu0 %v9041_v40  ;;  %6211 = vmatprep.subr.bf16.mxu1 %v9042_v11 }
 0x877   :  { %6181 = vmatpush1.bf16.msra.mxu0 %v9043_v30  ;;  %6213 = vmatpush1.bf16.msra.mxu1 %v9044_v2 }
 0x878   :  { %6183 = vmatprep.subr.bf16.mxu0 %v9045_v12  ;;  %6215 = vmatprep.subr.bf16.mxu1 %v9046_v14 }
 0x87b   :  { %6185 = vmatpush1.bf16.msra.mxu0 %v9047_v35  ;;  %6217 = vmatpush1.bf16.msra.mxu1 %v9048_v38 }
 0x87c   :  { %6187 = vmatprep.subr.bf16.mxu0 %v9049_v42  ;;  %6219 = vmatprep.subr.bf16.mxu1 %v9050_v47 }
 0x87f   :  { %6189 = vmatpush1.bf16.msra.mxu0 %v9051_v5  ;;  %6221 = vmatpush1.bf16.msra.mxu1 %v9052_v1 }
 0x880   :  { %6223 = vmatprep.subr.bf16.mxu0 %v9053_v50  ;;  %6255 = vmatprep.subr.bf16.mxu1 %v9054_v54 }
 0x915   :  { %v3926_v10 = vpop.f32.mrb[28].mxu0  ;;  %v3997_v49 = vpop.f32.mrb[28].mxu1 }
 0x916   :  { %v4002_v27 = vadd.f32 %v3926_v10, %v9055_v33  ;;  %v3928_v7 = vpop.f32.mrb[29].mxu0  ;;  %v3999_v46 = vpop.f32.mrb[29].mxu1  ;;  %v4004_v11 = vadd.f32 %v3997_v49, %v8819_v45 }
 0x917   :  { %v4003_v56 = vadd.f32 %v3928_v7, %v8818_v32  ;;  %v4005_v4 = vadd.f32 %v3999_v46, %v8757_v8 }
 0x918   :  { %v4672_v60 = vmul.f32 -1.442695, %v4002_v27 }
 0x919   :  { %v4673_v28 = vmul.f32 -1.442695, %v4003_v56  ;;  %v4674_v40 = vmul.f32 -1.442695, %v4005_v4 }
 0x91a   :  { %6623 = vpow2.f32 %v4672_v60 }
 0x91b   :  { %6625 = vpow2.f32 %v4673_v28 }
 0x91c   :  { %6627 = vpow2.f32 %v4674_v40 }
 0x91d   :  { %6629 = vtanh.f32 %v4004_v11 }
 0x924   :  { %v6624_v30 = vpop.eup %6623 }
 0x925   :  { %v6626_v2 = vpop.eup %6625  ;;  %v4009_v12 = vadd.f32 1.0, %v6624_v30 }
 0x926   :  { %v4015_v14 = vadd.f32 1.0, %v6626_v2  ;;  %v6628_v35 = vpop.eup %6627 }
 0x927   :  { %6631 = vrcp.f32 %v4009_v12  ;;  %v6630_v38 = vpop.eup %6629  ;;  %v4022_v1 = vadd.f32 1.0, %v6628_v35  ;;  %v4530_v35 = vld [vmem:[%s8371_s7 + $0x70] sm:$0xff] }
 0x928   :  { %6633 = vrcp.f32 %v4015_v14 }
 0x929   :  { %6635 = vrcp.f32 %v4022_v1 }
 0x931   :  { %v6632_v42 = vpop.eup %6631 }
 0x932   :  { %v6634_v47 = vpop.eup %6633  ;;  %v4026_v5 = vmul.f32 %v6632_v42, %v6630_v38  ;;  %v4531_v38 = vld [vmem:[%s8371_s7 + $0x78] sm:$0xff] }
 0x933   :  { %v4025_v50 = vmul.f32 %v6634_v47, %v8146_v58  ;;  %v6636_v58 = vpop.eup %6635  ;;  %v6308_v42 = vpack.c.bf16 %v4531_v38, %v4530_v35 }
 0x935   :  { %v8264_v54 = vadd.f32 %v4026_v5, %v4025_v50  ;;  %v4100_v10 = vpop.f32.mrb[14].mxu0  ;;  %v4171_v49 = vpop.f32.mrb[14].mxu1 }
 0x936   :  { %v6324_v27 = vadd.f32 %v4100_v10, %v8760_v18  ;;  %v4102_v7 = vpop.f32.mrb[15].mxu0  ;;  %v4173_v46 = vpop.f32.mrb[15].mxu1  ;;  %v6340_v30 = vadd.f32 %v4171_v49, %v7462_v41 }
 0x937   :  { %v6325_v56 = vadd.f32 %v4102_v7, %v8699_v37  ;;  %6637 = vtanh.f32 %v8264_v54  ;;  %v6341_v4 = vadd.f32 %v4173_v46, %v8700_v21 }
 0x938   :  { %v4675_v60 = vmul.f32 -1.442695, %v6324_v27 }
 0x939   :  { %v4676_v28 = vmul.f32 -1.442695, %v6325_v56  ;;  %v4677_v11 = vmul.f32 -1.442695, %v6341_v4 }
 0x93a   :  { %6639 = vpow2.f32 %v4675_v60 }
 0x93b   :  { %6641 = vpow2.f32 %v4676_v28 }
 0x93c   :  { %6643 = vpow2.f32 %v4677_v11 }
 0x93d   :  { %6645 = vtanh.f32 %v6340_v30 }
 0x941   :  { %v6638_v40 = vpop.eup %6637 }
 0x942   :  { %v4029_v2 = vmul.f32 %v6638_v40, %v6636_v58 }
 0x944   :  { %v6640_v12 = vpop.eup %6639  ;;  %4269 = vmatmul.mubr.f32.vlgmr.msra.gmra.mrb[30].mxu0 %v4029_v2  ;;  %4340 = vmatmul.mubr.f32.vlgmr.msra.gmra.mrb[30].mxu1 %v4029_v2 }
 0x945   :  { %v6642_v18 = vpop.eup %6641  ;;  %v4183_v14 = vadd.f32 1.0, %v6640_v12  ;;  %6225 = vmatpush1.bf16.msra.mxu0 %v8701_v22  ;;  %6257 = vmatpush1.bf16.msra.mxu1 %v8702_v55 }
 0x946   :  { %v4189_v37 = vadd.f32 1.0, %v6642_v18  ;;  %6227 = vmatprep.subr.bf16.mxu0 %v8761_v24  ;;  %6259 = vmatprep.subr.bf16.mxu1 %v8762_v19  ;;  %v6644_v41 = vpop.eup %6643 }
 0x947   :  { %6647 = vrcp.f32 %v4183_v14  ;;  %4410 = vmatprep.mubr.f32.mxu0 %v8636_v62  ;;  %4481 = vmatprep.mubr.f32.mxu1 %v8636_v62  ;;  %v6646_v22 = vpop.eup %6645  ;;  %v4196_v19 = vadd.f32 1.0, %v6644_v41 }
 0x948   :  { %6649 = vrcp.f32 %v4189_v37  ;;  %v4681_v37 = vld [vmem:[%s8372_s8] ss:$0 sm:$0xff] }
 0x949   :  { %6229 = vmatpush1.bf16.msra.mxu0 %v8763_v51  ;;  %6261 = vmatpush1.bf16.msra.mxu1 %v8764_v13  ;;  %6651 = vrcp.f32 %v4196_v19 }
 0x94a   :  { %6231 = vmatprep.subr.bf16.mxu0 %v8820_v63  ;;  %6263 = vmatprep.subr.bf16.mxu1 %v8821_v9  ;;  %v4525_v63 = vld [vmem:[%s8371_s7 + $0x48] sm:$0xff] }
 0x94d   :  { %6233 = vmatpush1.bf16.msra.mxu0 %v8822_v23  ;;  %6265 = vmatpush1.bf16.msra.mxu1 %v8823_v20  ;;  %v4526_v23 = vld [vmem:[%s8371_s7 + $0x50] sm:$0xff]  ;;  %v4527_v20 = vld [vmem:[%s8371_s7 + $0x58] sm:$0xff] }
 0x94e   :  { %6235 = vmatprep.subr.bf16.mxu0 %v8824_v17  ;;  %6267 = vmatprep.subr.bf16.mxu1 %v8825_v53  ;;  %v4528_v17 = vld [vmem:[%s8371_s7 + $0x60] sm:$0xff]  ;;  %v6302_v53 = vpack.c.bf16 %v4527_v20, %v4526_v23 }
 0x951   :  { %v6648_v21 = vpop.eup %6647  ;;  %6237 = vmatpush1.bf16.msra.mxu0 %v8826_v36  ;;  %6269 = vmatpush1.bf16.msra.mxu1 %v8714_v16  ;;  %v4529_v36 = vld [vmem:[%s8371_s7 + $0x68] sm:$0xff] }
 0x952   :  { %v6650_v55 = vpop.eup %6649  ;;  %v4200_v24 = vmul.f32 %v6648_v21, %v6646_v22  ;;  %6239 = vmatprep.subr.bf16.mxu0 %v8715_v52  ;;  %6271 = vmatprep.subr.bf16.mxu1 %v8716_v59 }
 0x953   :  { %v4199_v51 = vmul.f32 %v6650_v55, %v8172_v57  ;;  %v6652_v52 = vpop.eup %6651  ;;  %v6305_v57 = vpack.c.bf16 %v4529_v36, %v4528_v17 }
 0x955   :  { %v4201_v13 = vadd.f32 %v4200_v24, %v4199_v51  ;;  %6241 = vmatpush1.bf16.msra.mxu0 %v8772_v39  ;;  %6273 = vmatpush1.bf16.msra.mxu1 %v8773_v44  ;;  %v4521_v39 = vld [vmem:[%s8371_s7 + $0x28] sm:$0xff] }
 0x956   :  { %6243 = vmatprep.subr.bf16.mxu0 %v8774_v34  ;;  %6275 = vmatprep.subr.bf16.mxu1 %v8775_v6  ;;  %v4520_v34 = vld [vmem:[%s8371_s7 + $0x20] sm:$0xff]  ;;  %v4522_v6 = vld [vmem:[%s8371_s7 + $0x30] sm:$0xff] }
 0x957   :  { %6653 = vtanh.f32 %v4201_v13  ;;  %v6293_v44 = vpack.c.bf16 %v4521_v39, %v4520_v34 }
 0x959   :  { %6245 = vmatpush1.bf16.msra.mxu0 %v8776_v61  ;;  %6277 = vmatpush1.bf16.msra.mxu1 %v8777_v48  ;;  %v4523_v61 = vld [vmem:[%s8371_s7 + $0x38] sm:$0xff] }
 0x95a   :  { %6247 = vmatprep.subr.bf16.mxu0 %v8778_v31  ;;  %6279 = vmatprep.subr.bf16.mxu1 %v8724_v0  ;;  %v4516_v0 = vld [vmem:[%s8371_s7] sm:$0xff]  ;;  %v6296_v48 = vpack.c.bf16 %v4523_v61, %v4522_v6 }
 0x95b   :  { %v4524_v31 = vld [vmem:[%s8371_s7 + $0x40] sm:$0xff] }
 0x95c   :  { %v6299_v9 = vpack.c.bf16 %v4525_v63, %v4524_v31 }
 0x95d   :  { %6249 = vmatpush1.bf16.msra.mxu0 %v8725_v3  ;;  %6281 = vmatpush1.bf16.msra.mxu1 %v8726_v15  ;;  %v4517_v3 = vld [vmem:[%s8371_s7 + $0x8] sm:$0xff] }
 0x95e   :  { %6251 = vmatprep.subr.bf16.mxu0 %v8727_v25  ;;  %6283 = vmatprep.subr.bf16.mxu1 %v8728_v43  ;;  %v6287_v15 = vpack.c.bf16 %v4517_v3, %v4516_v0  ;;  %v6772_v25 = vmov 0.0|0.0  }
 0x961   :  { %v6654_v59 = vpop.eup %6653  ;;  %6253 = vmatpush1.bf16.msra.mxu0 %v8729_v26  ;;  %6285 = vmatpush1.bf16.msra.mxu1 %v8730_v29  ;;  %v4518_v29 = vld [vmem:[%s8371_s7 + $0x10] sm:$0xff]  ;;  %v4519_v26 = vld [vmem:[%s8371_s7 + $0x18] sm:$0xff] }
 0x962   :  { %v4203_v16 = vmul.f32 %v6654_v59, %v6652_v52  ;;  %6286 = vmatprep.subr.bf16.mxu0 %v6772_v25  ;;  %v6290_v43 = vpack.c.bf16 %v4519_v26, %v4518_v29 }
 0x964   :  { %4411 = vmatmul.mubr.f32.vlgmr.msra.gmra.mrb[30].mxu0 %v4203_v16  ;;  %4482 = vmatmul.mubr.f32.vlgmr.msra.gmra.mrb[30].mxu1 %v4203_v16 }
 0x965   :  { %6288 = vmatpush3.bf16.msra.mxu0 %v6287_v15  ;;  %4731 = vmatprep.mubr.msk.f32.mxu0 %vm6773_vm1, %v8636_v62 }
 0x966   :  { %6289 = vmatprep.subr.bf16.mxu0 %v6772_v25 }
 0x969   :  { %6291 = vmatpush3.bf16.msra.mxu0 %v6290_v43 }
 0x96a   :  { %6292 = vmatprep.subr.bf16.mxu0 %v6772_v25 }
 0x96d   :  { %6294 = vmatpush3.bf16.msra.mxu0 %v6293_v44 }
 0x96e   :  { %6295 = vmatprep.subr.bf16.mxu0 %v6772_v25 }
 0x971   :  { %6297 = vmatpush3.bf16.msra.mxu0 %v6296_v48 }
 0x972   :  { %6298 = vmatprep.subr.bf16.mxu0 %v6772_v25 }
 0x975   :  { %6300 = vmatpush3.bf16.msra.mxu0 %v6299_v9 }
 0x976   :  { %6301 = vmatprep.subr.bf16.mxu0 %v6772_v25 }
 0x979   :  { %6303 = vmatpush3.bf16.msra.mxu0 %v6302_v53 }
 0x97a   :  { %6304 = vmatprep.subr.bf16.mxu0 %v6772_v25 }
 0x97d   :  { %6306 = vmatpush3.bf16.msra.mxu0 %v6305_v57 }
 0x97e   :  { %6307 = vmatprep.subr.bf16.mxu0 %v6772_v25 }
 0x981   :  { %6309 = vmatpush3.bf16.msra.mxu0 %v6308_v42 }
 0xa37   :  { %v4412_v47 = vpop.f32.mrb[30].mxu0  ;;  %v4483_v5 = vpop.f32.mrb[30].mxu1 }
 0xa38   :  { %v4488_v1 = vadd.f32 %v4412_v47, %v9055_v33  ;;  %v4414_v62 = vpop.f32.mrb[31].mxu0  ;;  %v4485_v50 = vpop.f32.mrb[31].mxu1  ;;  %v4490_v56 = vadd.f32 %v4483_v5, %v8819_v45 }
 0xa39   :  { %v4489_v10 = vadd.f32 %v4414_v62, %v8818_v32  ;;  %v4491_v7 = vadd.f32 %v4485_v50, %v8757_v8 }
 0xa3a   :  { %v4678_v49 = vmul.f32 -1.442695, %v4488_v1 }
 0xa3b   :  { %v4679_v27 = vmul.f32 -1.442695, %v4489_v10  ;;  %v4680_v46 = vmul.f32 -1.442695, %v4491_v7 }
 0xa3c   :  { %6655 = vpow2.f32 %v4678_v49 }
 0xa3d   :  { %6657 = vpow2.f32 %v4679_v27 }
 0xa3e   :  { %6659 = vpow2.f32 %v4680_v46 }
 0xa3f   :  { %6661 = vtanh.f32 %v4490_v56 }
 0xa46   :  { %v6656_v60 = vpop.eup %6655 }
 0xa47   :  { %v6658_v28 = vpop.eup %6657  ;;  %v4495_v4 = vadd.f32 1.0, %v6656_v60 }
 0xa48   :  { %v4501_v58 = vadd.f32 1.0, %v6658_v28  ;;  %v6660_v33 = vpop.eup %6659 }
 0xa49   :  { %6663 = vrcp.f32 %v4495_v4  ;;  %v6662_v40 = vpop.eup %6661  ;;  %v4508_v2 = vadd.f32 1.0, %v6660_v33 }
 0xa4a   :  { %6665 = vrcp.f32 %v4501_v58 }
 0xa4b   :  { %6667 = vrcp.f32 %v4508_v2 }
 0xa53   :  { %v6664_v32 = vpop.eup %6663 }
 0xa54   :  { %v6666_v11 = vpop.eup %6665  ;;  %v4512_v30 = vmul.f32 %v6664_v32, %v6662_v40 }
 0xa55   :  { %v4511_v12 = vmul.f32 %v6666_v11, %v8264_v54  ;;  %v6668_v45 = vpop.eup %6667 }
 0xa57   :  { %v4513_v8 = vadd.f32 %v4512_v30, %v4511_v12 }
 0xa59   :  { %6669 = vtanh.f32 %v4513_v8 }
 0xa63   :  { %v6670_v18 = vpop.eup %6669 }
 0xa64   :  { %v4515_v14 = vmul.f32 %v6670_v18, %v6668_v45 }
 0xa66   :  { %4732 = vmatmul.mubr.f32.vlgmr.msra.gmra.mrb[32].mxu0 %v4515_v14 }
 0xb39   :  { %v4605_v41 = vpop.f32.mrb[32].mxu0 }
 0xb3a   :  { %v4606_v22 = vadd.f32 %v4681_v37, %v4605_v41  ;;  %v4733_v21 = vpop.f32.mrb[33].mxu0 }
 0xb3c   :  { %4609 = vst [vmem:[%s8373_s9] sm:$0xff] %v4606_v22 }
 0xb3d   :  { %4614 = vsyncpa [#allocation4], 1 }
 0xb3e   :  { %4615 = vsyncpa [#allocation6], 1 }
 0xb3f   :  { %4616 = vsyncpa [#allocation9], 1 }

</bundles_post_ra>
